<compile_context>
chip_gen: v5e
topology: v5e:2x2
jax: 0.10.0
libtpu: 0.0.40
codegen_flags: <defaults>
</compile_context>

<pallas_src>
import math

import jax
import jax.numpy as jnp
from jax.experimental import pallas as pl

NUM_FFT = 16
SCALES = (2.0 / 7.0, 1.0 / 7.0, 1.0 / 14.0, 1.0 / 28.0)
OUT_CHANNELS = (48, 96, 192, 384)
BN_EPS = 1e-5

X_MEAN = jnp.array([0.485, 0.456, 0.406], jnp.float32)
X_STD = jnp.array([0.229, 0.224, 0.225], jnp.float32)


# ----------------------------- Pallas kernels ------------------------------

def _conv1x1_bn_relu_kernel(x_ref, w_ref, s_ref, b_ref, o_ref):
    # Channel-major layout: x (Cin, M), w (Cout, Cin), s/b (Cout, 1),
    # o (Cout, M).  M = N*H*W lands on the lane axis -> dense vector stores.
    y = jnp.dot(w_ref[...], x_ref[...], preferred_element_type=jnp.float32)
    o_ref[...] = jnp.maximum(y * s_ref[...] + b_ref[...], 0.0)


def _fusion_bn_relu_kernel(x1_ref, x2_ref, w1_ref, w2_ref, s_ref, b_ref, o_ref):
    # Fused FeatureFusion: torch.cat((x1, x2), dim=1) + conv1x1 + BN + ReLU,
    # with the concat folded into two accumulated dots (no HBM concat tensor).
    y = jnp.dot(w1_ref[...], x1_ref[...], preferred_element_type=jnp.float32)
    y = y + jnp.dot(w2_ref[...], x2_ref[...], preferred_element_type=jnp.float32)
    o_ref[...] = jnp.maximum(y * s_ref[...] + b_ref[...], 0.0)


# --------------------------- kernel wrappers (glue) -------------------------

def conv1x1_bn_relu_cm(x_cm, p):
    """x_cm: (Cin, M) -> (Cout, M). Fused 1x1 conv + folded BN + ReLU.

    Single full-extent block per call: all operands fit trivially in VMEM on
    v5e/v6e/v7x, so no grid, no padding, no partial-tile masking on M.
    """
    cout = p["w"].shape[0]
    m = x_cm.shape[1]
    return pl.pallas_call(
        _conv1x1_bn_relu_kernel,
        out_shape=jax.ShapeDtypeStruct((cout, m), jnp.float32),
    )(x_cm, p["w"], p["scale"], p["bias"])


def fusion_bn_relu_cm(x1_cm, x2_cm, p):
    """Fused FeatureFusion on channel-major layout."""
    cout = p["w1"].shape[0]
    m = x1_cm.shape[1]
    return pl.pallas_call(
        _fusion_bn_relu_kernel,
        out_shape=jax.ShapeDtypeStruct((cout, m), jnp.float32),
    )(x1_cm, x2_cm, p["w1"], p["w2"], p["scale"], p["bias"])


# ------------------------------ JAX glue ops --------------------------------

def _interp_matrix(n_out, n_in):
    # align_corners=True bilinear sampling matrix (n_out, n_in); constant
    # folded at trace time.
    if n_out == 1:
        src = jnp.zeros((1,), jnp.float32)
    else:
        src = jnp.arange(n_out, dtype=jnp.float32) * ((n_in - 1) / (n_out - 1))
    lo = jnp.clip(jnp.floor(src), 0, n_in - 1).astype(jnp.int32)
    hi = jnp.clip(lo + 1, 0, n_in - 1)
    frac = src - lo.astype(jnp.float32)
    idx = jnp.arange(n_out)
    a = jnp.zeros((n_out, n_in), jnp.float32)
    a = a.at[idx, lo].add(1.0 - frac)
    a = a.at[idx, hi].add(frac)
    return a


def bilinear_resize_cnhw(x, size):
    """F.interpolate(mode='bilinear', align_corners=True) on a (C, N, H, W)
    tensor, expressed as two small matmuls.  Tiny (3-channel) input; kept as
    XLA glue rather than a Pallas kernel."""
    ho, wo = size
    _, _, h, w = x.shape
    ah = _interp_matrix(ho, h)
    aw = _interp_matrix(wo, w)
    return jnp.einsum("oh,cnhw,pw->cnop", ah, x, aw)


# ------------------------------ parameter init ------------------------------

def make_conv_bn_params(key, cin, cout, fold_input_norm=False):
    """Synthetic Conv2d(1x1, bias=False) + BatchNorm2d params, folded for
    eval-mode inference: y = relu(scale * (W x) + bias)."""
    kw, kg, kb, km = jax.random.split(key, 4)
    w = jax.random.normal(kw, (cout, cin), jnp.float32) / jnp.sqrt(float(cin))
    gamma = 1.0 + 0.1 * jax.random.normal(kg, (cout,), jnp.float32)
    beta = 0.1 * jax.random.normal(kb, (cout,), jnp.float32)
    mean = 0.1 * jax.random.normal(km, (cout,), jnp.float32)
    var = jnp.ones((cout,), jnp.float32)
    scale = gamma / jnp.sqrt(var + BN_EPS)
    bias = beta - mean * scale
    if fold_input_norm:
        # Fold (x - X_MEAN) / X_STD into the conv.  Exact: the per-channel
        # affine commutes with align_corners bilinear resize (weights sum to 1).
        bias = bias - scale * (w @ (X_MEAN / X_STD))
        w = w / X_STD[None, :]
    return dict(w=w, scale=scale[:, None], bias=bias[:, None])


def make_fusion_params(key, c):
    p = make_conv_bn_params(key, c + NUM_FFT, c)
    # Reference concatenates (spatial, freq) on channels: first `c` weight
    # columns act on the spatial features, last NUM_FFT on the frequency ones.
    return dict(w1=p["w"][:, :c], w2=p["w"][:, c:],
                scale=p["scale"], bias=p["bias"])


def init_fft_features(key, out_planes):
    k1, k2, k3 = jax.random.split(key, 3)
    return dict(
        in_conv=make_conv_bn_params(k1, 3, out_planes // 4, fold_input_norm=True),
        conv=make_conv_bn_params(k2, out_planes // 2, out_planes // 2),
        out_conv=make_conv_bn_params(k3, out_planes // 4, out_planes),
    )


def init_extra_freq(key):
    ks = jax.random.split(key, 5)
    # layer4 exists but is unused, exactly as in the reference module.
    return [init_fft_features(k, NUM_FFT) for k in ks]


def init_decoder(key, out_channels):
    ks = jax.random.split(key, 4)
    return [make_fusion_params(k, c) for k, c in zip(ks, out_channels)]


def init_network(key):
    k1, k2 = jax.random.split(key)
    return dict(freq=init_extra_freq(k1), dec=init_decoder(k2, OUT_CHANNELS))


# ------------------------------ model forward -------------------------------

def fft_features(params, img_cnhw):
    """img_cnhw: (3, N, Ho, Wo) raw (un-normalized) resized image; the input
    normalization is already folded into in_conv."""
    c, n, h, w = img_cnhw.shape
    m = n * h * w
    f_data = params["in_conv"]["w"].shape[0]        # out_planes // 4
    out_planes = params["out_conv"]["w"].shape[0]

    x = conv1x1_bn_relu_cm(img_cnhw.reshape(c, m), params["in_conv"])
    x = x.reshape(f_data, n, h, w)
    # TODO(synk): complex 2-D FFT has no Pallas TPU primitive; kept as jnp.fft glue.
    x_fft = jnp.fft.fft2(x)                          # over (-2, -1) = (H, W)
    x_freq = jnp.concatenate([jnp.real(x_fft), jnp.imag(x_fft)], axis=0)

    out_freq = conv1x1_bn_relu_cm(x_freq.reshape(2 * f_data, m), params["conv"])
    out_freq = out_freq.reshape(2 * f_data, n, h, w)
    out_complex = out_freq[:f_data] + 1j * out_freq[f_data:]
    out = jnp.abs(jnp.fft.ifft2(out_complex))

    out = conv1x1_bn_relu_cm(out.reshape(f_data, m), params["out_conv"])
    return out.reshape(out_planes, n, h, w)


def extra_freq(params, x_cnhw):
    h, w = x_cnhw.shape[-2:]
    outs = []
    for i in range(4):
        size = (int(math.ceil(h * SCALES[i])), int(math.ceil(w * SCALES[i])))
        li = bilinear_resize_cnhw(x_cnhw, size)
        outs.append(fft_features(params[i], li))
    return outs


def feature_fusion(params, x1_cnhw, x2_cnhw):
    c1, n, h, w = x1_cnhw.shape
    m = n * h * w
    out = fusion_bn_relu_cm(x1_cnhw.reshape(c1, m),
                            x2_cnhw.reshape(x2_cnhw.shape[0], m), params)
    return out.reshape(c1, n, h, w)


def decoder_forward(params, spatial_features, freq_features):
    fused = tuple(feature_fusion(p, s, f)
                  for p, s, f in zip(params, spatial_features, freq_features))
    # Reference Decoder.forward returns True; the fused maps are returned too
    # so the Pallas compute is observable / blockable.
    return True, fused


@jax.jit
def your_network_forward(params, x):
    bs, ch, h, w = x.shape
    h_patches, w_patches = h // 14, w // 14  # noqa: F841 (parity with reference)
    # Single NCHW -> CNHW (channel-major) transpose for the whole network.
    # The (x - mean) / std normalization is folded into every in_conv.
    x_cnhw = jnp.transpose(x[:, :3], (1, 0, 2, 3))
    freq_det = extra_freq(params["freq"], x_cnhw)
    # TODO(synk): `self.encoder` is never defined in the reference module; use
    # deterministic stand-in spatial features shaped to match each frequency
    # map so the decoder's FeatureFusion Pallas kernels can run.
    spa_features = [
        (0.01 * jnp.arange(c * bs * f.shape[-2] * f.shape[-1], dtype=jnp.float32)
         ).reshape(c, bs, f.shape[-2], f.shape[-1])
        for c, f in zip(OUT_CHANNELS, freq_det)
    ]
    out, fused = decoder_forward(params["dec"], spa_features, freq_det)
    # Convert the (tiny) observable outputs back to NCHW once at exit.
    fused_nchw = tuple(jnp.transpose(f, (1, 0, 2, 3)) for f in fused)
    freq_nchw = [jnp.transpose(f, (1, 0, 2, 3)) for f in freq_det]
    return out, fused_nchw, freq_nchw


# ---------------------------------- main ------------------------------------

if __name__ == "__main__":
    key = jax.random.PRNGKey(0)
    kx, kp = jax.random.split(key)
    # H=W=56 so the multiscale sizes ceil(56*scale) = 16, 8, 4, 2 and 56 % 14 == 0.
    x = jax.random.uniform(kx, (2, 3, 56, 56), jnp.float32)
    params = init_network(kp)

    out, fused, freq_det = your_network_forward(params, x)
    jax.block_until_ready(fused)
    jax.block_until_ready(freq_det)
    assert bool(out) is True
    assert fused[0].shape == (2, 48, 16, 16)
    assert fused[3].shape == (2, 384, 2, 2)
    assert all(f.shape[1] == NUM_FFT for f in freq_det)
    print("KERNEL_OK")
</pallas_src>

<mosaic_0001>
module attributes {stable_mosaic.version = 11 : i64} {
  func.func @_conv1x1_bn_relu_kernel(%arg0: memref<3x8xf32, #tpu.memory_space<vmem>>, %arg1: memref<4x3xf32, #tpu.memory_space<vmem>>, %arg2: memref<4x1xf32, #tpu.memory_space<vmem>>, %arg3: memref<4x1xf32, #tpu.memory_space<vmem>>, %arg4: memref<4x8xf32, #tpu.memory_space<vmem>>) attributes {dimension_semantics = [], scalar_prefetch = 0 : i64, scratch_operands = 0 : i64, tpu.core_type = #tpu.core_type<tc>} {
    %c0 = arith.constant 0 : index
    %c0_0 = arith.constant 0 : index
    %0 = vector.load %arg1[%c0, %c0_0] : memref<4x3xf32, #tpu.memory_space<vmem>>, vector<4x3xf32>
    %c0_1 = arith.constant 0 : index
    %c0_2 = arith.constant 0 : index
    %1 = vector.load %arg0[%c0_1, %c0_2] : memref<3x8xf32, #tpu.memory_space<vmem>>, vector<3x8xf32>
    %cst = arith.constant dense<0.000000e+00> : vector<4x8xf32>
    %2 = tpu.matmul %0, %1, %cst {dimension_numbers = #tpu.dot_dimension_numbers<[1], [0], [0], [1], [0, 0, 1, 1], [], []>} : vector<4x3xf32>, vector<3x8xf32>, vector<4x8xf32> -> vector<4x8xf32>
    %c0_3 = arith.constant 0 : index
    %c0_4 = arith.constant 0 : index
    %3 = vector.load %arg2[%c0_3, %c0_4] : memref<4x1xf32, #tpu.memory_space<vmem>>, vector<4x1xf32>
    %4 = vector.broadcast %3 : vector<4x1xf32> to vector<4x8xf32>
    %5 = arith.mulf %2, %4 : vector<4x8xf32>
    %c0_5 = arith.constant 0 : index
    %c0_6 = arith.constant 0 : index
    %6 = vector.load %arg3[%c0_5, %c0_6] : memref<4x1xf32, #tpu.memory_space<vmem>>, vector<4x1xf32>
    %7 = vector.broadcast %6 : vector<4x1xf32> to vector<4x8xf32>
    %8 = arith.addf %5, %7 : vector<4x8xf32>
    %cst_7 = arith.constant 0.000000e+00 : f32
    %9 = vector.broadcast %cst_7 : f32 to vector<4x8xf32>
    %10 = arith.maximumf %8, %9 : vector<4x8xf32>
    %c0_8 = arith.constant 0 : index
    %c0_9 = arith.constant 0 : index
    %11 = vector.load %arg4[%c0_8, %c0_9] : memref<4x8xf32, #tpu.memory_space<vmem>>, vector<4x8xf32>
    tpu.vector_store %arg4[%c0_8, %c0_9], %10 {strides = array<i32>} : memref<4x8xf32, #tpu.memory_space<vmem>>, vector<4x8xf32>,
    return
  }
}

module attributes {stable_mosaic.version = 11 : i64} {
  func.func @_conv1x1_bn_relu_kernel(%arg0: memref<8x8xf32, #tpu.memory_space<vmem>>, %arg1: memref<8x8xf32, #tpu.memory_space<vmem>>, %arg2: memref<8x1xf32, #tpu.memory_space<vmem>>, %arg3: memref<8x1xf32, #tpu.memory_space<vmem>>, %arg4: memref<8x8xf32, #tpu.memory_space<vmem>>) attributes {dimension_semantics = [], scalar_prefetch = 0 : i64, scratch_operands = 0 : i64, tpu.core_type = #tpu.core_type<tc>} {
    %c0 = arith.constant 0 : index
    %c0_0 = arith.constant 0 : index
    %0 = vector.load %arg1[%c0, %c0_0] : memref<8x8xf32, #tpu.memory_space<vmem>>, vector<8x8xf32>
    %c0_1 = arith.constant 0 : index
    %c0_2 = arith.constant 0 : index
    %1 = vector.load %arg0[%c0_1, %c0_2] : memref<8x8xf32, #tpu.memory_space<vmem>>, vector<8x8xf32>
    %cst = arith.constant dense<0.000000e+00> : vector<8x8xf32>
    %2 = tpu.matmul %0, %1, %cst {dimension_numbers = #tpu.dot_dimension_numbers<[1], [0], [0], [1], [0, 0, 1, 1], [], []>} : vector<8x8xf32>, vector<8x8xf32>, vector<8x8xf32> -> vector<8x8xf32>
    %c0_3 = arith.constant 0 : index
    %c0_4 = arith.constant 0 : index
    %3 = vector.load %arg2[%c0_3, %c0_4] : memref<8x1xf32, #tpu.memory_space<vmem>>, vector<8x1xf32>
    %4 = vector.broadcast %3 : vector<8x1xf32> to vector<8x8xf32>
    %5 = arith.mulf %2, %4 : vector<8x8xf32>
    %c0_5 = arith.constant 0 : index
    %c0_6 = arith.constant 0 : index
    %6 = vector.load %arg3[%c0_5, %c0_6] : memref<8x1xf32, #tpu.memory_space<vmem>>, vector<8x1xf32>
    %7 = vector.broadcast %6 : vector<8x1xf32> to vector<8x8xf32>
    %8 = arith.addf %5, %7 : vector<8x8xf32>
    %cst_7 = arith.constant 0.000000e+00 : f32
    %9 = vector.broadcast %cst_7 : f32 to vector<8x8xf32>
    %10 = arith.maximumf %8, %9 : vector<8x8xf32>
    %c0_8 = arith.constant 0 : index
    %c0_9 = arith.constant 0 : index
    %11 = vector.load %arg4[%c0_8, %c0_9] : memref<8x8xf32, #tpu.memory_space<vmem>>, vector<8x8xf32>
    tpu.vector_store %arg4[%c0_8, %c0_9], %10 {strides = array<i32>} : memref<8x8xf32, #tpu.memory_space<vmem>>, vector<8x8xf32>,
    return
  }
}

module attributes {stable_mosaic.version = 11 : i64} {
  func.func @_conv1x1_bn_relu_kernel(%arg0: memref<4x8xf32, #tpu.memory_space<vmem>>, %arg1: memref<16x4xf32, #tpu.memory_space<vmem>>, %arg2: memref<16x1xf32, #tpu.memory_space<vmem>>, %arg3: memref<16x1xf32, #tpu.memory_space<vmem>>, %arg4: memref<16x8xf32, #tpu.memory_space<vmem>>) attributes {dimension_semantics = [], scalar_prefetch = 0 : i64, scratch_operands = 0 : i64, tpu.core_type = #tpu.core_type<tc>} {
    %c0 = arith.constant 0 : index
    %c0_0 = arith.constant 0 : index
    %0 = vector.load %arg1[%c0, %c0_0] : memref<16x4xf32, #tpu.memory_space<vmem>>, vector<16x4xf32>
    %c0_1 = arith.constant 0 : index
    %c0_2 = arith.constant 0 : index
    %1 = vector.load %arg0[%c0_1, %c0_2] : memref<4x8xf32, #tpu.memory_space<vmem>>, vector<4x8xf32>
    %cst = arith.constant dense<0.000000e+00> : vector<16x8xf32>
    %2 = tpu.matmul %0, %1, %cst {dimension_numbers = #tpu.dot_dimension_numbers<[1], [0], [0], [1], [0, 0, 1, 1], [], []>} : vector<16x4xf32>, vector<4x8xf32>, vector<16x8xf32> -> vector<16x8xf32>
    %c0_3 = arith.constant 0 : index
    %c0_4 = arith.constant 0 : index
    %3 = vector.load %arg2[%c0_3, %c0_4] : memref<16x1xf32, #tpu.memory_space<vmem>>, vector<16x1xf32>
    %4 = vector.broadcast %3 : vector<16x1xf32> to vector<16x8xf32>
    %5 = arith.mulf %2, %4 : vector<16x8xf32>
    %c0_5 = arith.constant 0 : index
    %c0_6 = arith.constant 0 : index
    %6 = vector.load %arg3[%c0_5, %c0_6] : memref<16x1xf32, #tpu.memory_space<vmem>>, vector<16x1xf32>
    %7 = vector.broadcast %6 : vector<16x1xf32> to vector<16x8xf32>
    %8 = arith.addf %5, %7 : vector<16x8xf32>
    %cst_7 = arith.constant 0.000000e+00 : f32
    %9 = vector.broadcast %cst_7 : f32 to vector<16x8xf32>
    %10 = arith.maximumf %8, %9 : vector<16x8xf32>
    %c0_8 = arith.constant 0 : index
    %c0_9 = arith.constant 0 : index
    %11 = vector.load %arg4[%c0_8, %c0_9] : memref<16x8xf32, #tpu.memory_space<vmem>>, vector<16x8xf32>
    tpu.vector_store %arg4[%c0_8, %c0_9], %10 {strides = array<i32>} : memref<16x8xf32, #tpu.memory_space<vmem>>, vector<16x8xf32>,
    return
  }
}

module attributes {stable_mosaic.version = 11 : i64} {
  func.func @_fusion_bn_relu_kernel(%arg0: memref<384x8xf32, #tpu.memory_space<vmem>>, %arg1: memref<16x8xf32, #tpu.memory_space<vmem>>, %arg2: memref<384x384xf32, #tpu.memory_space<vmem>>, %arg3: memref<384x16xf32, #tpu.memory_space<vmem>>, %arg4: memref<384x1xf32, #tpu.memory_space<vmem>>, %arg5: memref<384x1xf32, #tpu.memory_space<vmem>>, %arg6: memref<384x8xf32, #tpu.memory_space<vmem>>) attributes {dimension_semantics = [], scalar_prefetch = 0 : i64, scratch_operands = 0 : i64, tpu.core_type = #tpu.core_type<tc>} {
    %c0 = arith.constant 0 : index
    %c0_0 = arith.constant 0 : index
    %0 = vector.load %arg2[%c0, %c0_0] : memref<384x384xf32, #tpu.memory_space<vmem>>, vector<384x384xf32>
    %c0_1 = arith.constant 0 : index
    %c0_2 = arith.constant 0 : index
    %1 = vector.load %arg0[%c0_1, %c0_2] : memref<384x8xf32, #tpu.memory_space<vmem>>, vector<384x8xf32>
    %cst = arith.constant dense<0.000000e+00> : vector<384x8xf32>
    %2 = tpu.matmul %0, %1, %cst {dimension_numbers = #tpu.dot_dimension_numbers<[1], [0], [0], [1], [0, 0, 1, 1], [], []>} : vector<384x384xf32>, vector<384x8xf32>, vector<384x8xf32> -> vector<384x8xf32>
    %c0_3 = arith.constant 0 : index
    %c0_4 = arith.constant 0 : index
    %3 = vector.load %arg3[%c0_3, %c0_4] : memref<384x16xf32, #tpu.memory_space<vmem>>, vector<384x16xf32>
    %c0_5 = arith.constant 0 : index
    %c0_6 = arith.constant 0 : index
    %4 = vector.load %arg1[%c0_5, %c0_6] : memref<16x8xf32, #tpu.memory_space<vmem>>, vector<16x8xf32>
    %cst_7 = arith.constant dense<0.000000e+00> : vector<384x8xf32>
    %5 = tpu.matmul %3, %4, %cst_7 {dimension_numbers = #tpu.dot_dimension_numbers<[1], [0], [0], [1], [0, 0, 1, 1], [], []>} : vector<384x16xf32>, vector<16x8xf32>, vector<384x8xf32> -> vector<384x8xf32>
    %6 = arith.addf %2, %5 : vector<384x8xf32>
    %c0_8 = arith.constant 0 : index
    %c0_9 = arith.constant 0 : index
    %7 = vector.load %arg4[%c0_8, %c0_9] : memref<384x1xf32, #tpu.memory_space<vmem>>, vector<384x1xf32>
    %8 = vector.broadcast %7 : vector<384x1xf32> to vector<384x8xf32>
    %9 = arith.mulf %6, %8 : vector<384x8xf32>
    %c0_10 = arith.constant 0 : index
    %c0_11 = arith.constant 0 : index
    %10 = vector.load %arg5[%c0_10, %c0_11] : memref<384x1xf32, #tpu.memory_space<vmem>>, vector<384x1xf32>
    %11 = vector.broadcast %10 : vector<384x1xf32> to vector<384x8xf32>
    %12 = arith.addf %9, %11 : vector<384x8xf32>
    %cst_12 = arith.constant 0.000000e+00 : f32
    %13 = vector.broadcast %cst_12 : f32 to vector<384x8xf32>
    %14 = arith.maximumf %12, %13 : vector<384x8xf32>
    %c0_13 = arith.constant 0 : index
    %c0_14 = arith.constant 0 : index
    %15 = vector.load %arg6[%c0_13, %c0_14] : memref<384x8xf32, #tpu.memory_space<vmem>>, vector<384x8xf32>
    tpu.vector_store %arg6[%c0_13, %c0_14], %14 {strides = array<i32>} : memref<384x8xf32, #tpu.memory_space<vmem>>, vector<384x8xf32>,
    return
  }
}

module attributes {stable_mosaic.version = 11 : i64} {
  func.func @_conv1x1_bn_relu_kernel(%arg0: memref<3x32xf32, #tpu.memory_space<vmem>>, %arg1: memref<4x3xf32, #tpu.memory_space<vmem>>, %arg2: memref<4x1xf32, #tpu.memory_space<vmem>>, %arg3: memref<4x1xf32, #tpu.memory_space<vmem>>, %arg4: memref<4x32xf32, #tpu.memory_space<vmem>>) attributes {dimension_semantics = [], scalar_prefetch = 0 : i64, scratch_operands = 0 : i64, tpu.core_type = #tpu.core_type<tc>} {
    %c0 = arith.constant 0 : index
    %c0_0 = arith.constant 0 : index
    %0 = vector.load %arg1[%c0, %c0_0] : memref<4x3xf32, #tpu.memory_space<vmem>>, vector<4x3xf32>
    %c0_1 = arith.constant 0 : index
    %c0_2 = arith.constant 0 : index
    %1 = vector.load %arg0[%c0_1, %c0_2] : memref<3x32xf32, #tpu.memory_space<vmem>>, vector<3x32xf32>
    %cst = arith.constant dense<0.000000e+00> : vector<4x32xf32>
    %2 = tpu.matmul %0, %1, %cst {dimension_numbers = #tpu.dot_dimension_numbers<[1], [0], [0], [1], [0, 0, 1, 1], [], []>} : vector<4x3xf32>, vector<3x32xf32>, vector<4x32xf32> -> vector<4x32xf32>
    %c0_3 = arith.constant 0 : index
    %c0_4 = arith.constant 0 : index
    %3 = vector.load %arg2[%c0_3, %c0_4] : memref<4x1xf32, #tpu.memory_space<vmem>>, vector<4x1xf32>
    %4 = vector.broadcast %3 : vector<4x1xf32> to vector<4x32xf32>
    %5 = arith.mulf %2, %4 : vector<4x32xf32>
    %c0_5 = arith.constant 0 : index
    %c0_6 = arith.constant 0 : index
    %6 = vector.load %arg3[%c0_5, %c0_6] : memref<4x1xf32, #tpu.memory_space<vmem>>, vector<4x1xf32>
    %7 = vector.broadcast %6 : vector<4x1xf32> to vector<4x32xf32>
    %8 = arith.addf %5, %7 : vector<4x32xf32>
    %cst_7 = arith.constant 0.000000e+00 : f32
    %9 = vector.broadcast %cst_7 : f32 to vector<4x32xf32>
    %10 = arith.maximumf %8, %9 : vector<4x32xf32>
    %c0_8 = arith.constant 0 : index
    %c0_9 = arith.constant 0 : index
    %11 = vector.load %arg4[%c0_8, %c0_9] : memref<4x32xf32, #tpu.memory_space<vmem>>, vector<4x32xf32>
    tpu.vector_store %arg4[%c0_8, %c0_9], %10 {strides = array<i32>} : memref<4x32xf32, #tpu.memory_space<vmem>>, vector<4x32xf32>,
    return
  }
}

module attributes {stable_mosaic.version = 11 : i64} {
  func.func @_conv1x1_bn_relu_kernel(%arg0: memref<8x32xf32, #tpu.memory_space<vmem>>, %arg1: memref<8x8xf32, #tpu.memory_space<vmem>>, %arg2: memref<8x1xf32, #tpu.memory_space<vmem>>, %arg3: memref<8x1xf32, #tpu.memory_space<vmem>>, %arg4: memref<8x32xf32, #tpu.memory_space<vmem>>) attributes {dimension_semantics = [], scalar_prefetch = 0 : i64, scratch_operands = 0 : i64, tpu.core_type = #tpu.core_type<tc>} {
    %c0 = arith.constant 0 : index
    %c0_0 = arith.constant 0 : index
    %0 = vector.load %arg1[%c0, %c0_0] : memref<8x8xf32, #tpu.memory_space<vmem>>, vector<8x8xf32>
    %c0_1 = arith.constant 0 : index
    %c0_2 = arith.constant 0 : index
    %1 = vector.load %arg0[%c0_1, %c0_2] : memref<8x32xf32, #tpu.memory_space<vmem>>, vector<8x32xf32>
    %cst = arith.constant dense<0.000000e+00> : vector<8x32xf32>
    %2 = tpu.matmul %0, %1, %cst {dimension_numbers = #tpu.dot_dimension_numbers<[1], [0], [0], [1], [0, 0, 1, 1], [], []>} : vector<8x8xf32>, vector<8x32xf32>, vector<8x32xf32> -> vector<8x32xf32>
    %c0_3 = arith.constant 0 : index
    %c0_4 = arith.constant 0 : index
    %3 = vector.load %arg2[%c0_3, %c0_4] : memref<8x1xf32, #tpu.memory_space<vmem>>, vector<8x1xf32>
    %4 = vector.broadcast %3 : vector<8x1xf32> to vector<8x32xf32>
    %5 = arith.mulf %2, %4 : vector<8x32xf32>
    %c0_5 = arith.constant 0 : index
    %c0_6 = arith.constant 0 : index
    %6 = vector.load %arg3[%c0_5, %c0_6] : memref<8x1xf32, #tpu.memory_space<vmem>>, vector<8x1xf32>
    %7 = vector.broadcast %6 : vector<8x1xf32> to vector<8x32xf32>
    %8 = arith.addf %5, %7 : vector<8x32xf32>
    %cst_7 = arith.constant 0.000000e+00 : f32
    %9 = vector.broadcast %cst_7 : f32 to vector<8x32xf32>
    %10 = arith.maximumf %8, %9 : vector<8x32xf32>
    %c0_8 = arith.constant 0 : index
    %c0_9 = arith.constant 0 : index
    %11 = vector.load %arg4[%c0_8, %c0_9] : memref<8x32xf32, #tpu.memory_space<vmem>>, vector<8x32xf32>
    tpu.vector_store %arg4[%c0_8, %c0_9], %10 {strides = array<i32>} : memref<8x32xf32, #tpu.memory_space<vmem>>, vector<8x32xf32>,
    return
  }
}

module attributes {stable_mosaic.version = 11 : i64} {
  func.func @_conv1x1_bn_relu_kernel(%arg0: memref<4x32xf32, #tpu.memory_space<vmem>>, %arg1: memref<16x4xf32, #tpu.memory_space<vmem>>, %arg2: memref<16x1xf32, #tpu.memory_space<vmem>>, %arg3: memref<16x1xf32, #tpu.memory_space<vmem>>, %arg4: memref<16x32xf32, #tpu.memory_space<vmem>>) attributes {dimension_semantics = [], scalar_prefetch = 0 : i64, scratch_operands = 0 : i64, tpu.core_type = #tpu.core_type<tc>} {
    %c0 = arith.constant 0 : index
    %c0_0 = arith.constant 0 : index
    %0 = vector.load %arg1[%c0, %c0_0] : memref<16x4xf32, #tpu.memory_space<vmem>>, vector<16x4xf32>
    %c0_1 = arith.constant 0 : index
    %c0_2 = arith.constant 0 : index
    %1 = vector.load %arg0[%c0_1, %c0_2] : memref<4x32xf32, #tpu.memory_space<vmem>>, vector<4x32xf32>
    %cst = arith.constant dense<0.000000e+00> : vector<16x32xf32>
    %2 = tpu.matmul %0, %1, %cst {dimension_numbers = #tpu.dot_dimension_numbers<[1], [0], [0], [1], [0, 0, 1, 1], [], []>} : vector<16x4xf32>, vector<4x32xf32>, vector<16x32xf32> -> vector<16x32xf32>
    %c0_3 = arith.constant 0 : index
    %c0_4 = arith.constant 0 : index
    %3 = vector.load %arg2[%c0_3, %c0_4] : memref<16x1xf32, #tpu.memory_space<vmem>>, vector<16x1xf32>
    %4 = vector.broadcast %3 : vector<16x1xf32> to vector<16x32xf32>
    %5 = arith.mulf %2, %4 : vector<16x32xf32>
    %c0_5 = arith.constant 0 : index
    %c0_6 = arith.constant 0 : index
    %6 = vector.load %arg3[%c0_5, %c0_6] : memref<16x1xf32, #tpu.memory_space<vmem>>, vector<16x1xf32>
    %7 = vector.broadcast %6 : vector<16x1xf32> to vector<16x32xf32>
    %8 = arith.addf %5, %7 : vector<16x32xf32>
    %cst_7 = arith.constant 0.000000e+00 : f32
    %9 = vector.broadcast %cst_7 : f32 to vector<16x32xf32>
    %10 = arith.maximumf %8, %9 : vector<16x32xf32>
    %c0_8 = arith.constant 0 : index
    %c0_9 = arith.constant 0 : index
    %11 = vector.load %arg4[%c0_8, %c0_9] : memref<16x32xf32, #tpu.memory_space<vmem>>, vector<16x32xf32>
    tpu.vector_store %arg4[%c0_8, %c0_9], %10 {strides = array<i32>} : memref<16x32xf32, #tpu.memory_space<vmem>>, vector<16x32xf32>,
    return
  }
}

module attributes {stable_mosaic.version = 11 : i64} {
  func.func @_fusion_bn_relu_kernel(%arg0: memref<192x32xf32, #tpu.memory_space<vmem>>, %arg1: memref<16x32xf32, #tpu.memory_space<vmem>>, %arg2: memref<192x192xf32, #tpu.memory_space<vmem>>, %arg3: memref<192x16xf32, #tpu.memory_space<vmem>>, %arg4: memref<192x1xf32, #tpu.memory_space<vmem>>, %arg5: memref<192x1xf32, #tpu.memory_space<vmem>>, %arg6: memref<192x32xf32, #tpu.memory_space<vmem>>) attributes {dimension_semantics = [], scalar_prefetch = 0 : i64, scratch_operands = 0 : i64, tpu.core_type = #tpu.core_type<tc>} {
    %c0 = arith.constant 0 : index
    %c0_0 = arith.constant 0 : index
    %0 = vector.load %arg2[%c0, %c0_0] : memref<192x192xf32, #tpu.memory_space<vmem>>, vector<192x192xf32>
    %c0_1 = arith.constant 0 : index
    %c0_2 = arith.constant 0 : index
    %1 = vector.load %arg0[%c0_1, %c0_2] : memref<192x32xf32, #tpu.memory_space<vmem>>, vector<192x32xf32>
    %cst = arith.constant dense<0.000000e+00> : vector<192x32xf32>
    %2 = tpu.matmul %0, %1, %cst {dimension_numbers = #tpu.dot_dimension_numbers<[1], [0], [0], [1], [0, 0, 1, 1], [], []>} : vector<192x192xf32>, vector<192x32xf32>, vector<192x32xf32> -> vector<192x32xf32>
    %c0_3 = arith.constant 0 : index
    %c0_4 = arith.constant 0 : index
    %3 = vector.load %arg3[%c0_3, %c0_4] : memref<192x16xf32, #tpu.memory_space<vmem>>, vector<192x16xf32>
    %c0_5 = arith.constant 0 : index
    %c0_6 = arith.constant 0 : index
    %4 = vector.load %arg1[%c0_5, %c0_6] : memref<16x32xf32, #tpu.memory_space<vmem>>, vector<16x32xf32>
    %cst_7 = arith.constant dense<0.000000e+00> : vector<192x32xf32>
    %5 = tpu.matmul %3, %4, %cst_7 {dimension_numbers = #tpu.dot_dimension_numbers<[1], [0], [0], [1], [0, 0, 1, 1], [], []>} : vector<192x16xf32>, vector<16x32xf32>, vector<192x32xf32> -> vector<192x32xf32>
    %6 = arith.addf %2, %5 : vector<192x32xf32>
    %c0_8 = arith.constant 0 : index
    %c0_9 = arith.constant 0 : index
    %7 = vector.load %arg4[%c0_8, %c0_9] : memref<192x1xf32, #tpu.memory_space<vmem>>, vector<192x1xf32>
    %8 = vector.broadcast %7 : vector<192x1xf32> to vector<192x32xf32>
    %9 = arith.mulf %6, %8 : vector<192x32xf32>
    %c0_10 = arith.constant 0 : index
    %c0_11 = arith.constant 0 : index
    %10 = vector.load %arg5[%c0_10, %c0_11] : memref<192x1xf32, #tpu.memory_space<vmem>>, vector<192x1xf32>
    %11 = vector.broadcast %10 : vector<192x1xf32> to vector<192x32xf32>
    %12 = arith.addf %9, %11 : vector<192x32xf32>
    %cst_12 = arith.constant 0.000000e+00 : f32
    %13 = vector.broadcast %cst_12 : f32 to vector<192x32xf32>
    %14 = arith.maximumf %12, %13 : vector<192x32xf32>
    %c0_13 = arith.constant 0 : index
    %c0_14 = arith.constant 0 : index
    %15 = vector.load %arg6[%c0_13, %c0_14] : memref<192x32xf32, #tpu.memory_space<vmem>>, vector<192x32xf32>
    tpu.vector_store %arg6[%c0_13, %c0_14], %14 {strides = array<i32>} : memref<192x32xf32, #tpu.memory_space<vmem>>, vector<192x32xf32>,
    return
  }
}

module attributes {stable_mosaic.version = 11 : i64} {
  func.func @_conv1x1_bn_relu_kernel(%arg0: memref<3x128xf32, #tpu.memory_space<vmem>>, %arg1: memref<4x3xf32, #tpu.memory_space<vmem>>, %arg2: memref<4x1xf32, #tpu.memory_space<vmem>>, %arg3: memref<4x1xf32, #tpu.memory_space<vmem>>, %arg4: memref<4x128xf32, #tpu.memory_space<vmem>>) attributes {dimension_semantics = [], scalar_prefetch = 0 : i64, scratch_operands = 0 : i64, tpu.core_type = #tpu.core_type<tc>} {
    %c0 = arith.constant 0 : index
    %c0_0 = arith.constant 0 : index
    %0 = vector.load %arg1[%c0, %c0_0] : memref<4x3xf32, #tpu.memory_space<vmem>>, vector<4x3xf32>
    %c0_1 = arith.constant 0 : index
    %c0_2 = arith.constant 0 : index
    %1 = vector.load %arg0[%c0_1, %c0_2] : memref<3x128xf32, #tpu.memory_space<vmem>>, vector<3x128xf32>
    %cst = arith.constant dense<0.000000e+00> : vector<4x128xf32>
    %2 = tpu.matmul %0, %1, %cst {dimension_numbers = #tpu.dot_dimension_numbers<[1], [0], [0], [1], [0, 0, 1, 1], [], []>} : vector<4x3xf32>, vector<3x128xf32>, vector<4x128xf32> -> vector<4x128xf32>
    %c0_3 = arith.constant 0 : index
    %c0_4 = arith.constant 0 : index
    %3 = vector.load %arg2[%c0_3, %c0_4] : memref<4x1xf32, #tpu.memory_space<vmem>>, vector<4x1xf32>
    %4 = vector.broadcast %3 : vector<4x1xf32> to vector<4x128xf32>
    %5 = arith.mulf %2, %4 : vector<4x128xf32>
    %c0_5 = arith.constant 0 : index
    %c0_6 = arith.constant 0 : index
    %6 = vector.load %arg3[%c0_5, %c0_6] : memref<4x1xf32, #tpu.memory_space<vmem>>, vector<4x1xf32>
    %7 = vector.broadcast %6 : vector<4x1xf32> to vector<4x128xf32>
    %8 = arith.addf %5, %7 : vector<4x128xf32>
    %cst_7 = arith.constant 0.000000e+00 : f32
    %9 = vector.broadcast %cst_7 : f32 to vector<4x128xf32>
    %10 = arith.maximumf %8, %9 : vector<4x128xf32>
    %c0_8 = arith.constant 0 : index
    %c0_9 = arith.constant 0 : index
    %11 = vector.load %arg4[%c0_8, %c0_9] : memref<4x128xf32, #tpu.memory_space<vmem>>, vector<4x128xf32>
    tpu.vector_store %arg4[%c0_8, %c0_9], %10 {strides = array<i32>} : memref<4x128xf32, #tpu.memory_space<vmem>>, vector<4x128xf32>,
    return
  }
}

module attributes {stable_mosaic.version = 11 : i64} {
  func.func @_conv1x1_bn_relu_kernel(%arg0: memref<8x128xf32, #tpu.memory_space<vmem>>, %arg1: memref<8x8xf32, #tpu.memory_space<vmem>>, %arg2: memref<8x1xf32, #tpu.memory_space<vmem>>, %arg3: memref<8x1xf32, #tpu.memory_space<vmem>>, %arg4: memref<8x128xf32, #tpu.memory_space<vmem>>) attributes {dimension_semantics = [], scalar_prefetch = 0 : i64, scratch_operands = 0 : i64, tpu.core_type = #tpu.core_type<tc>} {
    %c0 = arith.constant 0 : index
    %c0_0 = arith.constant 0 : index
    %0 = vector.load %arg1[%c0, %c0_0] : memref<8x8xf32, #tpu.memory_space<vmem>>, vector<8x8xf32>
    %c0_1 = arith.constant 0 : index
    %c0_2 = arith.constant 0 : index
    %1 = vector.load %arg0[%c0_1, %c0_2] : memref<8x128xf32, #tpu.memory_space<vmem>>, vector<8x128xf32>
    %cst = arith.constant dense<0.000000e+00> : vector<8x128xf32>
    %2 = tpu.matmul %0, %1, %cst {dimension_numbers = #tpu.dot_dimension_numbers<[1], [0], [0], [1], [0, 0, 1, 1], [], []>} : vector<8x8xf32>, vector<8x128xf32>, vector<8x128xf32> -> vector<8x128xf32>
    %c0_3 = arith.constant 0 : index
    %c0_4 = arith.constant 0 : index
    %3 = vector.load %arg2[%c0_3, %c0_4] : memref<8x1xf32, #tpu.memory_space<vmem>>, vector<8x1xf32>
    %4 = vector.broadcast %3 : vector<8x1xf32> to vector<8x128xf32>
    %5 = arith.mulf %2, %4 : vector<8x128xf32>
    %c0_5 = arith.constant 0 : index
    %c0_6 = arith.constant 0 : index
    %6 = vector.load %arg3[%c0_5, %c0_6] : memref<8x1xf32, #tpu.memory_space<vmem>>, vector<8x1xf32>
    %7 = vector.broadcast %6 : vector<8x1xf32> to vector<8x128xf32>
    %8 = arith.addf %5, %7 : vector<8x128xf32>
    %cst_7 = arith.constant 0.000000e+00 : f32
    %9 = vector.broadcast %cst_7 : f32 to vector<8x128xf32>
    %10 = arith.maximumf %8, %9 : vector<8x128xf32>
    %c0_8 = arith.constant 0 : index
    %c0_9 = arith.constant 0 : index
    %11 = vector.load %arg4[%c0_8, %c0_9] : memref<8x128xf32, #tpu.memory_space<vmem>>, vector<8x128xf32>
    tpu.vector_store %arg4[%c0_8, %c0_9], %10 {strides = array<i32>} : memref<8x128xf32, #tpu.memory_space<vmem>>, vector<8x128xf32>,
    return
  }
}

module attributes {stable_mosaic.version = 11 : i64} {
  func.func @_conv1x1_bn_relu_kernel(%arg0: memref<4x128xf32, #tpu.memory_space<vmem>>, %arg1: memref<16x4xf32, #tpu.memory_space<vmem>>, %arg2: memref<16x1xf32, #tpu.memory_space<vmem>>, %arg3: memref<16x1xf32, #tpu.memory_space<vmem>>, %arg4: memref<16x128xf32, #tpu.memory_space<vmem>>) attributes {dimension_semantics = [], scalar_prefetch = 0 : i64, scratch_operands = 0 : i64, tpu.core_type = #tpu.core_type<tc>} {
    %c0 = arith.constant 0 : index
    %c0_0 = arith.constant 0 : index
    %0 = vector.load %arg1[%c0, %c0_0] : memref<16x4xf32, #tpu.memory_space<vmem>>, vector<16x4xf32>
    %c0_1 = arith.constant 0 : index
    %c0_2 = arith.constant 0 : index
    %1 = vector.load %arg0[%c0_1, %c0_2] : memref<4x128xf32, #tpu.memory_space<vmem>>, vector<4x128xf32>
    %cst = arith.constant dense<0.000000e+00> : vector<16x128xf32>
    %2 = tpu.matmul %0, %1, %cst {dimension_numbers = #tpu.dot_dimension_numbers<[1], [0], [0], [1], [0, 0, 1, 1], [], []>} : vector<16x4xf32>, vector<4x128xf32>, vector<16x128xf32> -> vector<16x128xf32>
    %c0_3 = arith.constant 0 : index
    %c0_4 = arith.constant 0 : index
    %3 = vector.load %arg2[%c0_3, %c0_4] : memref<16x1xf32, #tpu.memory_space<vmem>>, vector<16x1xf32>
    %4 = vector.broadcast %3 : vector<16x1xf32> to vector<16x128xf32>
    %5 = arith.mulf %2, %4 : vector<16x128xf32>
    %c0_5 = arith.constant 0 : index
    %c0_6 = arith.constant 0 : index
    %6 = vector.load %arg3[%c0_5, %c0_6] : memref<16x1xf32, #tpu.memory_space<vmem>>, vector<16x1xf32>
    %7 = vector.broadcast %6 : vector<16x1xf32> to vector<16x128xf32>
    %8 = arith.addf %5, %7 : vector<16x128xf32>
    %cst_7 = arith.constant 0.000000e+00 : f32
    %9 = vector.broadcast %cst_7 : f32 to vector<16x128xf32>
    %10 = arith.maximumf %8, %9 : vector<16x128xf32>
    %c0_8 = arith.constant 0 : index
    %c0_9 = arith.constant 0 : index
    %11 = vector.load %arg4[%c0_8, %c0_9] : memref<16x128xf32, #tpu.memory_space<vmem>>, vector<16x128xf32>
    tpu.vector_store %arg4[%c0_8, %c0_9], %10 {strides = array<i32>} : memref<16x128xf32, #tpu.memory_space<vmem>>, vector<16x128xf32>,
    return
  }
}

module attributes {stable_mosaic.version = 11 : i64} {
  func.func @_fusion_bn_relu_kernel(%arg0: memref<96x128xf32, #tpu.memory_space<vmem>>, %arg1: memref<16x128xf32, #tpu.memory_space<vmem>>, %arg2: memref<96x96xf32, #tpu.memory_space<vmem>>, %arg3: memref<96x16xf32, #tpu.memory_space<vmem>>, %arg4: memref<96x1xf32, #tpu.memory_space<vmem>>, %arg5: memref<96x1xf32, #tpu.memory_space<vmem>>, %arg6: memref<96x128xf32, #tpu.memory_space<vmem>>) attributes {dimension_semantics = [], scalar_prefetch = 0 : i64, scratch_operands = 0 : i64, tpu.core_type = #tpu.core_type<tc>} {
    %c0 = arith.constant 0 : index
    %c0_0 = arith.constant 0 : index
    %0 = vector.load %arg2[%c0, %c0_0] : memref<96x96xf32, #tpu.memory_space<vmem>>, vector<96x96xf32>
    %c0_1 = arith.constant 0 : index
    %c0_2 = arith.constant 0 : index
    %1 = vector.load %arg0[%c0_1, %c0_2] : memref<96x128xf32, #tpu.memory_space<vmem>>, vector<96x128xf32>
    %cst = arith.constant dense<0.000000e+00> : vector<96x128xf32>
    %2 = tpu.matmul %0, %1, %cst {dimension_numbers = #tpu.dot_dimension_numbers<[1], [0], [0], [1], [0, 0, 1, 1], [], []>} : vector<96x96xf32>, vector<96x128xf32>, vector<96x128xf32> -> vector<96x128xf32>
    %c0_3 = arith.constant 0 : index
    %c0_4 = arith.constant 0 : index
    %3 = vector.load %arg3[%c0_3, %c0_4] : memref<96x16xf32, #tpu.memory_space<vmem>>, vector<96x16xf32>
    %c0_5 = arith.constant 0 : index
    %c0_6 = arith.constant 0 : index
    %4 = vector.load %arg1[%c0_5, %c0_6] : memref<16x128xf32, #tpu.memory_space<vmem>>, vector<16x128xf32>
    %cst_7 = arith.constant dense<0.000000e+00> : vector<96x128xf32>
    %5 = tpu.matmul %3, %4, %cst_7 {dimension_numbers = #tpu.dot_dimension_numbers<[1], [0], [0], [1], [0, 0, 1, 1], [], []>} : vector<96x16xf32>, vector<16x128xf32>, vector<96x128xf32> -> vector<96x128xf32>
    %6 = arith.addf %2, %5 : vector<96x128xf32>
    %c0_8 = arith.constant 0 : index
    %c0_9 = arith.constant 0 : index
    %7 = vector.load %arg4[%c0_8, %c0_9] : memref<96x1xf32, #tpu.memory_space<vmem>>, vector<96x1xf32>
    %8 = vector.broadcast %7 : vector<96x1xf32> to vector<96x128xf32>
    %9 = arith.mulf %6, %8 : vector<96x128xf32>
    %c0_10 = arith.constant 0 : index
    %c0_11 = arith.constant 0 : index
    %10 = vector.load %arg5[%c0_10, %c0_11] : memref<96x1xf32, #tpu.memory_space<vmem>>, vector<96x1xf32>
    %11 = vector.broadcast %10 : vector<96x1xf32> to vector<96x128xf32>
    %12 = arith.addf %9, %11 : vector<96x128xf32>
    %cst_12 = arith.constant 0.000000e+00 : f32
    %13 = vector.broadcast %cst_12 : f32 to vector<96x128xf32>
    %14 = arith.maximumf %12, %13 : vector<96x128xf32>
    %c0_13 = arith.constant 0 : index
    %c0_14 = arith.constant 0 : index
    %15 = vector.load %arg6[%c0_13, %c0_14] : memref<96x128xf32, #tpu.memory_space<vmem>>, vector<96x128xf32>
    tpu.vector_store %arg6[%c0_13, %c0_14], %14 {strides = array<i32>} : memref<96x128xf32, #tpu.memory_space<vmem>>, vector<96x128xf32>,
    return
  }
}

module attributes {stable_mosaic.version = 11 : i64} {
  func.func @_conv1x1_bn_relu_kernel(%arg0: memref<3x512xf32, #tpu.memory_space<vmem>>, %arg1: memref<4x3xf32, #tpu.memory_space<vmem>>, %arg2: memref<4x1xf32, #tpu.memory_space<vmem>>, %arg3: memref<4x1xf32, #tpu.memory_space<vmem>>, %arg4: memref<4x512xf32, #tpu.memory_space<vmem>>) attributes {dimension_semantics = [], scalar_prefetch = 0 : i64, scratch_operands = 0 : i64, tpu.core_type = #tpu.core_type<tc>} {
    %c0 = arith.constant 0 : index
    %c0_0 = arith.constant 0 : index
    %0 = vector.load %arg1[%c0, %c0_0] : memref<4x3xf32, #tpu.memory_space<vmem>>, vector<4x3xf32>
    %c0_1 = arith.constant 0 : index
    %c0_2 = arith.constant 0 : index
    %1 = vector.load %arg0[%c0_1, %c0_2] : memref<3x512xf32, #tpu.memory_space<vmem>>, vector<3x512xf32>
    %cst = arith.constant dense<0.000000e+00> : vector<4x512xf32>
    %2 = tpu.matmul %0, %1, %cst {dimension_numbers = #tpu.dot_dimension_numbers<[1], [0], [0], [1], [0, 0, 1, 1], [], []>} : vector<4x3xf32>, vector<3x512xf32>, vector<4x512xf32> -> vector<4x512xf32>
    %c0_3 = arith.constant 0 : index
    %c0_4 = arith.constant 0 : index
    %3 = vector.load %arg2[%c0_3, %c0_4] : memref<4x1xf32, #tpu.memory_space<vmem>>, vector<4x1xf32>
    %4 = vector.broadcast %3 : vector<4x1xf32> to vector<4x512xf32>
    %5 = arith.mulf %2, %4 : vector<4x512xf32>
    %c0_5 = arith.constant 0 : index
    %c0_6 = arith.constant 0 : index
    %6 = vector.load %arg3[%c0_5, %c0_6] : memref<4x1xf32, #tpu.memory_space<vmem>>, vector<4x1xf32>
    %7 = vector.broadcast %6 : vector<4x1xf32> to vector<4x512xf32>
    %8 = arith.addf %5, %7 : vector<4x512xf32>
    %cst_7 = arith.constant 0.000000e+00 : f32
    %9 = vector.broadcast %cst_7 : f32 to vector<4x512xf32>
    %10 = arith.maximumf %8, %9 : vector<4x512xf32>
    %c0_8 = arith.constant 0 : index
    %c0_9 = arith.constant 0 : index
    %11 = vector.load %arg4[%c0_8, %c0_9] : memref<4x512xf32, #tpu.memory_space<vmem>>, vector<4x512xf32>
    tpu.vector_store %arg4[%c0_8, %c0_9], %10 {strides = array<i32>} : memref<4x512xf32, #tpu.memory_space<vmem>>, vector<4x512xf32>,
    return
  }
}

module attributes {stable_mosaic.version = 11 : i64} {
  func.func @_conv1x1_bn_relu_kernel(%arg0: memref<8x512xf32, #tpu.memory_space<vmem>>, %arg1: memref<8x8xf32, #tpu.memory_space<vmem>>, %arg2: memref<8x1xf32, #tpu.memory_space<vmem>>, %arg3: memref<8x1xf32, #tpu.memory_space<vmem>>, %arg4: memref<8x512xf32, #tpu.memory_space<vmem>>) attributes {dimension_semantics = [], scalar_prefetch = 0 : i64, scratch_operands = 0 : i64, tpu.core_type = #tpu.core_type<tc>} {
    %c0 = arith.constant 0 : index
    %c0_0 = arith.constant 0 : index
    %0 = vector.load %arg1[%c0, %c0_0] : memref<8x8xf32, #tpu.memory_space<vmem>>, vector<8x8xf32>
    %c0_1 = arith.constant 0 : index
    %c0_2 = arith.constant 0 : index
    %1 = vector.load %arg0[%c0_1, %c0_2] : memref<8x512xf32, #tpu.memory_space<vmem>>, vector<8x512xf32>
    %cst = arith.constant dense<0.000000e+00> : vector<8x512xf32>
    %2 = tpu.matmul %0, %1, %cst {dimension_numbers = #tpu.dot_dimension_numbers<[1], [0], [0], [1], [0, 0, 1, 1], [], []>} : vector<8x8xf32>, vector<8x512xf32>, vector<8x512xf32> -> vector<8x512xf32>
    %c0_3 = arith.constant 0 : index
    %c0_4 = arith.constant 0 : index
    %3 = vector.load %arg2[%c0_3, %c0_4] : memref<8x1xf32, #tpu.memory_space<vmem>>, vector<8x1xf32>
    %4 = vector.broadcast %3 : vector<8x1xf32> to vector<8x512xf32>
    %5 = arith.mulf %2, %4 : vector<8x512xf32>
    %c0_5 = arith.constant 0 : index
    %c0_6 = arith.constant 0 : index
    %6 = vector.load %arg3[%c0_5, %c0_6] : memref<8x1xf32, #tpu.memory_space<vmem>>, vector<8x1xf32>
    %7 = vector.broadcast %6 : vector<8x1xf32> to vector<8x512xf32>
    %8 = arith.addf %5, %7 : vector<8x512xf32>
    %cst_7 = arith.constant 0.000000e+00 : f32
    %9 = vector.broadcast %cst_7 : f32 to vector<8x512xf32>
    %10 = arith.maximumf %8, %9 : vector<8x512xf32>
    %c0_8 = arith.constant 0 : index
    %c0_9 = arith.constant 0 : index
    %11 = vector.load %arg4[%c0_8, %c0_9] : memref<8x512xf32, #tpu.memory_space<vmem>>, vector<8x512xf32>
    tpu.vector_store %arg4[%c0_8, %c0_9], %10 {strides = array<i32>} : memref<8x512xf32, #tpu.memory_space<vmem>>, vector<8x512xf32>,
    return
  }
}

module attributes {stable_mosaic.version = 11 : i64} {
  func.func @_conv1x1_bn_relu_kernel(%arg0: memref<4x512xf32, #tpu.memory_space<vmem>>, %arg1: memref<16x4xf32, #tpu.memory_space<vmem>>, %arg2: memref<16x1xf32, #tpu.memory_space<vmem>>, %arg3: memref<16x1xf32, #tpu.memory_space<vmem>>, %arg4: memref<16x512xf32, #tpu.memory_space<vmem>>) attributes {dimension_semantics = [], scalar_prefetch = 0 : i64, scratch_operands = 0 : i64, tpu.core_type = #tpu.core_type<tc>} {
    %c0 = arith.constant 0 : index
    %c0_0 = arith.constant 0 : index
    %0 = vector.load %arg1[%c0, %c0_0] : memref<16x4xf32, #tpu.memory_space<vmem>>, vector<16x4xf32>
    %c0_1 = arith.constant 0 : index
    %c0_2 = arith.constant 0 : index
    %1 = vector.load %arg0[%c0_1, %c0_2] : memref<4x512xf32, #tpu.memory_space<vmem>>, vector<4x512xf32>
    %cst = arith.constant dense<0.000000e+00> : vector<16x512xf32>
    %2 = tpu.matmul %0, %1, %cst {dimension_numbers = #tpu.dot_dimension_numbers<[1], [0], [0], [1], [0, 0, 1, 1], [], []>} : vector<16x4xf32>, vector<4x512xf32>, vector<16x512xf32> -> vector<16x512xf32>
    %c0_3 = arith.constant 0 : index
    %c0_4 = arith.constant 0 : index
    %3 = vector.load %arg2[%c0_3, %c0_4] : memref<16x1xf32, #tpu.memory_space<vmem>>, vector<16x1xf32>
    %4 = vector.broadcast %3 : vector<16x1xf32> to vector<16x512xf32>
    %5 = arith.mulf %2, %4 : vector<16x512xf32>
    %c0_5 = arith.constant 0 : index
    %c0_6 = arith.constant 0 : index
    %6 = vector.load %arg3[%c0_5, %c0_6] : memref<16x1xf32, #tpu.memory_space<vmem>>, vector<16x1xf32>
    %7 = vector.broadcast %6 : vector<16x1xf32> to vector<16x512xf32>
    %8 = arith.addf %5, %7 : vector<16x512xf32>
    %cst_7 = arith.constant 0.000000e+00 : f32
    %9 = vector.broadcast %cst_7 : f32 to vector<16x512xf32>
    %10 = arith.maximumf %8, %9 : vector<16x512xf32>
    %c0_8 = arith.constant 0 : index
    %c0_9 = arith.constant 0 : index
    %11 = vector.load %arg4[%c0_8, %c0_9] : memref<16x512xf32, #tpu.memory_space<vmem>>, vector<16x512xf32>
    tpu.vector_store %arg4[%c0_8, %c0_9], %10 {strides = array<i32>} : memref<16x512xf32, #tpu.memory_space<vmem>>, vector<16x512xf32>,
    return
  }
}

module attributes {stable_mosaic.version = 11 : i64} {
  func.func @_fusion_bn_relu_kernel(%arg0: memref<48x512xf32, #tpu.memory_space<vmem>>, %arg1: memref<16x512xf32, #tpu.memory_space<vmem>>, %arg2: memref<48x48xf32, #tpu.memory_space<vmem>>, %arg3: memref<48x16xf32, #tpu.memory_space<vmem>>, %arg4: memref<48x1xf32, #tpu.memory_space<vmem>>, %arg5: memref<48x1xf32, #tpu.memory_space<vmem>>, %arg6: memref<48x512xf32, #tpu.memory_space<vmem>>) attributes {dimension_semantics = [], scalar_prefetch = 0 : i64, scratch_operands = 0 : i64, tpu.core_type = #tpu.core_type<tc>} {
    %c0 = arith.constant 0 : index
    %c0_0 = arith.constant 0 : index
    %0 = vector.load %arg2[%c0, %c0_0] : memref<48x48xf32, #tpu.memory_space<vmem>>, vector<48x48xf32>
    %c0_1 = arith.constant 0 : index
    %c0_2 = arith.constant 0 : index
    %1 = vector.load %arg0[%c0_1, %c0_2] : memref<48x512xf32, #tpu.memory_space<vmem>>, vector<48x512xf32>
    %cst = arith.constant dense<0.000000e+00> : vector<48x512xf32>
    %2 = tpu.matmul %0, %1, %cst {dimension_numbers = #tpu.dot_dimension_numbers<[1], [0], [0], [1], [0, 0, 1, 1], [], []>} : vector<48x48xf32>, vector<48x512xf32>, vector<48x512xf32> -> vector<48x512xf32>
    %c0_3 = arith.constant 0 : index
    %c0_4 = arith.constant 0 : index
    %3 = vector.load %arg3[%c0_3, %c0_4] : memref<48x16xf32, #tpu.memory_space<vmem>>, vector<48x16xf32>
    %c0_5 = arith.constant 0 : index
    %c0_6 = arith.constant 0 : index
    %4 = vector.load %arg1[%c0_5, %c0_6] : memref<16x512xf32, #tpu.memory_space<vmem>>, vector<16x512xf32>
    %cst_7 = arith.constant dense<0.000000e+00> : vector<48x512xf32>
    %5 = tpu.matmul %3, %4, %cst_7 {dimension_numbers = #tpu.dot_dimension_numbers<[1], [0], [0], [1], [0, 0, 1, 1], [], []>} : vector<48x16xf32>, vector<16x512xf32>, vector<48x512xf32> -> vector<48x512xf32>
    %6 = arith.addf %2, %5 : vector<48x512xf32>
    %c0_8 = arith.constant 0 : index
    %c0_9 = arith.constant 0 : index
    %7 = vector.load %arg4[%c0_8, %c0_9] : memref<48x1xf32, #tpu.memory_space<vmem>>, vector<48x1xf32>
    %8 = vector.broadcast %7 : vector<48x1xf32> to vector<48x512xf32>
    %9 = arith.mulf %6, %8 : vector<48x512xf32>
    %c0_10 = arith.constant 0 : index
    %c0_11 = arith.constant 0 : index
    %10 = vector.load %arg5[%c0_10, %c0_11] : memref<48x1xf32, #tpu.memory_space<vmem>>, vector<48x1xf32>
    %11 = vector.broadcast %10 : vector<48x1xf32> to vector<48x512xf32>
    %12 = arith.addf %9, %11 : vector<48x512xf32>
    %cst_12 = arith.constant 0.000000e+00 : f32
    %13 = vector.broadcast %cst_12 : f32 to vector<48x512xf32>
    %14 = arith.maximumf %12, %13 : vector<48x512xf32>
    %c0_13 = arith.constant 0 : index
    %c0_14 = arith.constant 0 : index
    %15 = vector.load %arg6[%c0_13, %c0_14] : memref<48x512xf32, #tpu.memory_space<vmem>>, vector<48x512xf32>
    tpu.vector_store %arg6[%c0_13, %c0_14], %14 {strides = array<i32>} : memref<48x512xf32, #tpu.memory_space<vmem>>, vector<48x512xf32>,
    return
  }
}

</mosaic_0001>

<bundles_post_ra>
// kernel: your_network_forward.28
= control target key start
LH: loop header
LB: loop body
LE: loop exit
PB: predicated region body
PF: predicated region fallthrough
CT: control target
= control target key end

     0   :  { %vm23_vm0 = vcmask 1042432   ;;  %vm19_vm1 = vcmask 23552   ;;  %v72_v0 = vmov 0   ;;  %vm62_vm2 = vcmask 60416   ;;  %s113_s2 = inlined_call_operand.vmem [shape: f32[4,1], index: 2, kind: input, shape index: {}]   ;;  %s114_s0 = inlined_call_operand.vmem [shape: f32[3,8], index: 0, kind: input, shape index: {}]   ;;  %s115_s1 = inlined_call_operand.vmem [shape: f32[4,3], index: 1, kind: input, shape index: {}]   ;;  %s116_s3 = inlined_call_operand.vmem [shape: f32[4,1], index: 3, kind: input, shape index: {}]   ;;  %s117_s4 = inlined_call_operand.vmem [shape: f32[4,8], index: 4, kind: output, shape index: {}]  }
   0x1   :  { %71 = vset.pattern.permute.xlu0 %v72_v0  ;;  %v47_v1 = vld [vmem:[%s113_s2] sm:$0xf] }
   0x2   :  { %v18_v2 = vld [vmem:[%s114_s0] sm:$0x7]  ;;  %50 = vperm.xlu0 %71, %v47_v1  }
   0x3   :  { %v17_v3 = vld [vmem:[%s115_s1] sm:$0xf]  ;;  %68 = vmatpush.msk.msra.mxu0 %vm23_vm0, %v18_v2 }
   0x4   :  { %69 = vmatmul.msk.f32.vlgmr.msra.gmra.mxu0 %vm19_vm1, %v17_v3  ;;  %v54_v4 = vld [vmem:[%s116_s3] sm:$0xf] }
   0xa   :  { %57 = vperm.xlu0 %71, %v54_v4  }
  0x74   :  { %v51_v5 = vpop.permute.xlu0 %50 }
  0x7c   :  { %v58_v8 = vpop.permute.xlu0 %57 }
  0x81   :  { %v44_v6 = vpop.f32.mrf.mxu0 }
  0x82   :  { %v53_v7 = vmul.f32 %v51_v5, %v44_v6 }
  0x84   :  { %v60_v9 = vadd.f32 %v58_v8, %v53_v7 }
  0x86   :  { %v61_v10 = vmax.f32 %v60_v9, 0.0 }
  0x88   :  { %63 = vst.msk [vmem:[%s117_s4] sm:$0xf] %vm62_vm2, %v61_v10 }

// kernel: your_network_forward.29
= control target key start
LH: loop header
LB: loop body
LE: loop exit
PB: predicated region body
PF: predicated region fallthrough
CT: control target
= control target key end

     0   :  { %vm19_vm0 = vcmask 64512   ;;  %v66_v0 = vmov 0   ;;  %s109_s2 = inlined_call_operand.vmem [shape: f32[8,1], index: 2, kind: input, shape index: {}]   ;;  %s110_s0 = inlined_call_operand.vmem [shape: f32[8,8], index: 0, kind: input, shape index: {}]   ;;  %s111_s1 = inlined_call_operand.vmem [shape: f32[8,8], index: 1, kind: input, shape index: {}]   ;;  %s112_s3 = inlined_call_operand.vmem [shape: f32[8,1], index: 3, kind: input, shape index: {}]   ;;  %s113_s4 = inlined_call_operand.vmem [shape: f32[8,8], index: 4, kind: output, shape index: {}]  }
   0x1   :  { %65 = vset.pattern.permute.xlu0 %v66_v0  ;;  %v43_v1 = vld [vmem:[%s109_s2] sm:$0xff] }
   0x2   :  { %v18_v2 = vld [vmem:[%s110_s0] sm:$0xff]  ;;  %46 = vperm.xlu0 %65, %v43_v1  }
   0x3   :  { %v17_v3 = vld [vmem:[%s111_s1] sm:$0xff]  ;;  %38 = vmatpush.msra.mxu0 %v18_v2 }
   0x4   :  { %63 = vmatmul.msk.f32.vlgmr.msra.gmra.mxu0 %vm19_vm0, %v17_v3  ;;  %v50_v4 = vld [vmem:[%s112_s3] sm:$0xff] }
   0xa   :  { %53 = vperm.xlu0 %65, %v50_v4  }
  0x74   :  { %v47_v5 = vpop.permute.xlu0 %46 }
  0x7c   :  { %v54_v8 = vpop.permute.xlu0 %53 }
  0x81   :  { %v40_v6 = vpop.f32.mrf.mxu0 }
  0x82   :  { %v49_v7 = vmul.f32 %v47_v5, %v40_v6 }
  0x84   :  { %v56_v9 = vadd.f32 %v54_v8, %v49_v7 }
  0x86   :  { %v57_v10 = vmax.f32 %v56_v9, 0.0 }
  0x88   :  { %58 = vst.msk [vmem:[%s113_s4] sm:$0xff] %vm19_vm0, %v57_v10 }

// kernel: your_network_forward.30
= control target key start
LH: loop header
LB: loop body
LE: loop exit
PB: predicated region body
PF: predicated region fallthrough
CT: control target
= control target key end

     0   :  { %vm27_vm0 = vcmask 1043456   ;;  %v98_v0 = vmov 0   ;;  %vm20_vm1 = vcmask 31744   ;;  %vm84_vm2 = vcmask 64512   ;;  %s151_s3 = inlined_call_operand.vmem [shape: f32[16,1], index: 3, kind: input, shape index: {}]   ;;  %s152_s2 = inlined_call_operand.vmem [shape: f32[16,1], index: 2, kind: input, shape index: {}]   ;;  %s153_s0 = inlined_call_operand.vmem [shape: f32[4,8], index: 0, kind: input, shape index: {}]   ;;  %s154_s1 = inlined_call_operand.vmem [shape: f32[16,4], index: 1, kind: input, shape index: {}]   ;;  %s155_s4 = inlined_call_operand.vmem [shape: f32[16,8], index: 4, kind: output, shape index: {}]  }
   0x1   :  { %97 = vset.pattern.permute.xlu1 %v98_v0  ;;  %96 = vset.pattern.permute.xlu0 %v98_v0  ;;  %v68_v1 = vld [vmem:[%s151_s3] sm:$0xff]  ;;  %v18_v5 = vld [vmem:[%s154_s1 + $0x8] sm:$0xff] }
   0x2   :  { %v54_v2 = vld [vmem:[%s152_s2] sm:$0xff]  ;;  %72 = vperm.xlu1 %97, %v68_v1   ;;  %v69_v6 = vld [vmem:[%s151_s3 + $0x8] sm:$0xff] }
   0x3   :  { %v19_v3 = vld [vmem:[%s153_s0] sm:$0xf]  ;;  %58 = vperm.xlu0 %96, %v54_v2   ;;  %v55_v7 = vld [vmem:[%s152_s2 + $0x8] sm:$0xff] }
   0x4   :  { %v17_v4 = vld [vmem:[%s154_s1] sm:$0xff]  ;;  %91 = vmatpush.msk.msra.mxu0 %vm27_vm0, %v19_v3  ;;  %94 = vmatpush.msk.msra.mxu1 %vm27_vm0, %v19_v3 }
   0x5   :  { %92 = vmatmul.msk.f32.vlgmr.msra.gmra.mxu0 %vm20_vm1, %v17_v4  ;;  %93 = vmatmul.msk.f32.vlgmr.msra.gmra.mxu1 %vm20_vm1, %v18_v5 }
   0xa   :  { %77 = vperm.xlu1 %97, %v69_v6  }
   0xb   :  { %63 = vperm.xlu0 %96, %v55_v7  }
  0x74   :  { %v73_v9 = vpop.permute.xlu1 %72 }
  0x75   :  { %v59_v8 = vpop.permute.xlu0 %58 }
  0x7c   :  { %v78_v15 = vpop.permute.xlu1 %77 }
  0x7d   :  { %v64_v10 = vpop.permute.xlu0 %63 }
  0x82   :  { %v48_v11 = vpop.f32.mrf.mxu0  ;;  %v51_v12 = vpop.f32.mrf.mxu1 }
  0x83   :  { %v66_v13 = vmul.f32 %v59_v8, %v48_v11  ;;  %v67_v14 = vmul.f32 %v64_v10, %v51_v12 }
  0x85   :  { %v80_v16 = vadd.f32 %v73_v9, %v66_v13  ;;  %v81_v17 = vadd.f32 %v78_v15, %v67_v14 }
  0x87   :  { %v82_v18 = vmax.f32 %v80_v16, 0.0  ;;  %v83_v19 = vmax.f32 %v81_v17, 0.0 }
  0x89   :  { %85 = vst.msk [vmem:[%s155_s4] sm:$0xff] %vm84_vm2, %v82_v18 }
  0x8a   :  { %86 = vst.msk [vmem:[%s155_s4 + $0x8] sm:$0xff] %vm84_vm2, %v83_v19 }

// kernel: your_network_forward.24
= control target key start
LH: loop header
LB: loop body
LE: loop exit
PB: predicated region body
PF: predicated region fallthrough
CT: control target
= control target key end

     0   :  { %vm23_vm0 = vcmask 1042432   ;;  %vm19_vm1 = vcmask 23552   ;;  %v72_v0 = vmov 0   ;;  %vm62_vm2 = vcmask 257024   ;;  %s113_s2 = inlined_call_operand.vmem [shape: f32[4,1], index: 2, kind: input, shape index: {}]   ;;  %s114_s0 = inlined_call_operand.vmem [shape: f32[3,32], index: 0, kind: input, shape index: {}]   ;;  %s115_s1 = inlined_call_operand.vmem [shape: f32[4,3], index: 1, kind: input, shape index: {}]   ;;  %s116_s3 = inlined_call_operand.vmem [shape: f32[4,1], index: 3, kind: input, shape index: {}]   ;;  %s117_s4 = inlined_call_operand.vmem [shape: f32[4,32], index: 4, kind: output, shape index: {}]  }
   0x1   :  { %71 = vset.pattern.permute.xlu0 %v72_v0  ;;  %v47_v1 = vld [vmem:[%s113_s2] sm:$0xf] }
   0x2   :  { %v18_v2 = vld [vmem:[%s114_s0] sm:$0x7]  ;;  %50 = vperm.xlu0 %71, %v47_v1  }
   0x3   :  { %v17_v3 = vld [vmem:[%s115_s1] sm:$0xf]  ;;  %68 = vmatpush.msk.msra.mxu0 %vm23_vm0, %v18_v2 }
   0x4   :  { %69 = vmatmul.msk.f32.vlgmr.msra.gmra.mxu0 %vm19_vm1, %v17_v3  ;;  %v54_v4 = vld [vmem:[%s116_s3] sm:$0xf] }
   0xa   :  { %57 = vperm.xlu0 %71, %v54_v4  }
  0x74   :  { %v51_v5 = vpop.permute.xlu0 %50 }
  0x7c   :  { %v58_v8 = vpop.permute.xlu0 %57 }
  0x81   :  { %v44_v6 = vpop.f32.mrf.mxu0 }
  0x82   :  { %v53_v7 = vmul.f32 %v51_v5, %v44_v6 }
  0x84   :  { %v60_v9 = vadd.f32 %v58_v8, %v53_v7 }
  0x86   :  { %v61_v10 = vmax.f32 %v60_v9, 0.0 }
  0x88   :  { %63 = vst.msk [vmem:[%s117_s4] sm:$0xf] %vm62_vm2, %v61_v10 }

// kernel: your_network_forward.31
= control target key start
LH: loop header
LB: loop body
LE: loop exit
PB: predicated region body
PF: predicated region fallthrough
CT: control target
= control target key end

     0   :  { %v1879_v0 = vmov 0   ;;  %vm265_vm0 = vcmask 130048   ;;  %vm1774_vm1 = vcmask 64512   ;;  %s3403_s4 = inlined_call_operand.vmem [shape: f32[384,1], index: 4, kind: input, shape index: {}]   ;;  %s3404_s0 = inlined_call_operand.vmem [shape: f32[384,8], index: 0, kind: input, shape index: {}]   ;;  %s3405_s1 = inlined_call_operand.vmem [shape: f32[16,8], index: 1, kind: input, shape index: {}]   ;;  %s3406_s3 = inlined_call_operand.vmem [shape: f32[384,16], index: 3, kind: input, shape index: {}]   ;;  %s3407_s2 = inlined_call_operand.vmem [shape: f32[384,384], index: 2, kind: input, shape index: {}]   ;;  %s3408_s5 = inlined_call_operand.vmem [shape: f32[384,1], index: 5, kind: input, shape index: {}]   ;;  %s3409_s6 = inlined_call_operand.vmem [shape: f32[384,8], index: 6, kind: output, shape index: {}]  }
   0x1   :  { %1878 = vset.pattern.permute.xlu2 %v1879_v0  ;;  %1877 = vset.pattern.permute.xlu1 %v1879_v0  ;;  %v1058_v1 = vld [vmem:[%s3403_s4 + $0x20] sm:$0xff]  ;;  %v1056_v2 = vld [vmem:[%s3403_s4 + $0x10] sm:$0xff]  ;;  %v198_v4 = vld [vmem:[%s3404_s0 + $0xf8] sm:$0xff] }
   0x2   :  { %v1054_v3 = vld [vmem:[%s3403_s4] sm:$0xff]  ;;  %1876 = vset.pattern.permute.xlu0 %v1879_v0  ;;  %1124 = vperm.xlu2 %1878, %v1058_v1   ;;  %v214_v5 = vld [vmem:[%s3404_s0 + $0x178] sm:$0xff]  ;;  %v197_v6 = vld [vmem:[%s3404_s0 + $0xf0] sm:$0xff] }
   0x3   :  { %1114 = vperm.xlu1 %1877, %v1056_v2   ;;  %1104 = vperm.xlu0 %1876, %v1054_v3   ;;  %v182_v7 = vld [vmem:[%s3404_s0 + $0x78] sm:$0xff]  ;;  %v213_v8 = vld [vmem:[%s3404_s0 + $0x170] sm:$0xff]  ;;  %v196_v10 = vld [vmem:[%s3404_s0 + $0xe8] sm:$0xff] }
   0x4   :  { %732 = vmatpush.msra.mxu2 %v198_v4  ;;  %893 = vmatpush.msra.mxu3 %v214_v5  ;;  %v181_v9 = vld [vmem:[%s3404_s0 + $0x70] sm:$0xff]  ;;  %v212_v11 = vld [vmem:[%s3404_s0 + $0x168] sm:$0xff]  ;;  %v195_v13 = vld [vmem:[%s3404_s0 + $0xe0] sm:$0xff] }
   0x5   :  { %571 = vmatpush.msra.mxu1 %v182_v7  ;;  %v180_v12 = vld [vmem:[%s3404_s0 + $0x68] sm:$0xff]  ;;  %v1057_v15 = vld [vmem:[%s3403_s4 + $0x18] sm:$0xff]  ;;  %v211_v18 = vld [vmem:[%s3404_s0 + $0x160] sm:$0xff] }
   0x6   :  { %733 = vmatpush.msra.mxu2 %v197_v6  ;;  %894 = vmatpush.msra.mxu3 %v213_v8  ;;  %v1059_v14 = vld [vmem:[%s3403_s4 + $0x28] sm:$0xff]  ;;  %v194_v17 = vld [vmem:[%s3404_s0 + $0xd8] sm:$0xff]  ;;  %v179_v19 = vld [vmem:[%s3404_s0 + $0x60] sm:$0xff] }
   0x7   :  { %572 = vmatpush.msra.mxu1 %v181_v9  ;;  %v1055_v16 = vld [vmem:[%s3403_s4 + $0x8] sm:$0xff]  ;;  %v193_v20 = vld [vmem:[%s3404_s0 + $0xd0] sm:$0xff]  ;;  %v210_v21 = vld [vmem:[%s3404_s0 + $0x158] sm:$0xff] }
   0x8   :  { %734 = vmatpush.msra.mxu2 %v196_v10  ;;  %895 = vmatpush.msra.mxu3 %v212_v11  ;;  %v178_v22 = vld [vmem:[%s3404_s0 + $0x58] sm:$0xff]  ;;  %v192_v23 = vld [vmem:[%s3404_s0 + $0xc8] sm:$0xff]  ;;  %v209_v24 = vld [vmem:[%s3404_s0 + $0x150] sm:$0xff] }
   0x9   :  { %573 = vmatpush.msra.mxu1 %v180_v12  ;;  %v177_v25 = vld [vmem:[%s3404_s0 + $0x50] sm:$0xff]  ;;  %v191_v26 = vld [vmem:[%s3404_s0 + $0xc0] sm:$0xff]  ;;  %v208_v27 = vld [vmem:[%s3404_s0 + $0x148] sm:$0xff] }
   0xa   :  { %735 = vmatpush.msra.mxu2 %v195_v13  ;;  %1129 = vperm.xlu2 %1878, %v1059_v14   ;;  %v1062_v28 = vld [vmem:[%s3403_s4 + $0x40] sm:$0xff]  ;;  %v1061_v29 = vld [vmem:[%s3403_s4 + $0x38] sm:$0xff]  ;;  %v1060_v30 = vld [vmem:[%s3403_s4 + $0x30] sm:$0xff] }
   0xb   :  { %1119 = vperm.xlu1 %1877, %v1057_v15   ;;  %1109 = vperm.xlu0 %1876, %v1055_v16   ;;  %v176_v31 = vld [vmem:[%s3404_s0 + $0x48] sm:$0xff]  ;;  %v190_v32 = vld [vmem:[%s3404_s0 + $0xb8] sm:$0xff]  ;;  %v207_v33 = vld [vmem:[%s3404_s0 + $0x140] sm:$0xff] }
   0xc   :  { %736 = vmatpush.msra.mxu2 %v194_v17  ;;  %896 = vmatpush.msra.mxu3 %v211_v18  ;;  %v175_v34 = vld [vmem:[%s3404_s0 + $0x40] sm:$0xff]  ;;  %v189_v35 = vld [vmem:[%s3404_s0 + $0xb0] sm:$0xff]  ;;  %v206_v36 = vld [vmem:[%s3404_s0 + $0x138] sm:$0xff] }
   0xd   :  { %574 = vmatpush.msra.mxu1 %v179_v19  ;;  %v174_v37 = vld [vmem:[%s3404_s0 + $0x38] sm:$0xff]  ;;  %v264_v38 = vld [vmem:[%s3405_s1 + $0x8] sm:$0xff]  ;;  %v205_v40 = vld [vmem:[%s3404_s0 + $0x130] sm:$0xff] }
   0xe   :  { %737 = vmatpush.msra.mxu2 %v193_v20  ;;  %897 = vmatpush.msra.mxu3 %v210_v21  ;;  %v188_v39 = vld [vmem:[%s3404_s0 + $0xa8] sm:$0xff]  ;;  %v263_v41 = vld [vmem:[%s3405_s1] sm:$0xff]  ;;  %v173_v42 = vld [vmem:[%s3404_s0 + $0x30] sm:$0xff] }
   0xf   :  { %575 = vmatpush.msra.mxu1 %v178_v22  ;;  %424 = vmatpush.msra.mxu0 %v264_v38  ;;  %v215_v43 = vld [vmem:[%s3406_s3] sm:$0xff]  ;;  %v204_v45 = vld [vmem:[%s3404_s0 + $0x128] sm:$0xff]  ;;  %v1065_v46 = vld [vmem:[%s3403_s4 + $0x58] sm:$0xff] }
  0x10   :  { %738 = vmatpush.msra.mxu2 %v192_v23  ;;  %898 = vmatpush.msra.mxu3 %v209_v24  ;;  %v187_v44 = vld [vmem:[%s3404_s0 + $0xa0] sm:$0xff]  ;;  %v1064_v47 = vld [vmem:[%s3403_s4 + $0x50] sm:$0xff]  ;;  %v1063_v48 = vld [vmem:[%s3403_s4 + $0x48] sm:$0xff] }
  0x11   :  { %576 = vmatpush.msra.mxu1 %v177_v25  ;;  %425 = vmatpush.msra.mxu0 %v263_v41  ;;  %v172_v49 = vld [vmem:[%s3404_s0 + $0x28] sm:$0xff]  ;;  %v186_v50 = vld [vmem:[%s3404_s0 + $0x98] sm:$0xff]  ;;  %v203_v51 = vld [vmem:[%s3404_s0 + $0x120] sm:$0xff] }
  0x12   :  { %739 = vmatpush.msra.mxu2 %v191_v26  ;;  %899 = vmatpush.msra.mxu3 %v208_v27  ;;  %v171_v52 = vld [vmem:[%s3404_s0 + $0x20] sm:$0xff]  ;;  %v185_v53 = vld [vmem:[%s3404_s0 + $0x90] sm:$0xff]  ;;  %v202_v54 = vld [vmem:[%s3404_s0 + $0x118] sm:$0xff] }
  0x13   :  { %1144 = vperm.xlu2 %1878, %v1062_v28   ;;  %1139 = vperm.xlu1 %1877, %v1061_v29   ;;  %v170_v55 = vld [vmem:[%s3404_s0 + $0x18] sm:$0xff]  ;;  %v184_v56 = vld [vmem:[%s3404_s0 + $0x88] sm:$0xff]  ;;  %v201_v57 = vld [vmem:[%s3404_s0 + $0x110] sm:$0xff] }
  0x14   :  { %1134 = vperm.xlu0 %1876, %v1060_v30   ;;  %577 = vmatpush.msra.mxu1 %v176_v31  ;;  %v169_v58 = vld [vmem:[%s3404_s0 + $0x10] sm:$0xff]  ;;  %v216_v59 = vld [vmem:[%s3406_s3 + $0x8] sm:$0xff]  ;;  %v183_v60 = vld [vmem:[%s3404_s0 + $0x80] sm:$0xff] }
  0x15   :  { %740 = vmatpush.msra.mxu2 %v190_v32  ;;  %900 = vmatpush.msra.mxu3 %v207_v33  ;;  %v200_v61 = vld [vmem:[%s3404_s0 + $0x108] sm:$0xff]  ;;  %v1068_v63 = vld [vmem:[%s3403_s4 + $0x70] sm:$0xff]  ;;  %v1066_v1 = vld [vmem:[%s3403_s4 + $0x60] sm:$0xff] }
  0x16   :  { %578 = vmatpush.msra.mxu1 %v175_v34  ;;  %1827 = vmatmul.msk.f32.vlgmr.msra.gmra.mxu0 %vm265_vm0, %v215_v43  ;;  %v24_v62 = vld [vmem:[%s3407_s2 + $0x8] sm:$0xff]  ;;  %v199_v3 = vld [vmem:[%s3404_s0 + $0x100] sm:$0xff]  ;;  %v25_v4 = vld [vmem:[%s3407_s2 + $0x10] sm:$0xff] }
  0x17   :  { %741 = vmatpush.msra.mxu2 %v189_v35  ;;  %901 = vmatpush.msra.mxu3 %v206_v36  ;;  %v1067_v0 = vld [vmem:[%s3403_s4 + $0x68] sm:$0xff]  ;;  %v167_v5 = vld [vmem:[%s3404_s0] sm:$0xff]  ;;  %v217_v7 = vld [vmem:[%s3406_s3 + $0x10] sm:$0xff] }
  0x18   :  { %579 = vmatpush.msra.mxu1 %v174_v37  ;;  %v168_v2 = vld [vmem:[%s3404_s0 + $0x8] sm:$0xff]  ;;  %v23_v6 = vld [vmem:[%s3407_s2] sm:$0xff]  ;;  %v1069_v11 = vld [vmem:[%s3403_s4 + $0x78] sm:$0xff] }
  0x19   :  { %742 = vmatpush.msra.mxu2 %v188_v39  ;;  %902 = vmatpush.msra.mxu3 %v205_v40  ;;  %v27_v8 = vld [vmem:[%s3407_s2 + $0x20] sm:$0xff]  ;;  %v1071_v9 = vld [vmem:[%s3403_s4 + $0x88] sm:$0xff]  ;;  %v26_v13 = vld [vmem:[%s3407_s2 + $0x18] sm:$0xff] }
  0x1a   :  { %580 = vmatpush.msra.mxu1 %v173_v42  ;;  %v1070_v10 = vld [vmem:[%s3403_s4 + $0x80] sm:$0xff]  ;;  %v28_v12 = vld [vmem:[%s3407_s2 + $0x28] sm:$0xff]  ;;  %v218_v14 = vld [vmem:[%s3406_s3 + $0x18] sm:$0xff] }
  0x1b   :  { %743 = vmatpush.msra.mxu2 %v187_v44  ;;  %903 = vmatpush.msra.mxu3 %v204_v45  ;;  %v30_v15 = vld [vmem:[%s3407_s2 + $0x38] sm:$0xff]  ;;  %v1074_v16 = vld [vmem:[%s3403_s4 + $0xa0] sm:$0xff]  ;;  %v1072_v18 = vld [vmem:[%s3403_s4 + $0x90] sm:$0xff] }
  0x1c   :  { %1159 = vperm.xlu2 %1878, %v1065_v46   ;;  %1154 = vperm.xlu1 %1877, %v1064_v47   ;;  %v1073_v17 = vld [vmem:[%s3403_s4 + $0x98] sm:$0xff]  ;;  %v31_v19 = vld [vmem:[%s3407_s2 + $0x40] sm:$0xff]  ;;  %v29_v20 = vld [vmem:[%s3407_s2 + $0x30] sm:$0xff] }
  0x1d   :  { %1149 = vperm.xlu0 %1876, %v1063_v48   ;;  %581 = vmatpush.msra.mxu1 %v172_v49  ;;  %v219_v21 = vld [vmem:[%s3406_s3 + $0x20] sm:$0xff]  ;;  %v33_v22 = vld [vmem:[%s3407_s2 + $0x50] sm:$0xff]  ;;  %v1077_v23 = vld [vmem:[%s3403_s4 + $0xb8] sm:$0xff] }
  0x1e   :  { %744 = vmatpush.msra.mxu2 %v186_v50  ;;  %904 = vmatpush.msra.mxu3 %v203_v51  ;;  %v1076_v24 = vld [vmem:[%s3403_s4 + $0xb0] sm:$0xff]  ;;  %v1075_v25 = vld [vmem:[%s3403_s4 + $0xa8] sm:$0xff]  ;;  %v34_v26 = vld [vmem:[%s3407_s2 + $0x58] sm:$0xff] }
  0x1f   :  { %582 = vmatpush.msra.mxu1 %v171_v52  ;;  %1828 = vmatmul.msk.f32.gmra.mxu0 %vm265_vm0, %v216_v59  ;;  %v32_v27 = vld [vmem:[%s3407_s2 + $0x48] sm:$0xff]  ;;  %v1080_v30 = vld [vmem:[%s3403_s4 + $0xd0] sm:$0xff]  ;;  %v1078_v32 = vld [vmem:[%s3403_s4 + $0xc0] sm:$0xff] }
  0x20   :  { %745 = vmatpush.msra.mxu2 %v185_v53  ;;  %905 = vmatpush.msra.mxu3 %v202_v54  ;;  %v220_v28 = vld [vmem:[%s3406_s3 + $0x28] sm:$0xff]  ;;  %v37_v33 = vld [vmem:[%s3407_s2 + $0x70] sm:$0xff]  ;;  %v35_v34 = vld [vmem:[%s3407_s2 + $0x60] sm:$0xff] }
  0x21   :  { %583 = vmatpush.msra.mxu1 %v170_v55  ;;  %v36_v29 = vld [vmem:[%s3407_s2 + $0x68] sm:$0xff]  ;;  %v221_v35 = vld [vmem:[%s3406_s3 + $0x30] sm:$0xff]  ;;  %v39_v36 = vld [vmem:[%s3407_s2 + $0x80] sm:$0xff] }
  0x22   :  { %746 = vmatpush.msra.mxu2 %v184_v56  ;;  %906 = vmatpush.msra.mxu3 %v201_v57  ;;  %v1079_v31 = vld [vmem:[%s3403_s4 + $0xc8] sm:$0xff]  ;;  %v1082_v38 = vld [vmem:[%s3403_s4 + $0xe0] sm:$0xff]  ;;  %v1081_v39 = vld [vmem:[%s3403_s4 + $0xd8] sm:$0xff] }
  0x23   :  { %584 = vmatpush.msra.mxu1 %v169_v58  ;;  %v1083_v37 = vld [vmem:[%s3403_s4 + $0xe8] sm:$0xff]  ;;  %v38_v41 = vld [vmem:[%s3407_s2 + $0x78] sm:$0xff]  ;;  %v1086_v44 = vld [vmem:[%s3403_s4 + $0x100] sm:$0xff] }
  0x24   :  { %747 = vmatpush.msra.mxu2 %v183_v60  ;;  %907 = vmatpush.msra.mxu3 %v200_v61  ;;  %v40_v40 = vld [vmem:[%s3407_s2 + $0x88] sm:$0xff]  ;;  %v222_v42 = vld [vmem:[%s3406_s3 + $0x38] sm:$0xff]  ;;  %v1084_v46 = vld [vmem:[%s3403_s4 + $0xf0] sm:$0xff] }
  0x25   :  { %748 = vmatmul.f32.vlgmr.msra.gmra.mxu2 %v24_v62  ;;  %1174 = vperm.xlu2 %1878, %v1068_v63   ;;  %v42_v43 = vld [vmem:[%s3407_s2 + $0x98] sm:$0xff]  ;;  %v43_v47 = vld [vmem:[%s3407_s2 + $0xa0] sm:$0xff]  ;;  %v41_v48 = vld [vmem:[%s3407_s2 + $0x90] sm:$0xff] }
  0x26   :  { %1169 = vperm.xlu1 %1877, %v1067_v0   ;;  %1164 = vperm.xlu0 %1876, %v1066_v1   ;;  %v1085_v45 = vld [vmem:[%s3403_s4 + $0xf8] sm:$0xff]  ;;  %v223_v49 = vld [vmem:[%s3406_s3 + $0x40] sm:$0xff]  ;;  %v45_v50 = vld [vmem:[%s3407_s2 + $0xb0] sm:$0xff] }
  0x27   :  { %585 = vmatpush.msra.mxu1 %v168_v2  ;;  %908 = vmatpush.msra.mxu3 %v199_v3  ;;  %v1089_v51 = vld [vmem:[%s3403_s4 + $0x118] sm:$0xff]  ;;  %v1088_v52 = vld [vmem:[%s3403_s4 + $0x110] sm:$0xff]  ;;  %v1087_v53 = vld [vmem:[%s3403_s4 + $0x108] sm:$0xff] }
  0x28   :  { %909 = vmatmul.f32.vlgmr.msra.gmra.mxu3 %v25_v4  ;;  %1829 = vmatmul.msk.f32.gmra.mxu0 %vm265_vm0, %v217_v7  ;;  %v46_v55 = vld [vmem:[%s3407_s2 + $0xb8] sm:$0xff]  ;;  %v44_v56 = vld [vmem:[%s3407_s2 + $0xa8] sm:$0xff]  ;;  %v1092_v59 = vld [vmem:[%s3403_s4 + $0x130] sm:$0xff] }
  0x29   :  { %586 = vmatpush.msra.mxu1 %v167_v5  ;;  %v224_v57 = vld [vmem:[%s3406_s3 + $0x48] sm:$0xff]  ;;  %v1090_v61 = vld [vmem:[%s3403_s4 + $0x120] sm:$0xff]  ;;  %v49_v63 = vld [vmem:[%s3407_s2 + $0xd0] sm:$0xff] }
  0x2a   :  { %587 = vmatmul.f32.vlgmr.msra.gmra.mxu1 %v23_v6  ;;  %v48_v58 = vld [vmem:[%s3407_s2 + $0xc8] sm:$0xff]  ;;  %v47_v0 = vld [vmem:[%s3407_s2 + $0xc0] sm:$0xff]  ;;  %v225_v1 = vld [vmem:[%s3406_s3 + $0x50] sm:$0xff] }
  0x2b   :  { %v1091_v60 = vld [vmem:[%s3403_s4 + $0x128] sm:$0xff]  ;;  %v51_v2 = vld [vmem:[%s3407_s2 + $0xe0] sm:$0xff]  ;;  %v1093_v5 = vld [vmem:[%s3403_s4 + $0x138] sm:$0xff] }
  0x2c   :  { %v1095_v3 = vld [vmem:[%s3403_s4 + $0x148] sm:$0xff]  ;;  %v1094_v4 = vld [vmem:[%s3403_s4 + $0x140] sm:$0xff] }
  0x2d   :  { %751 = vmatmul.f32.gmra.mxu2 %v27_v8  ;;  %1189 = vperm.xlu2 %1878, %v1071_v9   ;;  %v52_v6 = vld [vmem:[%s3407_s2 + $0xe8] sm:$0xff]  ;;  %v50_v8 = vld [vmem:[%s3407_s2 + $0xd8] sm:$0xff] }
  0x2e   :  { %1184 = vperm.xlu1 %1877, %v1070_v10   ;;  %1179 = vperm.xlu0 %1876, %v1069_v11   ;;  %v226_v9 = vld [vmem:[%s3406_s3 + $0x58] sm:$0xff]  ;;  %v1098_v11 = vld [vmem:[%s3403_s4 + $0x160] sm:$0xff] }
  0x2f   :  { %v54_v10 = vld [vmem:[%s3407_s2 + $0xf8] sm:$0xff] }
  0x30   :  { %912 = vmatmul.f32.gmra.mxu3 %v28_v12  ;;  %1830 = vmatmul.msk.f32.gmra.mxu0 %vm265_vm0, %v218_v14  ;;  %v1097_v12 = vld [vmem:[%s3403_s4 + $0x158] sm:$0xff]  ;;  %v55_v14 = vld [vmem:[%s3407_s2 + $0x100] sm:$0xff] }
  0x32   :  { %590 = vmatmul.f32.gmra.mxu1 %v26_v13  ;;  %v1096_v13 = vld [vmem:[%s3403_s4 + $0x150] sm:$0xff] }
  0x35   :  { %754 = vmatmul.f32.gmra.mxu2 %v30_v15  ;;  %1204 = vperm.xlu2 %1878, %v1074_v16  }
  0x36   :  { %1199 = vperm.xlu1 %1877, %v1073_v17   ;;  %1194 = vperm.xlu0 %1876, %v1072_v18   ;;  %v53_v18 = vld [vmem:[%s3407_s2 + $0xf0] sm:$0xff] }
  0x38   :  { %915 = vmatmul.f32.gmra.mxu3 %v31_v19  ;;  %1831 = vmatmul.msk.f32.gmra.mxu0 %vm265_vm0, %v219_v21  ;;  %v227_v19 = vld [vmem:[%s3406_s3 + $0x60] sm:$0xff]  ;;  %v1101_v21 = vld [vmem:[%s3403_s4 + $0x178] sm:$0xff] }
  0x3a   :  { %593 = vmatmul.f32.gmra.mxu1 %v29_v20  ;;  %v57_v20 = vld [vmem:[%s3407_s2 + $0x110] sm:$0xff] }
  0x3d   :  { %757 = vmatmul.f32.gmra.mxu2 %v33_v22  ;;  %1219 = vperm.xlu2 %1878, %v1077_v23   ;;  %v1100_v22 = vld [vmem:[%s3403_s4 + $0x170] sm:$0xff]  ;;  %v1099_v23 = vld [vmem:[%s3403_s4 + $0x168] sm:$0xff] }
  0x3e   :  { %1214 = vperm.xlu1 %1877, %v1076_v24   ;;  %1209 = vperm.xlu0 %1876, %v1075_v25   ;;  %v58_v24 = vld [vmem:[%s3407_s2 + $0x118] sm:$0xff] }
  0x40   :  { %918 = vmatmul.f32.gmra.mxu3 %v34_v26  ;;  %1832 = vmatmul.msk.f32.gmra.mxu0 %vm265_vm0, %v220_v28  ;;  %v56_v28 = vld [vmem:[%s3407_s2 + $0x108] sm:$0xff] }
  0x42   :  { %596 = vmatmul.f32.gmra.mxu1 %v32_v27 }
  0x45   :  { %760 = vmatmul.f32.gmra.mxu2 %v36_v29  ;;  %1234 = vperm.xlu2 %1878, %v1080_v30   ;;  %v228_v29 = vld [vmem:[%s3406_s3 + $0x68] sm:$0xff] }
  0x46   :  { %1229 = vperm.xlu1 %1877, %v1079_v31   ;;  %1224 = vperm.xlu0 %1876, %v1078_v32   ;;  %v60_v30 = vld [vmem:[%s3407_s2 + $0x128] sm:$0xff]  ;;  %v1392_v31 = vld [vmem:[%s3408_s5 + $0x10] sm:$0xff] }
  0x47   :  { %v1391_v32 = vld [vmem:[%s3408_s5 + $0x8] sm:$0xff] }
  0x48   :  { %921 = vmatmul.f32.gmra.mxu3 %v37_v33  ;;  %1833 = vmatmul.msk.f32.gmra.mxu0 %vm265_vm0, %v221_v35  ;;  %v1390_v33 = vld [vmem:[%s3408_s5] sm:$0xff] }
  0x4a   :  { %599 = vmatmul.f32.gmra.mxu1 %v35_v34  ;;  %v61_v34 = vld [vmem:[%s3407_s2 + $0x130] sm:$0xff] }
  0x4d   :  { %763 = vmatmul.f32.gmra.mxu2 %v39_v36  ;;  %1249 = vperm.xlu2 %1878, %v1083_v37  }
  0x4e   :  { %1244 = vperm.xlu1 %1877, %v1082_v38   ;;  %1239 = vperm.xlu0 %1876, %v1081_v39   ;;  %v59_v38 = vld [vmem:[%s3407_s2 + $0x120] sm:$0xff]  ;;  %v229_v39 = vld [vmem:[%s3406_s3 + $0x70] sm:$0xff] }
  0x50   :  { %924 = vmatmul.f32.gmra.mxu3 %v40_v40  ;;  %1834 = vmatmul.msk.f32.gmra.mxu0 %vm265_vm0, %v222_v42  ;;  %v63_v40 = vld [vmem:[%s3407_s2 + $0x140] sm:$0xff] }
  0x51   :  { %v1394_v42 = vld [vmem:[%s3408_s5 + $0x20] sm:$0xff] }
  0x52   :  { %602 = vmatmul.f32.gmra.mxu1 %v38_v41  ;;  %v1395_v41 = vld [vmem:[%s3408_s5 + $0x28] sm:$0xff] }
  0x55   :  { %766 = vmatmul.f32.gmra.mxu2 %v42_v43  ;;  %1264 = vperm.xlu2 %1878, %v1086_v44   ;;  %v1393_v43 = vld [vmem:[%s3408_s5 + $0x18] sm:$0xff]  ;;  %v64_v44 = vld [vmem:[%s3407_s2 + $0x148] sm:$0xff] }
  0x56   :  { %1259 = vperm.xlu1 %1877, %v1085_v45   ;;  %1254 = vperm.xlu0 %1876, %v1084_v46  }
  0x58   :  { %927 = vmatmul.f32.gmra.mxu3 %v43_v47  ;;  %1835 = vmatmul.msk.f32.gmra.mxu0 %vm265_vm0, %v223_v49  ;;  %v230_v49 = vld [vmem:[%s3406_s3 + $0x78] sm:$0xff] }
  0x5a   :  { %605 = vmatmul.f32.gmra.mxu1 %v41_v48  ;;  %v62_v48 = vld [vmem:[%s3407_s2 + $0x138] sm:$0xff] }
  0x5c   :  { %v2275_v54 = vpop.permute.xlu2 %1124 }
  0x5d   :  { %769 = vmatmul.f32.gmra.mxu2 %v45_v50  ;;  %1279 = vperm.xlu2 %1878, %v1089_v51   ;;  %v66_v50 = vld [vmem:[%s3407_s2 + $0x158] sm:$0xff]  ;;  %v1398_v51 = vld [vmem:[%s3408_s5 + $0x40] sm:$0xff] }
  0x5e   :  { %1274 = vperm.xlu1 %1877, %v1088_v52   ;;  %1269 = vperm.xlu0 %1876, %v1087_v53   ;;  %v1397_v52 = vld [vmem:[%s3408_s5 + $0x38] sm:$0xff]  ;;  %v1396_v53 = vld [vmem:[%s3408_s5 + $0x30] sm:$0xff] }
  0x60   :  { %930 = vmatmul.f32.gmra.mxu3 %v46_v55  ;;  %1836 = vmatmul.msk.f32.gmra.mxu0 %vm265_vm0, %v224_v57  ;;  %v67_v55 = vld [vmem:[%s3407_s2 + $0x160] sm:$0xff]  ;;  %v65_v57 = vld [vmem:[%s3407_s2 + $0x150] sm:$0xff] }
  0x62   :  { %608 = vmatmul.f32.gmra.mxu1 %v44_v56 }
  0x64   :  { %v2299_v62 = vpop.permute.xlu2 %1129 }
  0x65   :  { %772 = vmatmul.f32.gmra.mxu2 %v48_v58  ;;  %1294 = vperm.xlu2 %1878, %v1092_v59  }
  0x66   :  { %1289 = vperm.xlu1 %1877, %v1091_v60   ;;  %1284 = vperm.xlu0 %1876, %v1090_v61   ;;  %v231_v61 = vld [vmem:[%s3406_s3 + $0x80] sm:$0xff] }
  0x68   :  { %933 = vmatmul.f32.gmra.mxu3 %v49_v63  ;;  %1837 = vmatmul.msk.f32.gmra.mxu0 %vm265_vm0, %v225_v1  ;;  %v69_v63 = vld [vmem:[%s3407_s2 + $0x170] sm:$0xff] }
  0x69   :  { %v1400_v1 = vld [vmem:[%s3408_s5 + $0x50] sm:$0xff] }
  0x6a   :  { %611 = vmatmul.f32.gmra.mxu1 %v47_v0  ;;  %v1401_v0 = vld [vmem:[%s3408_s5 + $0x58] sm:$0xff] }
  0x6d   :  { %775 = vmatmul.f32.gmra.mxu2 %v51_v2  ;;  %1309 = vperm.xlu2 %1878, %v1095_v3   ;;  %v2326_v7 = vpop.permute.xlu2 %1144  ;;  %v1399_v2 = vld [vmem:[%s3408_s5 + $0x48] sm:$0xff]  ;;  %v70_v3 = vld [vmem:[%s3407_s2 + $0x178] sm:$0xff] }
  0x6e   :  { %1304 = vperm.xlu1 %1877, %v1094_v4   ;;  %1299 = vperm.xlu0 %1876, %v1093_v5   ;;  %v68_v5 = vld [vmem:[%s3407_s2 + $0x168] sm:$0xff] }
  0x70   :  { %936 = vmatmul.f32.gmra.mxu3 %v52_v6  ;;  %1838 = vmatmul.msk.f32.gmra.mxu0 %vm265_vm0, %v226_v9  ;;  %v232_v9 = vld [vmem:[%s3406_s3 + $0x88] sm:$0xff] }
  0x72   :  { %614 = vmatmul.f32.gmra.mxu1 %v50_v8 }
  0x75   :  { %778 = vmatmul.f32.gmra.mxu2 %v54_v10  ;;  %1324 = vperm.xlu2 %1878, %v1098_v11   ;;  %v2350_v15 = vpop.permute.xlu1 %1114  ;;  %v2352_v16 = vpop.permute.xlu0 %1104  ;;  %v72_v11 = vld [vmem:[%s3407_s2 + $0x188] sm:$0xff] }
  0x76   :  { %1319 = vperm.xlu1 %1877, %v1097_v12   ;;  %1314 = vperm.xlu0 %1876, %v1096_v13   ;;  %v2354_v17 = vpop.permute.xlu2 %1159  ;;  %v1404_v12 = vld [vmem:[%s3408_s5 + $0x70] sm:$0xff]  ;;  %v1403_v13 = vld [vmem:[%s3408_s5 + $0x68] sm:$0xff] }
  0x78   :  { %939 = vmatmul.f32.gmra.mxu3 %v55_v14  ;;  %1839 = vmatmul.msk.f32.gmra.mxu0 %vm265_vm0, %v227_v19  ;;  %v1402_v14 = vld [vmem:[%s3408_s5 + $0x60] sm:$0xff] }
  0x7a   :  { %617 = vmatmul.f32.gmra.mxu1 %v53_v18  ;;  %v73_v18 = vld [vmem:[%s3407_s2 + $0x190] sm:$0xff] }
  0x7d   :  { %781 = vmatmul.f32.gmra.mxu2 %v57_v20  ;;  %1339 = vperm.xlu2 %1878, %v1101_v21   ;;  %v2378_v25 = vpop.permute.xlu1 %1119  ;;  %v2380_v26 = vpop.permute.xlu0 %1109  ;;  %v71_v21 = vld [vmem:[%s3407_s2 + $0x180] sm:$0xff] }
  0x7e   :  { %1334 = vperm.xlu1 %1877, %v1100_v22   ;;  %1329 = vperm.xlu0 %1876, %v1099_v23  }
  0x7f   :  { %v2382_v27 = vpop.permute.xlu2 %1174 }
  0x80   :  { %942 = vmatmul.f32.gmra.mxu3 %v58_v24  ;;  %1840 = vmatmul.msk.f32.gmra.mxu0 %vm265_vm0, %v228_v29 }
  0x82   :  { %620 = vmatmul.f32.gmra.mxu1 %v56_v28  ;;  %v233_v28 = vld [vmem:[%s3406_s3 + $0x90] sm:$0xff] }
  0x85   :  { %784 = vmatmul.f32.gmra.mxu2 %v60_v30  ;;  %1450 = vperm.xlu2 %1878, %v1392_v31   ;;  %v2406_v35 = vpop.permute.xlu1 %1139 }
  0x86   :  { %1445 = vperm.xlu1 %1877, %v1391_v32   ;;  %1440 = vperm.xlu0 %1876, %v1390_v33   ;;  %v2408_v36 = vpop.permute.xlu0 %1134  ;;  %v75_v32 = vld [vmem:[%s3407_s2 + $0x1a0] sm:$0xff]  ;;  %v1407_v33 = vld [vmem:[%s3408_s5 + $0x88] sm:$0xff] }
  0x87   :  { %v2410_v37 = vpop.permute.xlu2 %1189 }
  0x88   :  { %945 = vmatmul.f32.gmra.mxu3 %v61_v34  ;;  %1841 = vmatmul.msk.f32.gmra.mxu0 %vm265_vm0, %v229_v39  ;;  %v1405_v39 = vld [vmem:[%s3408_s5 + $0x78] sm:$0xff] }
  0x8a   :  { %623 = vmatmul.f32.gmra.mxu1 %v59_v38  ;;  %v1406_v38 = vld [vmem:[%s3408_s5 + $0x80] sm:$0xff] }
  0x8d   :  { %787 = vmatmul.f32.gmra.mxu2 %v63_v40  ;;  %1465 = vperm.xlu2 %1878, %v1395_v41   ;;  %v76_v41 = vld [vmem:[%s3407_s2 + $0x1a8] sm:$0xff] }
  0x8e   :  { %1460 = vperm.xlu1 %1877, %v1394_v42   ;;  %1455 = vperm.xlu0 %1876, %v1393_v43   ;;  %v2434_v45 = vpop.permute.xlu1 %1154 }
  0x8f   :  { %v2436_v46 = vpop.permute.xlu2 %1204  ;;  %v2438_v47 = vpop.permute.xlu0 %1149 }
  0x90   :  { %948 = vmatmul.f32.gmra.mxu3 %v64_v44  ;;  %1842 = vmatmul.msk.f32.gmra.mxu0 %vm265_vm0, %v230_v49 }
  0x92   :  { %626 = vmatmul.f32.gmra.mxu1 %v62_v48  ;;  %v74_v48 = vld [vmem:[%s3407_s2 + $0x198] sm:$0xff] }
  0x93   :  { %v427_v58 = vpop.f32.mrf.mxu0 }
  0x95   :  { %790 = vmatmul.f32.gmra.mxu2 %v66_v50  ;;  %1480 = vperm.xlu2 %1878, %v1398_v51  }
  0x96   :  { %1475 = vperm.xlu1 %1877, %v1397_v52   ;;  %1470 = vperm.xlu0 %1876, %v1396_v53   ;;  %v234_v52 = vld [vmem:[%s3406_s3 + $0x98] sm:$0xff] }
  0x97   :  { %v2462_v56 = vpop.permute.xlu2 %1219 }
  0x98   :  { %951 = vmatmul.f32.gmra.mxu3 %v67_v55  ;;  %v2467_v59 = vpop.permute.xlu1 %1169  ;;  %v2469_v60 = vpop.permute.xlu0 %1164  ;;  %1843 = vmatmul.msk.f32.gmra.mxu0 %vm265_vm0, %v231_v61 }
  0x9a   :  { %629 = vmatmul.f32.gmra.mxu1 %v65_v57  ;;  %v78_v57 = vld [vmem:[%s3407_s2 + $0x1b8] sm:$0xff] }
  0x9c   :  { %v430_v10 = vpop.f32.mrf.mxu0 }
  0x9d   :  { %793 = vmatmul.f32.gmra.mxu2 %v69_v63  ;;  %1495 = vperm.xlu2 %1878, %v1401_v0   ;;  %v1409_v63 = vld [vmem:[%s3408_s5 + $0x98] sm:$0xff]  ;;  %v1408_v0 = vld [vmem:[%s3408_s5 + $0x90] sm:$0xff] }
  0x9e   :  { %1490 = vperm.xlu1 %1877, %v1400_v1   ;;  %1485 = vperm.xlu0 %1876, %v1399_v2   ;;  %v79_v2 = vld [vmem:[%s3407_s2 + $0x1c0] sm:$0xff] }
  0x9f   :  { %v2490_v4 = vpop.permute.xlu2 %1234 }
  0xa0   :  { %954 = vmatmul.f32.gmra.mxu3 %v70_v3  ;;  %v2495_v6 = vpop.permute.xlu1 %1184  ;;  %v2497_v8 = vpop.permute.xlu0 %1179  ;;  %1844 = vmatmul.msk.f32.gmra.mxu0 %vm265_vm0, %v232_v9 }
  0xa2   :  { %632 = vmatmul.f32.gmra.mxu1 %v68_v5 }
  0xa5   :  { %796 = vmatmul.f32.gmra.mxu2 %v72_v11  ;;  %1510 = vperm.xlu2 %1878, %v1404_v12   ;;  %v2530_v30 = vpop.f32.mrf.mxu0 }
  0xa6   :  { %1505 = vperm.xlu1 %1877, %v1403_v13   ;;  %1500 = vperm.xlu0 %1876, %v1402_v14   ;;  %v235_v13 = vld [vmem:[%s3406_s3 + $0xa0] sm:$0xff] }
  0xa7   :  { %v588_v19 = vpop.f32.mrf.mxu1  ;;  %v2518_v20 = vpop.permute.xlu2 %1249 }
  0xa8   :  { %v589_v22 = vadd.f32 %v588_v19, %v427_v58  ;;  %957 = vmatmul.f32.gmra.mxu3 %v73_v18  ;;  %v2523_v23 = vpop.permute.xlu1 %1199  ;;  %v2525_v24 = vpop.permute.xlu0 %1194  ;;  %1845 = vmatmul.msk.f32.gmra.mxu0 %vm265_vm0, %v233_v28  ;;  %v1410_v58 = vld [vmem:[%s3408_s5 + $0xa0] sm:$0xff]  ;;  %v81_v18 = vld [vmem:[%s3407_s2 + $0x1d0] sm:$0xff]  ;;  %v1413_v19 = vld [vmem:[%s3408_s5 + $0xb8] sm:$0xff] }
  0xa9   :  { %v749_v29 = vpop.f32.mrf.mxu2  ;;  %v1411_v28 = vld [vmem:[%s3408_s5 + $0xa8] sm:$0xff] }
  0xaa   :  { %v750_v31 = vadd.f32 %v749_v29, %v589_v22  ;;  %635 = vmatmul.f32.gmra.mxu1 %v71_v21  ;;  %v1412_v22 = vld [vmem:[%s3408_s5 + $0xb0] sm:$0xff]  ;;  %v82_v29 = vld [vmem:[%s3407_s2 + $0x1d8] sm:$0xff] }
  0xab   :  { %v910_v34 = vpop.f32.mrf.mxu3 }
  0xac   :  { %v911_v40 = vadd.f32 %v910_v34, %v750_v31 }
  0xad   :  { %799 = vmatmul.f32.gmra.mxu2 %v75_v32  ;;  %1525 = vperm.xlu2 %1878, %v1407_v33   ;;  %v80_v33 = vld [vmem:[%s3407_s2 + $0x1c8] sm:$0xff] }
  0xae   :  { %1520 = vperm.xlu1 %1877, %v1406_v38   ;;  %1515 = vperm.xlu0 %1876, %v1405_v39   ;;  %v2549_v42 = vmul.f32 %v2352_v16, %v911_v40  ;;  %v2563_v16 = vpop.f32.mrf.mxu0  ;;  %v236_v39 = vld [vmem:[%s3406_s3 + $0xa8] sm:$0xff] }
  0xaf   :  { %v591_v43 = vpop.f32.mrf.mxu1  ;;  %v2551_v44 = vpop.permute.xlu2 %1264 }
  0xb0   :  { %v592_v49 = vadd.f32 %v591_v43, %v430_v10  ;;  %960 = vmatmul.f32.gmra.mxu3 %v76_v41  ;;  %v2556_v50 = vpop.permute.xlu1 %1214  ;;  %v2558_v51 = vpop.permute.xlu0 %1209  ;;  %1846 = vmatmul.msk.f32.gmra.mxu0 %vm265_vm0, %v234_v52  ;;  %v77_v10 = vld [vmem:[%s3407_s2 + $0x1b0] sm:$0xff]  ;;  %v84_v43 = vld [vmem:[%s3407_s2 + $0x1e8] sm:$0xff] }
  0xb1   :  { %v752_v53 = vpop.f32.mrf.mxu2  ;;  %v1415_v52 = vld [vmem:[%s3408_s5 + $0xc8] sm:$0xff] }
  0xb2   :  { %v753_v55 = vadd.f32 %v752_v53, %v592_v49  ;;  %638 = vmatmul.f32.gmra.mxu1 %v74_v48  ;;  %v1416_v48 = vld [vmem:[%s3408_s5 + $0xd0] sm:$0xff]  ;;  %v1414_v53 = vld [vmem:[%s3408_s5 + $0xc0] sm:$0xff] }
  0xb3   :  { %v913_v61 = vpop.f32.mrf.mxu3 }
  0xb4   :  { %v914_v1 = vadd.f32 %v913_v61, %v753_v55  ;;  %v85_v55 = vld [vmem:[%s3407_s2 + $0x1f0] sm:$0xff]  ;;  %v83_v61 = vld [vmem:[%s3407_s2 + $0x1e0] sm:$0xff] }
  0xb5   :  { %802 = vmatmul.f32.gmra.mxu2 %v78_v57  ;;  %1540 = vperm.xlu2 %1878, %v1410_v58  }
  0xb6   :  { %1535 = vperm.xlu1 %1877, %v1409_v63   ;;  %1530 = vperm.xlu0 %1876, %v1408_v0   ;;  %v2582_v3 = vmul.f32 %v2380_v26, %v914_v1  ;;  %v2600_v26 = vpop.f32.mrf.mxu0  ;;  %v237_v1 = vld [vmem:[%s3406_s3 + $0xb0] sm:$0xff] }
  0xb7   :  { %v2584_v5 = vpop.f32.mrf.mxu1  ;;  %v2586_v9 = vpop.permute.xlu2 %1279 }
  0xb8   :  { %3410 = vst [vmem:[#allocation2_spill] sm:$0xff] %v2586_v9  ;;  %963 = vmatmul.f32.gmra.mxu3 %v79_v2  ;;  %v2591_v11 = vpop.permute.xlu1 %1229  ;;  %v2593_v12 = vpop.permute.xlu0 %1224  ;;  %1847 = vmatmul.msk.f32.gmra.mxu0 %vm265_vm0, %v235_v13  ;;  %v87_v13 = vld [vmem:[%s3407_s2 + $0x200] sm:$0xff]  ;;  %v92_v9 = vld [vmem:[%s3407_s2 + $0x228] sm:$0xff] }
  0xb9   :  { %v2598_v14 = vpop.f32.mrf.mxu2 }
  0xba   :  { %641 = vmatmul.f32.gmra.mxu1 %v77_v10 }
  0xbb   :  { %v2608_v21 = vpop.f32.mrf.mxu3 }
  0xbd   :  { %805 = vmatmul.f32.gmra.mxu2 %v81_v18  ;;  %1555 = vperm.xlu2 %1878, %v1413_v19   ;;  %v1419_v18 = vld [vmem:[%s3408_s5 + $0xe8] sm:$0xff] }
  0xbe   :  { %1550 = vperm.xlu1 %1877, %v1412_v22   ;;  %1545 = vperm.xlu0 %1876, %v1411_v28   ;;  %v2636_v41 = vpop.f32.mrf.mxu0  ;;  %v1418_v22 = vld [vmem:[%s3408_s5 + $0xe0] sm:$0xff]  ;;  %v1417_v28 = vld [vmem:[%s3408_s5 + $0xd8] sm:$0xff] }
  0xbf   :  { %v2620_v31 = vpop.f32.mrf.mxu1  ;;  %v2622_v32 = vpop.permute.xlu2 %1294 }
  0xc0   :  { %3411 = vst [vmem:[#allocation3_spill] sm:$0xff] %v2622_v32  ;;  %966 = vmatmul.f32.gmra.mxu3 %v82_v29  ;;  %v2627_v34 = vpop.permute.xlu1 %1244  ;;  %v2629_v38 = vpop.permute.xlu0 %1239  ;;  %1848 = vmatmul.msk.f32.gmra.mxu0 %vm265_vm0, %v236_v39  ;;  %v88_v29 = vld [vmem:[%s3407_s2 + $0x208] sm:$0xff] }
  0xc1   :  { %v2634_v40 = vpop.f32.mrf.mxu2 }
  0xc2   :  { %644 = vmatmul.f32.gmra.mxu1 %v80_v33 }
  0xc3   :  { %v2644_v49 = vpop.f32.mrf.mxu3 }
  0xc5   :  { %808 = vmatmul.f32.gmra.mxu2 %v84_v43  ;;  %1570 = vperm.xlu2 %1878, %v1416_v48   ;;  %v86_v43 = vld [vmem:[%s3407_s2 + $0x1f8] sm:$0xff] }
  0xc6   :  { %1565 = vperm.xlu1 %1877, %v1415_v52   ;;  %1560 = vperm.xlu0 %1876, %v1414_v53   ;;  %v2672_v10 = vpop.f32.mrf.mxu0  ;;  %v238_v53 = vld [vmem:[%s3406_s3 + $0xb8] sm:$0xff] }
  0xc7   :  { %v2656_v57 = vpop.f32.mrf.mxu1  ;;  %v2658_v58 = vpop.permute.xlu2 %1309 }
  0xc8   :  { %3412 = vst [vmem:[#allocation4_spill] sm:$0xff] %v2658_v58  ;;  %969 = vmatmul.f32.gmra.mxu3 %v85_v55  ;;  %v2663_v63 = vpop.permute.xlu1 %1259  ;;  %v2665_v0 = vpop.permute.xlu0 %1254  ;;  %1849 = vmatmul.msk.f32.gmra.mxu0 %vm265_vm0, %v237_v1  ;;  %v595_v1 = vadd.f32 %v2584_v5, %v2530_v30  ;;  %v91_v30 = vld [vmem:[%s3407_s2 + $0x220] sm:$0xff]  ;;  %v89_v58 = vld [vmem:[%s3407_s2 + $0x210] sm:$0xff] }
  0xc9   :  { %v2670_v2 = vpop.f32.mrf.mxu2 }
  0xca   :  { %647 = vmatmul.f32.gmra.mxu1 %v83_v61  ;;  %v756_v5 = vadd.f32 %v2598_v14, %v595_v1 }
  0xcb   :  { %v2680_v19 = vpop.f32.mrf.mxu3 }
  0xcd   :  { %811 = vmatmul.f32.gmra.mxu2 %v87_v13  ;;  %1585 = vperm.xlu2 %1878, %v1419_v18   ;;  %v90_v13 = vld [vmem:[%s3407_s2 + $0x218] sm:$0xff]  ;;  %v1422_v18 = vld [vmem:[%s3408_s5 + $0x100] sm:$0xff] }
  0xce   :  { %1580 = vperm.xlu1 %1877, %v1418_v22   ;;  %1575 = vperm.xlu0 %1876, %v1417_v28   ;;  %v2704_v61 = vpop.f32.mrf.mxu0  ;;  %v1421_v28 = vld [vmem:[%s3408_s5 + $0xf8] sm:$0xff] }
  0xcf   :  { %v603_v33 = vpop.f32.mrf.mxu1  ;;  %v2692_v39 = vpop.permute.xlu2 %1324 }
  0xd0   :  { %3413 = vst [vmem:[#allocation5_spill] sm:$0xff] %v2692_v39  ;;  %972 = vmatmul.f32.gmra.mxu3 %v88_v29  ;;  %v2697_v48 = vpop.permute.xlu1 %1274  ;;  %v2699_v52 = vpop.permute.xlu0 %1269  ;;  %v1420_v29 = vld [vmem:[%s3408_s5 + $0xf0] sm:$0xff]  ;;  %1850 = vmatmul.msk.f32.gmra.mxu0 %vm265_vm0, %v238_v53 }
  0xd1   :  { %3414 = vst [vmem:[#allocation6_spill] sm:$0xff] %v2697_v48  ;;  %v764_v55 = vpop.f32.mrf.mxu2 }
  0xd2   :  { %650 = vmatmul.f32.gmra.mxu1 %v86_v43 }
  0xd3   :  { %v925_v22 = vpop.f32.mrf.mxu3 }
  0xd5   :  { %814 = vmatmul.f32.gmra.mxu2 %v90_v13  ;;  %1600 = vperm.xlu2 %1878, %v1422_v18   ;;  %v239_v18 = vld [vmem:[%s3406_s3 + $0xc0] sm:$0xff] }
  0xd6   :  { %1595 = vperm.xlu1 %1877, %v1421_v28   ;;  %1590 = vperm.xlu0 %1876, %v1420_v29   ;;  %v451_v1 = vpop.f32.mrf.mxu0  ;;  %v917_v28 = vadd.f32 %v2608_v21, %v756_v5  ;;  %v604_v29 = vadd.f32 %v603_v33, %v2636_v41  ;;  %v1423_v21 = vld [vmem:[%s3408_s5 + $0x108] sm:$0xff]  ;;  %v94_v41 = vld [vmem:[%s3407_s2 + $0x238] sm:$0xff] }
  0xd7   :  { %v2725_v43 = vpop.f32.mrf.mxu1  ;;  %v2727_v39 = vpop.permute.xlu2 %1339 }
  0xd8   :  { %3415 = vst [vmem:[#allocation7_spill] sm:$0xff] %v2727_v39  ;;  %975 = vmatmul.f32.gmra.mxu3 %v91_v30  ;;  %v2732_v53 = vpop.permute.xlu1 %1289  ;;  %v2734_v13 = vpop.permute.xlu0 %1284  ;;  %v93_v30 = vld [vmem:[%s3407_s2 + $0x230] sm:$0xff]  ;;  %v1425_v39 = vld [vmem:[%s3408_s5 + $0x118] sm:$0xff]  ;;  %1851 = vmatmul.msk.f32.gmra.mxu0 %vm265_vm0, %v239_v18  ;;  %v1344_v33 = vmul.f32 %v2350_v15, %v917_v28 }
  0xd9   :  { %3416 = vst [vmem:[#allocation8_spill] sm:$0xff] %v2732_v53  ;;  %v2739_v14 = vpop.f32.mrf.mxu2  ;;  %v1424_v53 = vld [vmem:[%s3408_s5 + $0x110] sm:$0xff] }
  0xda   :  { %3417 = vst [vmem:[#allocation9_spill] sm:$0xff] %v2734_v13  ;;  %653 = vmatmul.f32.gmra.mxu1 %v89_v58  ;;  %v765_v58 = vadd.f32 %v764_v55, %v604_v29  ;;  %v240_v55 = vld [vmem:[%s3406_s3 + $0xc8] sm:$0xff] }
  0xdb   :  { %v2749_v32 = vpop.f32.mrf.mxu3 }
  0xdc   :  { %v926_v28 = vadd.f32 %v925_v22, %v765_v58  ;;  %v1426_v22 = vld [vmem:[%s3408_s5 + $0x120] sm:$0xff] }
  0xdd   :  { %817 = vmatmul.f32.gmra.mxu2 %v93_v30  ;;  %1615 = vperm.xlu2 %1878, %v1425_v39  }
  0xde   :  { %1610 = vperm.xlu1 %1877, %v1424_v53   ;;  %1605 = vperm.xlu0 %1876, %v1423_v21   ;;  %v2776_v15 = vpop.f32.mrf.mxu0  ;;  %v1428_v21 = vld [vmem:[%s3408_s5 + $0x130] sm:$0xff]  ;;  %v1347_v58 = vmul.f32 %v2299_v62, %v926_v28 }
  0xdf   :  { %v2762_v5 = vpop.f32.mrf.mxu1  ;;  %v1451_v13 = vpop.permute.xlu2 %1450 }
  0xe0   :  { %978 = vmatmul.f32.gmra.mxu3 %v94_v41  ;;  %v1680_v18 = vadd.f32 %v1451_v13, %v1344_v33  ;;  %v2767_v30 = vpop.permute.xlu1 %1304  ;;  %v2769_v39 = vpop.permute.xlu0 %1299  ;;  %v96_v13 = vld [vmem:[%s3407_s2 + $0x248] sm:$0xff]  ;;  %1852 = vmatmul.msk.f32.gmra.mxu0 %vm265_vm0, %v240_v55  ;;  %v95_v55 = vld [vmem:[%s3407_s2 + $0x240] sm:$0xff] }
  0xe1   :  { %3418 = vst [vmem:[#allocation10_spill] sm:$0xff] %v2767_v30  ;;  %v2774_v53 = vpop.f32.mrf.mxu2  ;;  %v1427_v33 = vld [vmem:[%s3408_s5 + $0x128] sm:$0xff] }
  0xe2   :  { %3419 = vst [vmem:[#allocation11_spill] sm:$0xff] %v2769_v39  ;;  %v1728_v29 = vmax.f32 %v1680_v18, 0.0  ;;  %656 = vmatmul.f32.gmra.mxu1 %v92_v9  ;;  %v97_v9 = vld [vmem:[%s3407_s2 + $0x250] sm:$0xff] }
  0xe3   :  { %v2784_v41 = vpop.f32.mrf.mxu3 }
  0xe4   :  { %1777 = vst.msk [vmem:[%s3409_s6 + $0x10] sm:$0xff] %vm1774_vm1, %v1728_v29 }
  0xe5   :  { %820 = vmatmul.f32.gmra.mxu2 %v96_v13  ;;  %1630 = vperm.xlu2 %1878, %v1428_v21   ;;  %v241_v21 = vld [vmem:[%s3406_s3 + $0xd0] sm:$0xff] }
  0xe6   :  { %1625 = vperm.xlu1 %1877, %v1427_v33   ;;  %1620 = vperm.xlu0 %1876, %v1426_v22   ;;  %v2811_v22 = vpop.f32.mrf.mxu0 }
  0xe7   :  { %v612_v18 = vpop.f32.mrf.mxu1  ;;  %v1466_v30 = vpop.permute.xlu2 %1465 }
  0xe8   :  { %v613_v39 = vadd.f32 %v612_v18, %v451_v1  ;;  %981 = vmatmul.f32.gmra.mxu3 %v97_v9  ;;  %v1683_v48 = vadd.f32 %v1466_v30, %v1347_v58  ;;  %v2804_v29 = vpop.permute.xlu1 %1319  ;;  %v2806_v13 = vpop.permute.xlu0 %1314  ;;  %v99_v1 = vld [vmem:[%s3407_s2 + $0x260] sm:$0xff]  ;;  %v1431_v30 = vld [vmem:[%s3408_s5 + $0x148] sm:$0xff]  ;;  %v1429_v18 = vld [vmem:[%s3408_s5 + $0x138] sm:$0xff]  ;;  %1853 = vmatmul.msk.f32.gmra.mxu0 %vm265_vm0, %v241_v21 }
  0xe9   :  { %3420 = vst [vmem:[#allocation12_spill] sm:$0xff] %v2804_v29  ;;  %v773_v33 = vpop.f32.mrf.mxu2  ;;  %v1430_v58 = vld [vmem:[%s3408_s5 + $0x140] sm:$0xff]  ;;  %v98_v21 = vld [vmem:[%s3407_s2 + $0x258] sm:$0xff] }
  0xea   :  { %v1731_v62 = vmax.f32 %v1683_v48, 0.0  ;;  %v774_v28 = vadd.f32 %v773_v33, %v613_v39  ;;  %659 = vmatmul.f32.gmra.mxu1 %v95_v55  ;;  %v100_v39 = vld [vmem:[%s3407_s2 + $0x268] sm:$0xff] }
  0xeb   :  { %v934_v9 = vpop.f32.mrf.mxu3 }
  0xec   :  { %1780 = vst.msk [vmem:[%s3409_s6 + $0x28] sm:$0xff] %vm1774_vm1, %v1731_v62  ;;  %v935_v48 = vadd.f32 %v934_v9, %v774_v28 }
  0xed   :  { %823 = vmatmul.f32.gmra.mxu2 %v99_v1  ;;  %1645 = vperm.xlu2 %1878, %v1431_v30   ;;  %v242_v30 = vld [vmem:[%s3406_s3 + $0xd8] sm:$0xff] }
  0xee   :  { %1640 = vperm.xlu1 %1877, %v1430_v58   ;;  %1635 = vperm.xlu0 %1876, %v1429_v18   ;;  %v1350_v55 = vmul.f32 %v2326_v7, %v935_v48  ;;  %v460_v7 = vpop.f32.mrf.mxu0  ;;  %v598_v58 = vadd.f32 %v2620_v31, %v2563_v16  ;;  %v1434_v48 = vld [vmem:[%s3408_s5 + $0x160] sm:$0xff]  ;;  %v1432_v16 = vld [vmem:[%s3408_s5 + $0x150] sm:$0xff] }
  0xef   :  { %v2834_v33 = vpop.f32.mrf.mxu1  ;;  %v1481_v29 = vpop.permute.xlu2 %1480 }
  0xf0   :  { %984 = vmatmul.f32.gmra.mxu3 %v100_v39  ;;  %v1686_v62 = vadd.f32 %v1481_v29, %v1350_v55  ;;  %v2839_v28 = vpop.permute.xlu1 %1334  ;;  %v2841_v1 = vpop.permute.xlu0 %1329  ;;  %v102_v29 = vld [vmem:[%s3407_s2 + $0x278] sm:$0xff]  ;;  %v601_v39 = vadd.f32 %v2656_v57, %v2600_v26  ;;  %1854 = vmatmul.msk.f32.gmra.mxu0 %vm265_vm0, %v242_v30  ;;  %v103_v26 = vld [vmem:[%s3407_s2 + $0x280] sm:$0xff]  ;;  %v759_v31 = vadd.f32 %v2634_v40, %v598_v58 }
  0xf1   :  { %3421 = vst [vmem:[#allocation13_spill] sm:$0xff] %v2839_v28  ;;  %v2846_v9 = vpop.f32.mrf.mxu2  ;;  %v1433_v28 = vld [vmem:[%s3408_s5 + $0x158] sm:$0xff] }
  0xf2   :  { %v1734_v18 = vmax.f32 %v1686_v62, 0.0  ;;  %662 = vmatmul.f32.gmra.mxu1 %v98_v21  ;;  %v762_v57 = vadd.f32 %v2670_v2, %v601_v39  ;;  %v101_v62 = vld [vmem:[%s3407_s2 + $0x270] sm:$0xff]  ;;  %v920_v2 = vadd.f32 %v2644_v49, %v759_v31  ;;  %v607_v39 = vadd.f32 %v2725_v43, %v2672_v10  ;;  %v1435_v43 = vld [vmem:[%s3408_s5 + $0x168] sm:$0xff] }
  0xf3   :  { %v2858_v55 = vpop.f32.mrf.mxu3  ;;  %v1436_v10 = vld [vmem:[%s3408_s5 + $0x170] sm:$0xff] }
  0xf4   :  { %1783 = vst.msk [vmem:[%s3409_s6 + $0x40] sm:$0xff] %vm1774_vm1, %v1734_v18 }
  0xf5   :  { %826 = vmatmul.f32.gmra.mxu2 %v102_v29  ;;  %1660 = vperm.xlu2 %1878, %v1434_v48   ;;  %v243_v29 = vld [vmem:[%s3406_s3 + $0xe0] sm:$0xff] }
  0xf6   :  { %1655 = vperm.xlu1 %1877, %v1433_v28   ;;  %1650 = vperm.xlu0 %1876, %v1432_v16   ;;  %v2884_v58 = vpop.f32.mrf.mxu0  ;;  %v105_v16 = vld [vmem:[%s3407_s2 + $0x290] sm:$0xff] }
  0xf7   :  { %v618_v21 = vpop.f32.mrf.mxu1 }
  0xf8   :  { %987 = vmatmul.f32.gmra.mxu3 %v103_v26  ;;  %v1446_v30 = vpop.permute.xlu1 %1445  ;;  %v1441_v18 = vpop.permute.xlu0 %1440  ;;  %v1437_v26 = vld [vmem:[%s3408_s5 + $0x178] sm:$0xff]  ;;  %1855 = vmatmul.msk.f32.gmra.mxu0 %vm265_vm0, %v243_v29  ;;  %v104_v29 = vld [vmem:[%s3407_s2 + $0x288] sm:$0xff] }
  0xf9   :  { %v1679_v48 = vadd.f32 %v1446_v30, %v2582_v3  ;;  %v1678_v40 = vadd.f32 %v1441_v18, %v2549_v42  ;;  %v779_v28 = vpop.f32.mrf.mxu2  ;;  %v923_v3 = vadd.f32 %v2680_v19, %v762_v57  ;;  %v610_v42 = vadd.f32 %v2762_v5, %v2704_v61  ;;  %v106_v19 = vld [vmem:[%s3407_s2 + $0x298] sm:$0xff] }
  0xfa   :  { %665 = vmatmul.f32.gmra.mxu1 %v101_v62  ;;  %v768_v61 = vadd.f32 %v2739_v14, %v607_v39  ;;  %v1345_v62 = vmul.f32 %v2378_v25, %v920_v2  ;;  %v244_v39 = vld [vmem:[%s3406_s3 + $0xe8] sm:$0xff]  ;;  %v616_v25 = vadd.f32 %v2834_v33, %v2776_v15 }
  0xfb   :  { %v1727_v30 = vmax.f32 %v1679_v48, 0.0  ;;  %v1726_v18 = vmax.f32 %v1678_v40, 0.0  ;;  %v2898_v49 = vpop.f32.mrf.mxu3  ;;  %v771_v5 = vadd.f32 %v2774_v53, %v610_v42  ;;  %v1346_v57 = vmul.f32 %v2275_v54, %v923_v3 }
  0xfc   :  { %v929_v54 = vadd.f32 %v2749_v32, %v768_v61  ;;  %v109_v32 = vld [vmem:[%s3407_s2 + $0x2b0] sm:$0xff]  ;;  %v777_v15 = vadd.f32 %v2846_v9, %v616_v25 }
  0xfd   :  { %1776 = vst.msk [vmem:[%s3409_s6 + $0x8] sm:$0xff] %vm1774_vm1, %v1727_v30  ;;  %829 = vmatmul.f32.gmra.mxu2 %v105_v16  ;;  %1675 = vperm.xlu2 %1878, %v1437_v26   ;;  %v932_v3 = vadd.f32 %v2784_v41, %v771_v5  ;;  %v619_v30 = vadd.f32 %v618_v21, %v2811_v22  ;;  %v1496_v22 = vpop.permute.xlu2 %1495 }
  0xfe   :  { %1775 = vst.msk [vmem:[%s3409_s6] sm:$0xff] %vm1774_vm1, %v1726_v18  ;;  %1670 = vperm.xlu1 %1877, %v1436_v10   ;;  %1665 = vperm.xlu0 %1876, %v1435_v43   ;;  %v466_v42 = vpop.f32.mrf.mxu0  ;;  %v1348_v5 = vmul.f32 %v2408_v36, %v929_v54  ;;  %v111_v36 = vld [vmem:[%s3407_s2 + $0x2c0] sm:$0xff] }
  0xff   :  { %v621_v31 = vpop.f32.mrf.mxu1  ;;  %v780_v33 = vadd.f32 %v779_v28, %v619_v30  ;;  %v1349_v61 = vmul.f32 %v2406_v35, %v932_v3  ;;  %v938_v35 = vadd.f32 %v2858_v55, %v777_v15  ;;  %v112_v55 = vld [vmem:[%s3407_s2 + $0x2c8] sm:$0xff] }
 0x100   :  { %v622_v48 = vadd.f32 %v621_v31, %v460_v7  ;;  %990 = vmatmul.f32.gmra.mxu3 %v106_v19  ;;  %v1461_v14 = vpop.permute.xlu1 %1460  ;;  %v1456_v40 = vpop.permute.xlu0 %1455  ;;  %v108_v7 = vld [vmem:[%s3407_s2 + $0x2a8] sm:$0xff]  ;;  %1856 = vmatmul.msk.f32.gmra.mxu0 %vm265_vm0, %v244_v39  ;;  %v107_v31 = vld [vmem:[%s3407_s2 + $0x2a0] sm:$0xff] }
 0x101   :  { %v1682_v16 = vadd.f32 %v1461_v14, %v1346_v57  ;;  %v1681_v26 = vadd.f32 %v1456_v40, %v1345_v62  ;;  %v782_v53 = vpop.f32.mrf.mxu2  ;;  %v941_v39 = vadd.f32 %v2898_v49, %v780_v33 }
 0x102   :  { %v783_v2 = vadd.f32 %v782_v53, %v622_v48  ;;  %668 = vmatmul.f32.gmra.mxu1 %v104_v29  ;;  %v245_v29 = vld [vmem:[%s3406_s3 + $0xf0] sm:$0xff] }
 0x103   :  { %v1730_v18 = vmax.f32 %v1682_v16, 0.0  ;;  %v1729_v10 = vmax.f32 %v1681_v26, 0.0  ;;  %v943_v43 = vpop.f32.mrf.mxu3  ;;  %v1352_v25 = vmul.f32 %v2434_v45, %v941_v39  ;;  %v114_v45 = vld [vmem:[%s3407_s2 + $0x2d8] sm:$0xff] }
 0x104   :  { %v944_v19 = vadd.f32 %v943_v43, %v783_v2  ;;  %v1351_v2 = vmul.f32 %v2438_v47, %v938_v35 }
 0x105   :  { %1779 = vst.msk [vmem:[%s3409_s6 + $0x20] sm:$0xff] %vm1774_vm1, %v1730_v18  ;;  %832 = vmatmul.f32.gmra.mxu2 %v108_v7  ;;  %v110_v7 = vld [vmem:[%s3407_s2 + $0x2b8] sm:$0xff] }
 0x106   :  { %1778 = vst.msk [vmem:[%s3409_s6 + $0x18] sm:$0xff] %vm1774_vm1, %v1729_v10  ;;  %v1353_v41 = vmul.f32 %v2354_v17, %v944_v19  ;;  %v469_v14 = vpop.f32.mrf.mxu0  ;;  %v246_v10 = vld [vmem:[%s3406_s3 + $0xf8] sm:$0xff] }
 0x107   :  { %v624_v21 = vpop.f32.mrf.mxu1 }
 0x108   :  { %v1689_v57 = vadd.f32 %v1496_v22, %v1353_v41  ;;  %993 = vmatmul.f32.gmra.mxu3 %v109_v32  ;;  %v1476_v9 = vpop.permute.xlu1 %1475  ;;  %v1471_v62 = vpop.permute.xlu0 %1470  ;;  %v625_v16 = vadd.f32 %v624_v21, %v2884_v58  ;;  %1857 = vmatmul.msk.f32.gmra.mxu0 %vm265_vm0, %v245_v29 }
 0x109   :  { %v1685_v17 = vadd.f32 %v1476_v9, %v1349_v61  ;;  %v1684_v48 = vadd.f32 %v1471_v62, %v1348_v5  ;;  %v785_v28 = vpop.f32.mrf.mxu2  ;;  %v115_v61 = vld [vmem:[%s3407_s2 + $0x2e0] sm:$0xff]  ;;  %v113_v9 = vld [vmem:[%s3407_s2 + $0x2d0] sm:$0xff] }
 0x10a   :  { %v1737_v40 = vmax.f32 %v1689_v57, 0.0  ;;  %671 = vmatmul.f32.gmra.mxu1 %v107_v31  ;;  %v786_v58 = vadd.f32 %v785_v28, %v625_v16 }
 0x10b   :  { %v1733_v26 = vmax.f32 %v1685_v17, 0.0  ;;  %v1732_v53 = vmax.f32 %v1684_v48, 0.0  ;;  %v946_v54 = vpop.f32.mrf.mxu3  ;;  %v247_v48 = vld [vmem:[%s3406_s3 + $0x100] sm:$0xff] }
 0x10c   :  { %1786 = vst.msk [vmem:[%s3409_s6 + $0x58] sm:$0xff] %vm1774_vm1, %v1737_v40  ;;  %v947_v47 = vadd.f32 %v946_v54, %v786_v58 }
 0x10d   :  { %1782 = vst.msk [vmem:[%s3409_s6 + $0x38] sm:$0xff] %vm1774_vm1, %v1733_v26  ;;  %835 = vmatmul.f32.gmra.mxu2 %v111_v36 }
 0x10e   :  { %1781 = vst.msk [vmem:[%s3409_s6 + $0x30] sm:$0xff] %vm1774_vm1, %v1732_v53  ;;  %v472_v15 = vpop.f32.mrf.mxu0  ;;  %v1354_v57 = vmul.f32 %v2469_v60, %v947_v47  ;;  %v118_v53 = vld [vmem:[%s3407_s2 + $0x2f8] sm:$0xff]  ;;  %v119_v47 = vld [vmem:[%s3407_s2 + $0x300] sm:$0xff] }
 0x10f   :  { %v627_v49 = vpop.f32.mrf.mxu1 }
 0x110   :  { %v628_v3 = vadd.f32 %v627_v49, %v466_v42  ;;  %996 = vmatmul.f32.gmra.mxu3 %v112_v55  ;;  %v1491_v30 = vpop.permute.xlu1 %1490  ;;  %v1486_v18 = vpop.permute.xlu0 %1485  ;;  %1858 = vmatmul.msk.f32.gmra.mxu0 %vm265_vm0, %v246_v10  ;;  %v116_v49 = vld [vmem:[%s3407_s2 + $0x2e8] sm:$0xff] }
 0x111   :  { %v1688_v43 = vadd.f32 %v1491_v30, %v1352_v25  ;;  %v1687_v19 = vadd.f32 %v1486_v18, %v1351_v2  ;;  %v788_v32 = vpop.f32.mrf.mxu2  ;;  %v1511_v55 = vpop.permute.xlu2 %1510 }
 0x112   :  { %v789_v41 = vadd.f32 %v788_v32, %v628_v3  ;;  %674 = vmatmul.f32.gmra.mxu1 %v110_v7  ;;  %v248_v7 = vld [vmem:[%s3406_s3 + $0x108] sm:$0xff]  ;;  %v121_v32 = vld [vmem:[%s3407_s2 + $0x310] sm:$0xff] }
 0x113   :  { %v1736_v22 = vmax.f32 %v1688_v43, 0.0  ;;  %v1735_v42 = vmax.f32 %v1687_v19, 0.0  ;;  %v949_v33 = vpop.f32.mrf.mxu3 }
 0x114   :  { %v950_v21 = vadd.f32 %v949_v33, %v789_v41  ;;  %v249_v33 = vld [vmem:[%s3406_s3 + $0x110] sm:$0xff] }
 0x115   :  { %1785 = vst.msk [vmem:[%s3409_s6 + $0x50] sm:$0xff] %vm1774_vm1, %v1736_v22  ;;  %838 = vmatmul.f32.gmra.mxu2 %v114_v45 }
 0x116   :  { %1784 = vst.msk [vmem:[%s3409_s6 + $0x48] sm:$0xff] %vm1774_vm1, %v1735_v42  ;;  %v1355_v31 = vmul.f32 %v2467_v59, %v950_v21  ;;  %v475_v36 = vpop.f32.mrf.mxu0  ;;  %v117_v59 = vld [vmem:[%s3407_s2 + $0x2f0] sm:$0xff] }
 0x117   :  { %v630_v5 = vpop.f32.mrf.mxu1 }
 0x118   :  { %v631_v62 = vadd.f32 %v630_v5, %v469_v14  ;;  %999 = vmatmul.f32.gmra.mxu3 %v115_v61  ;;  %v1506_v29 = vpop.permute.xlu1 %1505  ;;  %v1501_v17 = vpop.permute.xlu0 %1500  ;;  %1859 = vmatmul.msk.f32.gmra.mxu0 %vm265_vm0, %v247_v48 }
 0x119   :  { %v1691_v28 = vadd.f32 %v1506_v29, %v1355_v31  ;;  %v1690_v35 = vadd.f32 %v1501_v17, %v1354_v57  ;;  %v791_v40 = vpop.f32.mrf.mxu2 }
 0x11a   :  { %v792_v39 = vadd.f32 %v791_v40, %v631_v62  ;;  %677 = vmatmul.f32.gmra.mxu1 %v113_v9  ;;  %v124_v62 = vld [vmem:[%s3407_s2 + $0x328] sm:$0xff] }
 0x11b   :  { %v1739_v60 = vmax.f32 %v1691_v28, 0.0  ;;  %v1738_v16 = vmax.f32 %v1690_v35, 0.0  ;;  %v952_v14 = vpop.f32.mrf.mxu3  ;;  %v122_v28 = vld [vmem:[%s3407_s2 + $0x318] sm:$0xff] }
 0x11c   :  { %v953_v26 = vadd.f32 %v952_v14, %v792_v39 }
 0x11d   :  { %1788 = vst.msk [vmem:[%s3409_s6 + $0x68] sm:$0xff] %vm1774_vm1, %v1739_v60  ;;  %841 = vmatmul.f32.gmra.mxu2 %v117_v59 }
 0x11e   :  { %1787 = vst.msk [vmem:[%s3409_s6 + $0x60] sm:$0xff] %vm1774_vm1, %v1738_v16  ;;  %v1356_v54 = vmul.f32 %v2382_v27, %v953_v26  ;;  %v478_v30 = vpop.f32.mrf.mxu0  ;;  %v120_v27 = vld [vmem:[%s3407_s2 + $0x308] sm:$0xff] }
 0x11f   :  { %v633_v58 = vpop.f32.mrf.mxu1 }
 0x120   :  { %v1692_v25 = vadd.f32 %v1511_v55, %v1356_v54  ;;  %v634_v2 = vadd.f32 %v633_v58, %v472_v15  ;;  %1002 = vmatmul.f32.gmra.mxu3 %v118_v53  ;;  %1860 = vmatmul.msk.f32.gmra.mxu0 %vm265_vm0, %v248_v7  ;;  %v1516_v41 = vpop.permute.xlu0 %1515  ;;  %v1521_v17 = vpop.permute.xlu1 %1520  ;;  %v127_v53 = vld [vmem:[%s3407_s2 + $0x340] sm:$0xff] }
 0x121   :  { %v794_v3 = vpop.f32.mrf.mxu2  ;;  %v1526_v55 = vpop.permute.xlu2 %1525  ;;  %v251_v7 = vld [vmem:[%s3406_s3 + $0x120] sm:$0xff] }
 0x122   :  { %v1740_v18 = vmax.f32 %v1692_v25, 0.0  ;;  %v795_v10 = vadd.f32 %v794_v3, %v634_v2  ;;  %680 = vmatmul.f32.gmra.mxu1 %v116_v49  ;;  %v125_v49 = vld [vmem:[%s3407_s2 + $0x330] sm:$0xff] }
 0x123   :  { %v955_v43 = vpop.f32.mrf.mxu3 }
 0x124   :  { %1789 = vst.msk [vmem:[%s3409_s6 + $0x70] sm:$0xff] %vm1774_vm1, %v1740_v18  ;;  %v956_v19 = vadd.f32 %v955_v43, %v795_v10 }
 0x125   :  { %844 = vmatmul.f32.gmra.mxu2 %v120_v27 }
 0x126   :  { %v1357_v15 = vmul.f32 %v2497_v8, %v956_v19  ;;  %v481_v61 = vpop.f32.mrf.mxu0  ;;  %v123_v8 = vld [vmem:[%s3407_s2 + $0x320] sm:$0xff]  ;;  %v130_v19 = vld [vmem:[%s3407_s2 + $0x358] sm:$0xff] }
 0x127   :  { %v636_v45 = vpop.f32.mrf.mxu1 }
 0x128   :  { %v1693_v22 = vadd.f32 %v1516_v41, %v1357_v15  ;;  %v637_v42 = vadd.f32 %v636_v45, %v475_v36  ;;  %1005 = vmatmul.f32.gmra.mxu3 %v121_v32  ;;  %1861 = vmatmul.msk.f32.gmra.mxu0 %vm265_vm0, %v249_v33  ;;  %v250_v36 = vld [vmem:[%s3406_s3 + $0x118] sm:$0xff]  ;;  %v1531_v15 = vpop.permute.xlu0 %1530  ;;  %v128_v45 = vld [vmem:[%s3407_s2 + $0x348] sm:$0xff] }
 0x129   :  { %v797_v21 = vpop.f32.mrf.mxu2 }
 0x12a   :  { %v1741_v5 = vmax.f32 %v1693_v22, 0.0  ;;  %v798_v31 = vadd.f32 %v797_v21, %v637_v42  ;;  %683 = vmatmul.f32.gmra.mxu1 %v119_v47  ;;  %v252_v42 = vld [vmem:[%s3406_s3 + $0x128] sm:$0xff] }
 0x12b   :  { %v958_v57 = vpop.f32.mrf.mxu3 }
 0x12c   :  { %1790 = vst.msk [vmem:[%s3409_s6 + $0x78] sm:$0xff] %vm1774_vm1, %v1741_v5  ;;  %v959_v9 = vadd.f32 %v958_v57, %v798_v31  ;;  %v133_v57 = vld [vmem:[%s3407_s2 + $0x370] sm:$0xff] }
 0x12d   :  { %847 = vmatmul.f32.gmra.mxu2 %v123_v8 }
 0x12e   :  { %v1358_v29 = vmul.f32 %v2495_v6, %v959_v9  ;;  %v484_v59 = vpop.f32.mrf.mxu0  ;;  %v126_v6 = vld [vmem:[%s3407_s2 + $0x338] sm:$0xff] }
 0x12f   :  { %v639_v48 = vpop.f32.mrf.mxu1 }
 0x130   :  { %v1694_v35 = vadd.f32 %v1521_v17, %v1358_v29  ;;  %v640_v40 = vadd.f32 %v639_v48, %v478_v30  ;;  %1008 = vmatmul.f32.gmra.mxu3 %v124_v62  ;;  %1862 = vmatmul.msk.f32.gmra.mxu0 %vm265_vm0, %v250_v36  ;;  %v1536_v62 = vpop.permute.xlu1 %1535  ;;  %v131_v17 = vld [vmem:[%s3407_s2 + $0x360] sm:$0xff] }
 0x131   :  { %v800_v39 = vpop.f32.mrf.mxu2 }
 0x132   :  { %v1742_v60 = vmax.f32 %v1694_v35, 0.0  ;;  %v801_v16 = vadd.f32 %v800_v39, %v640_v40  ;;  %686 = vmatmul.f32.gmra.mxu1 %v122_v28  ;;  %v253_v35 = vld [vmem:[%s3406_s3 + $0x130] sm:$0xff] }
 0x133   :  { %v961_v14 = vpop.f32.mrf.mxu3 }
 0x134   :  { %1791 = vst.msk [vmem:[%s3409_s6 + $0x80] sm:$0xff] %vm1774_vm1, %v1742_v60  ;;  %v962_v26 = vadd.f32 %v961_v14, %v801_v16 }
 0x135   :  { %850 = vmatmul.f32.gmra.mxu2 %v126_v6  ;;  %v136_v6 = vld [vmem:[%s3407_s2 + $0x388] sm:$0xff] }
 0x136   :  { %v1359_v54 = vmul.f32 %v2410_v37, %v962_v26  ;;  %v487_v30 = vpop.f32.mrf.mxu0  ;;  %v129_v37 = vld [vmem:[%s3407_s2 + $0x350] sm:$0xff]  ;;  %v1541_v26 = vpop.permute.xlu2 %1540 }
 0x137   :  { %v642_v58 = vpop.f32.mrf.mxu1 }
 0x138   :  { %v1695_v25 = vadd.f32 %v1526_v55, %v1359_v54  ;;  %v643_v2 = vadd.f32 %v642_v58, %v481_v61  ;;  %1011 = vmatmul.f32.gmra.mxu3 %v127_v53  ;;  %1863 = vmatmul.msk.f32.gmra.mxu0 %vm265_vm0, %v251_v7  ;;  %v134_v54 = vld [vmem:[%s3407_s2 + $0x378] sm:$0xff] }
 0x139   :  { %v803_v3 = vpop.f32.mrf.mxu2 }
 0x13a   :  { %v1743_v18 = vmax.f32 %v1695_v25, 0.0  ;;  %v804_v10 = vadd.f32 %v803_v3, %v643_v2  ;;  %689 = vmatmul.f32.gmra.mxu1 %v125_v49  ;;  %v254_v49 = vld [vmem:[%s3406_s3 + $0x138] sm:$0xff] }
 0x13b   :  { %v964_v27 = vpop.f32.mrf.mxu3 }
 0x13c   :  { %1792 = vst.msk [vmem:[%s3409_s6 + $0x88] sm:$0xff] %vm1774_vm1, %v1743_v18  ;;  %v965_v43 = vadd.f32 %v964_v27, %v804_v10  ;;  %v139_v10 = vld [vmem:[%s3407_s2 + $0x3a0] sm:$0xff]  ;;  %v1546_v27 = vpop.permute.xlu0 %1545 }
 0x13d   :  { %853 = vmatmul.f32.gmra.mxu2 %v129_v37 }
 0x13e   :  { %v1360_v32 = vmul.f32 %v2525_v24, %v965_v43  ;;  %v490_v21 = vpop.f32.mrf.mxu0  ;;  %v132_v24 = vld [vmem:[%s3407_s2 + $0x368] sm:$0xff] }
 0x13f   :  { %v645_v41 = vpop.f32.mrf.mxu1 }
 0x140   :  { %v1696_v47 = vadd.f32 %v1531_v15, %v1360_v32  ;;  %v646_v22 = vadd.f32 %v645_v41, %v484_v59  ;;  %1014 = vmatmul.f32.gmra.mxu3 %v130_v19  ;;  %1864 = vmatmul.msk.f32.gmra.mxu0 %vm265_vm0, %v252_v42  ;;  %v137_v19 = vld [vmem:[%s3407_s2 + $0x390] sm:$0xff]  ;;  %v255_v41 = vld [vmem:[%s3406_s3 + $0x140] sm:$0xff] }
 0x141   :  { %v806_v33 = vpop.f32.mrf.mxu2 }
 0x142   :  { %v1744_v61 = vmax.f32 %v1696_v47, 0.0  ;;  %v807_v5 = vadd.f32 %v806_v33, %v646_v22  ;;  %692 = vmatmul.f32.gmra.mxu1 %v128_v45 }
 0x143   :  { %v967_v31 = vpop.f32.mrf.mxu3 }
 0x144   :  { %1793 = vst.msk [vmem:[%s3409_s6 + $0x90] sm:$0xff] %vm1774_vm1, %v1744_v61  ;;  %v968_v8 = vadd.f32 %v967_v31, %v807_v5  ;;  %v142_v61 = vld [vmem:[%s3407_s2 + $0x3b8] sm:$0xff] }
 0x145   :  { %856 = vmatmul.f32.gmra.mxu2 %v132_v24  ;;  %v1551_v24 = vpop.permute.xlu1 %1550 }
 0x146   :  { %v1361_v9 = vmul.f32 %v2523_v23, %v968_v8  ;;  %v493_v36 = vpop.f32.mrf.mxu0  ;;  %v135_v23 = vld [vmem:[%s3407_s2 + $0x380] sm:$0xff]  ;;  %v140_v8 = vld [vmem:[%s3407_s2 + $0x3a8] sm:$0xff] }
 0x147   :  { %v648_v29 = vpop.f32.mrf.mxu1 }
 0x148   :  { %v1697_v48 = vadd.f32 %v1536_v62, %v1361_v9  ;;  %v649_v28 = vadd.f32 %v648_v29, %v487_v30  ;;  %1017 = vmatmul.f32.gmra.mxu3 %v133_v57  ;;  %1865 = vmatmul.msk.f32.gmra.mxu0 %vm265_vm0, %v253_v35  ;;  %v256_v62 = vld [vmem:[%s3406_s3 + $0x148] sm:$0xff] }
 0x149   :  { %v809_v40 = vpop.f32.mrf.mxu2 }
 0x14a   :  { %v1745_v39 = vmax.f32 %v1697_v48, 0.0  ;;  %v810_v59 = vadd.f32 %v809_v40, %v649_v28  ;;  %695 = vmatmul.f32.gmra.mxu1 %v131_v17 }
 0x14b   :  { %v970_v60 = vpop.f32.mrf.mxu3 }
 0x14c   :  { %1794 = vst.msk [vmem:[%s3409_s6 + $0x98] sm:$0xff] %vm1774_vm1, %v1745_v39  ;;  %v971_v16 = vadd.f32 %v970_v60, %v810_v59  ;;  %v1556_v59 = vpop.permute.xlu2 %1555  ;;  %v143_v60 = vld [vmem:[%s3407_s2 + $0x3c0] sm:$0xff] }
 0x14d   :  { %859 = vmatmul.f32.gmra.mxu2 %v135_v23 }
 0x14e   :  { %v1362_v14 = vmul.f32 %v2436_v46, %v971_v16  ;;  %v496_v2 = vpop.f32.mrf.mxu0  ;;  %v138_v46 = vld [vmem:[%s3407_s2 + $0x398] sm:$0xff] }
 0x14f   :  { %v651_v53 = vpop.f32.mrf.mxu1 }
 0x150   :  { %v1698_v55 = vadd.f32 %v1541_v26, %v1362_v14  ;;  %v652_v58 = vadd.f32 %v651_v53, %v490_v21  ;;  %1020 = vmatmul.f32.gmra.mxu3 %v136_v6  ;;  %1866 = vmatmul.msk.f32.gmra.mxu0 %vm265_vm0, %v254_v49  ;;  %v257_v14 = vld [vmem:[%s3406_s3 + $0x150] sm:$0xff] }
 0x151   :  { %v812_v25 = vpop.f32.mrf.mxu2 }
 0x152   :  { %v1746_v7 = vmax.f32 %v1698_v55, 0.0  ;;  %v813_v3 = vadd.f32 %v812_v25, %v652_v58  ;;  %698 = vmatmul.f32.gmra.mxu1 %v134_v54  ;;  %v148_v25 = vld [vmem:[%s3407_s2 + $0x3e8] sm:$0xff] }
 0x153   :  { %v973_v30 = vpop.f32.mrf.mxu3 }
 0x154   :  { %1795 = vst.msk [vmem:[%s3409_s6 + $0xa0] sm:$0xff] %vm1774_vm1, %v1746_v7  ;;  %v974_v18 = vadd.f32 %v973_v30, %v813_v3  ;;  %v1561_v7 = vpop.permute.xlu0 %1560 }
 0x155   :  { %862 = vmatmul.f32.gmra.mxu2 %v138_v46  ;;  %v146_v46 = vld [vmem:[%s3407_s2 + $0x3d8] sm:$0xff] }
 0x156   :  { %v1363_v37 = vmul.f32 %v2558_v51, %v974_v18  ;;  %v499_v47 = vpop.f32.mrf.mxu0  ;;  %v141_v51 = vld [vmem:[%s3407_s2 + $0x3b0] sm:$0xff] }
 0x157   :  { %v654_v43 = vpop.f32.mrf.mxu1 }
 0x158   :  { %v1699_v32 = vadd.f32 %v1546_v27, %v1363_v37  ;;  %v655_v15 = vadd.f32 %v654_v43, %v493_v36  ;;  %1023 = vmatmul.f32.gmra.mxu3 %v139_v10  ;;  %1867 = vmatmul.msk.f32.gmra.mxu0 %vm265_vm0, %v255_v41  ;;  %v145_v36 = vld [vmem:[%s3407_s2 + $0x3d0] sm:$0xff]  ;;  %v258_v10 = vld [vmem:[%s3406_s3 + $0x158] sm:$0xff]  ;;  %v151_v41 = vld [vmem:[%s3407_s2 + $0x400] sm:$0xff] }
 0x159   :  { %v815_v45 = vpop.f32.mrf.mxu2 }
 0x15a   :  { %v1747_v22 = vmax.f32 %v1699_v32, 0.0  ;;  %v816_v42 = vadd.f32 %v815_v45, %v655_v15  ;;  %701 = vmatmul.f32.gmra.mxu1 %v137_v19 }
 0x15b   :  { %v976_v33 = vpop.f32.mrf.mxu3 }
 0x15c   :  { %1796 = vst.msk [vmem:[%s3409_s6 + $0xa8] sm:$0xff] %vm1774_vm1, %v1747_v22  ;;  %v977_v21 = vadd.f32 %v976_v33, %v816_v42  ;;  %v149_v42 = vld [vmem:[%s3407_s2 + $0x3f0] sm:$0xff] }
 0x15d   :  { %865 = vmatmul.f32.gmra.mxu2 %v141_v51 }
 0x15e   :  { %v1364_v5 = vmul.f32 %v2556_v50, %v977_v21  ;;  %v502_v17 = vpop.f32.mrf.mxu0  ;;  %v144_v50 = vld [vmem:[%s3407_s2 + $0x3c8] sm:$0xff]  ;;  %v259_v21 = vld [vmem:[%s3406_s3 + $0x160] sm:$0xff] }
 0x15f   :  { %v657_v31 = vpop.f32.mrf.mxu1 }
 0x160   :  { %v1700_v57 = vadd.f32 %v1551_v24, %v1364_v5  ;;  %v658_v9 = vadd.f32 %v657_v31, %v496_v2  ;;  %1026 = vmatmul.f32.gmra.mxu3 %v142_v61  ;;  %1868 = vmatmul.msk.f32.gmra.mxu0 %vm265_vm0, %v256_v62 }
 0x161   :  { %v818_v29 = vpop.f32.mrf.mxu2 }
 0x162   :  { %v1748_v48 = vmax.f32 %v1700_v57, 0.0  ;;  %v819_v28 = vadd.f32 %v818_v29, %v658_v9  ;;  %704 = vmatmul.f32.gmra.mxu1 %v140_v8  ;;  %v154_v9 = vld [vmem:[%s3407_s2 + $0x418] sm:$0xff]  ;;  %v1571_v29 = vpop.permute.xlu2 %1570 }
 0x163   :  { %v979_v35 = vpop.f32.mrf.mxu3 }
 0x164   :  { %1797 = vst.msk [vmem:[%s3409_s6 + $0xb0] sm:$0xff] %vm1774_vm1, %v1748_v48  ;;  %v980_v40 = vadd.f32 %v979_v35, %v819_v28  ;;  %v152_v48 = vld [vmem:[%s3407_s2 + $0x408] sm:$0xff] }
 0x165   :  { %868 = vmatmul.f32.gmra.mxu2 %v144_v50  ;;  %v260_v35 = vld [vmem:[%s3406_s3 + $0x168] sm:$0xff] }
 0x166   :  { %v1365_v39 = vmul.f32 %v2462_v56, %v980_v40  ;;  %v505_v53 = vpop.f32.mrf.mxu0  ;;  %v147_v56 = vld [vmem:[%s3407_s2 + $0x3e0] sm:$0xff] }
 0x167   :  { %v660_v23 = vpop.f32.mrf.mxu1 }
 0x168   :  { %v1701_v16 = vadd.f32 %v1556_v59, %v1365_v39  ;;  %v661_v6 = vadd.f32 %v660_v23, %v499_v47  ;;  %1029 = vmatmul.f32.gmra.mxu3 %v145_v36  ;;  %1869 = vmatmul.msk.f32.gmra.mxu0 %vm265_vm0, %v257_v14  ;;  %v1566_v47 = vpop.permute.xlu1 %1565  ;;  %v1576_v14 = vpop.permute.xlu0 %1575 }
 0x169   :  { %v821_v26 = vpop.f32.mrf.mxu2 }
 0x16a   :  { %v1749_v54 = vmax.f32 %v1701_v16, 0.0  ;;  %v822_v55 = vadd.f32 %v821_v26, %v661_v6  ;;  %707 = vmatmul.f32.gmra.mxu1 %v143_v60  ;;  %v157_v16 = vld [vmem:[%s3407_s2 + $0x430] sm:$0xff] }
 0x16b   :  { %v982_v58 = vpop.f32.mrf.mxu3 }
 0x16c   :  { %1798 = vst.msk [vmem:[%s3409_s6 + $0xb8] sm:$0xff] %vm1774_vm1, %v1749_v54  ;;  %v983_v49 = vadd.f32 %v982_v58, %v822_v55 }
 0x16d   :  { %871 = vmatmul.f32.gmra.mxu2 %v147_v56  ;;  %v261_v56 = vld [vmem:[%s3406_s3 + $0x170] sm:$0xff] }
 0x16e   :  { %v1366_v2 = vmul.f32 %v2593_v12, %v983_v49  ;;  %v508_v27 = vpop.f32.mrf.mxu0  ;;  %v150_v12 = vld [vmem:[%s3407_s2 + $0x3f8] sm:$0xff] }
 0x16f   :  { %v663_v3 = vpop.f32.mrf.mxu1 }
 0x170   :  { %v1702_v30 = vadd.f32 %v1561_v7, %v1366_v2  ;;  %v664_v18 = vadd.f32 %v663_v3, %v502_v17  ;;  %1032 = vmatmul.f32.gmra.mxu3 %v148_v25  ;;  %1870 = vmatmul.msk.f32.gmra.mxu0 %vm265_vm0, %v258_v10 }
 0x171   :  { %v824_v37 = vpop.f32.mrf.mxu2 }
 0x172   :  { %v1750_v43 = vmax.f32 %v1702_v30, 0.0  ;;  %v825_v19 = vadd.f32 %v824_v37, %v664_v18  ;;  %710 = vmatmul.f32.gmra.mxu1 %v146_v46  ;;  %v160_v46 = vld [vmem:[%s3407_s2 + $0x448] sm:$0xff]  ;;  %v1581_v18 = vpop.permute.xlu1 %1580  ;;  %v158_v37 = vld [vmem:[%s3407_s2 + $0x438] sm:$0xff] }
 0x173   :  { %v985_v32 = vpop.f32.mrf.mxu3 }
 0x174   :  { %1799 = vst.msk [vmem:[%s3409_s6 + $0xc0] sm:$0xff] %vm1774_vm1, %v1750_v43  ;;  %v986_v15 = vadd.f32 %v985_v32, %v825_v19  ;;  %v262_v19 = vld [vmem:[%s3406_s3 + $0x178] sm:$0xff] }
 0x175   :  { %874 = vmatmul.f32.gmra.mxu2 %v150_v12 }
 0x176   :  { %v1367_v45 = vmul.f32 %v2591_v11, %v986_v15  ;;  %v511_v5 = vpop.f32.mrf.mxu0  ;;  %v153_v11 = vld [vmem:[%s3407_s2 + $0x410] sm:$0xff] }
 0x177   :  { %v666_v22 = vpop.f32.mrf.mxu1 }
 0x178   :  { %v1703_v51 = vadd.f32 %v1566_v47, %v1367_v45  ;;  %v667_v33 = vadd.f32 %v666_v22, %v505_v53  ;;  %1035 = vmatmul.f32.gmra.mxu3 %v151_v41  ;;  %1871 = vmatmul.msk.f32.gmra.mxu0 %vm265_vm0, %v259_v21  ;;  %v155_v53 = vld [vmem:[%s3407_s2 + $0x420] sm:$0xff]  ;;  %v161_v21 = vld [vmem:[%s3407_s2 + $0x450] sm:$0xff] }
 0x179   :  { %v827_v61 = vpop.f32.mrf.mxu2  ;;  %v163_v22 = vld [vmem:[%s3407_s2 + $0x460] sm:$0xff] }
 0x17a   :  { %v1751_v24 = vmax.f32 %v1703_v51, 0.0  ;;  %v828_v31 = vadd.f32 %v827_v61, %v667_v33  ;;  %713 = vmatmul.f32.gmra.mxu1 %v149_v42  ;;  %v1586_v51 = vpop.permute.xlu2 %1585 }
 0x17b   :  { %v988_v8 = vpop.f32.mrf.mxu3 }
 0x17c   :  { %1800 = vst.msk [vmem:[%s3409_s6 + $0xc8] sm:$0xff] %vm1774_vm1, %v1751_v24  ;;  %v989_v57 = vadd.f32 %v988_v8, %v828_v31 }
 0x17d   :  { %877 = vmatmul.f32.gmra.mxu2 %v153_v11 }
 0x17e   :  { %v1368_v62 = vmul.f32 %v2490_v4, %v989_v57  ;;  %v514_v36 = vpop.f32.mrf.mxu0  ;;  %v156_v4 = vld [vmem:[%s3407_s2 + $0x428] sm:$0xff]  ;;  %v165_v57 = vld [vmem:[%s3407_s2 + $0x470] sm:$0xff] }
 0x17f   :  { %v669_v17 = vpop.f32.mrf.mxu1 }
 0x180   :  { %v1704_v28 = vadd.f32 %v1571_v29, %v1368_v62  ;;  %v670_v50 = vadd.f32 %v669_v17, %v508_v27  ;;  %1038 = vmatmul.f32.gmra.mxu3 %v154_v9  ;;  %1872 = vmatmul.msk.f32.gmra.mxu0 %vm265_vm0, %v260_v35  ;;  %v166_v62 = vld [vmem:[%s3407_s2 + $0x478] sm:$0xff]  ;;  %v1591_v17 = vpop.permute.xlu0 %1590 }
 0x181   :  { %v830_v40 = vpop.f32.mrf.mxu2 }
 0x182   :  { %v1752_v39 = vmax.f32 %v1704_v28, 0.0  ;;  %v831_v59 = vadd.f32 %v830_v40, %v670_v50  ;;  %716 = vmatmul.f32.gmra.mxu1 %v152_v48  ;;  %v164_v28 = vld [vmem:[%s3407_s2 + $0x468] sm:$0xff] }
 0x183   :  { %v991_v23 = vpop.f32.mrf.mxu3 }
 0x184   :  { %1801 = vst.msk [vmem:[%s3409_s6 + $0xd0] sm:$0xff] %vm1774_vm1, %v1752_v39  ;;  %v992_v60 = vadd.f32 %v991_v23, %v831_v59 }
 0x185   :  { %880 = vmatmul.f32.gmra.mxu2 %v156_v4 }
 0x186   :  { %v1369_v6 = vmul.f32 %v2629_v38, %v992_v60  ;;  %v517_v49 = vpop.f32.mrf.mxu0  ;;  %v159_v38 = vld [vmem:[%s3407_s2 + $0x440] sm:$0xff]  ;;  %v1596_v60 = vpop.permute.xlu1 %1595 }
 0x187   :  { %v672_v26 = vpop.f32.mrf.mxu1 }
 0x188   :  { %v1705_v54 = vadd.f32 %v1576_v14, %v1369_v6  ;;  %v673_v55 = vadd.f32 %v672_v26, %v511_v5  ;;  %1041 = vmatmul.f32.gmra.mxu3 %v157_v16  ;;  %1873 = vmatmul.msk.f32.gmra.mxu0 %vm265_vm0, %v261_v56 }
 0x189   :  { %v833_v58 = vpop.f32.mrf.mxu2 }
 0x18a   :  { %v1753_v25 = vmax.f32 %v1705_v54, 0.0  ;;  %v834_v2 = vadd.f32 %v833_v58, %v673_v55  ;;  %719 = vmatmul.f32.gmra.mxu1 %v155_v53 }
 0x18b   :  { %v994_v7 = vpop.f32.mrf.mxu3 }
 0x18c   :  { %1802 = vst.msk [vmem:[%s3409_s6 + $0xd8] sm:$0xff] %vm1774_vm1, %v1753_v25  ;;  %v995_v3 = vadd.f32 %v994_v7, %v834_v2  ;;  %v1601_v25 = vpop.permute.xlu2 %1600 }
 0x18d   :  { %883 = vmatmul.f32.gmra.mxu2 %v159_v38 }
 0x18e   :  { %v1370_v30 = vmul.f32 %v2627_v34, %v995_v3  ;;  %v520_v32 = vpop.f32.mrf.mxu0  ;;  %v162_v34 = vld [vmem:[%s3407_s2 + $0x458] sm:$0xff] }
 0x18f   :  { %v675_v10 = vpop.f32.mrf.mxu1 }
 0x190   :  { %v1706_v27 = vadd.f32 %v1581_v18, %v1370_v30  ;;  %v676_v43 = vadd.f32 %v675_v10, %v514_v36  ;;  %1044 = vmatmul.f32.gmra.mxu3 %v160_v46  ;;  %1874 = vmatmul.msk.f32.gmra.mxu0 %vm265_vm0, %v262_v19 }
 0x191   :  { %v836_v12 = vpop.f32.mrf.mxu2 }
 0x192   :  { %v1754_v15 = vmax.f32 %v1706_v27, 0.0  ;;  %v837_v41 = vadd.f32 %v836_v12, %v676_v43  ;;  %722 = vmatmul.f32.gmra.mxu1 %v158_v37  ;;  %v1606_v27 = vpop.permute.xlu0 %1605 }
 0x193   :  { %v997_v45 = vpop.f32.mrf.mxu3 }
 0x194   :  { %1803 = vst.msk [vmem:[%s3409_s6 + $0xe0] sm:$0xff] %vm1774_vm1, %v1754_v15  ;;  %v998_v47 = vadd.f32 %v997_v45, %v837_v41 }
 0x195   :  { %886 = vmatmul.f32.gmra.mxu2 %v162_v34 }
 0x196   :  { %v1371_v42 = vmul.f32 %v2518_v20, %v998_v47  ;;  %v523_v31 = vpop.f32.mrf.mxu0  ;;  %v3422_v47 = vld [vmem:[#allocation6_spill] sm:$0xff] }
 0x197   :  { %v678_v33 = vpop.f32.mrf.mxu1 }
 0x198   :  { %v1707_v61 = vadd.f32 %v1586_v51, %v1371_v42  ;;  %v679_v5 = vadd.f32 %v678_v33, %v517_v49  ;;  %1047 = vmatmul.f32.gmra.mxu3 %v163_v22  ;;  %v1611_v42 = vpop.permute.xlu1 %1610 }
 0x199   :  { %v839_v24 = vpop.f32.mrf.mxu2 }
 0x19a   :  { %v1755_v11 = vmax.f32 %v1707_v61, 0.0  ;;  %v840_v8 = vadd.f32 %v839_v24, %v679_v5  ;;  %725 = vmatmul.f32.gmra.mxu1 %v161_v21 }
 0x19b   :  { %v1000_v9 = vpop.f32.mrf.mxu3 }
 0x19c   :  { %1804 = vst.msk [vmem:[%s3409_s6 + $0xe8] sm:$0xff] %vm1774_vm1, %v1755_v11  ;;  %v1001_v20 = vadd.f32 %v1000_v9, %v840_v8  ;;  %v3423_v8 = vld [vmem:[#allocation2_spill] sm:$0xff]  ;;  %v1616_v9 = vpop.permute.xlu2 %1615 }
 0x19d   :  { %889 = vmatmul.f32.gmra.mxu2 %v165_v57 }
 0x19e   :  { %v1372_v29 = vmul.f32 %v2665_v0, %v1001_v20  ;;  %v526_v36 = vpop.f32.mrf.mxu0 }
 0x19f   :  { %v681_v48 = vpop.f32.mrf.mxu1 }
 0x1a0   :  { %v1708_v50 = vadd.f32 %v1591_v17, %v1372_v29  ;;  %v682_v35 = vadd.f32 %v681_v48, %v520_v32  ;;  %1050 = vmatmul.f32.gmra.mxu3 %v166_v62 }
 0x1a1   :  { %v842_v40 = vpop.f32.mrf.mxu2 }
 0x1a2   :  { %v1756_v39 = vmax.f32 %v1708_v50, 0.0  ;;  %v843_v59 = vadd.f32 %v842_v40, %v682_v35  ;;  %728 = vmatmul.f32.gmra.mxu1 %v164_v28 }
 0x1a3   :  { %v1003_v4 = vpop.f32.mrf.mxu3 }
 0x1a4   :  { %1805 = vst.msk [vmem:[%s3409_s6 + $0xf0] sm:$0xff] %vm1774_vm1, %v1756_v39  ;;  %v1004_v0 = vadd.f32 %v1003_v4, %v843_v59  ;;  %v1621_v59 = vpop.permute.xlu0 %1620 }
 0x1a6   :  { %v1373_v23 = vmul.f32 %v2663_v63, %v1004_v0  ;;  %v529_v53 = vpop.f32.mrf.mxu0 }
 0x1a7   :  { %v684_v16 = vpop.f32.mrf.mxu1 }
 0x1a8   :  { %v1709_v6 = vadd.f32 %v1596_v60, %v1373_v23  ;;  %v685_v14 = vadd.f32 %v684_v16, %v523_v31 }
 0x1a9   :  { %v845_v26 = vpop.f32.mrf.mxu2 }
 0x1aa   :  { %v1757_v54 = vmax.f32 %v1709_v6, 0.0  ;;  %v846_v55 = vadd.f32 %v845_v26, %v685_v14 }
 0x1ab   :  { %v1006_v56 = vpop.f32.mrf.mxu3 }
 0x1ac   :  { %1806 = vst.msk [vmem:[%s3409_s6 + $0xf8] sm:$0xff] %vm1774_vm1, %v1757_v54  ;;  %v1007_v58 = vadd.f32 %v1006_v56, %v846_v55  ;;  %v3425_v54 = vld [vmem:[#allocation8_spill] sm:$0xff]  ;;  %v1626_v56 = vpop.permute.xlu1 %1625 }
 0x1ae   :  { %v1374_v49 = vmul.f32 %v2551_v44, %v1007_v58  ;;  %v532_v3 = vpop.f32.mrf.mxu0 }
 0x1af   :  { %v687_v2 = vpop.f32.mrf.mxu1 }
 0x1b0   :  { %v1710_v63 = vadd.f32 %v1601_v25, %v1374_v49  ;;  %v688_v38 = vadd.f32 %v687_v2, %v526_v36  ;;  %v3424_v36 = vld [vmem:[#allocation9_spill] sm:$0xff] }
 0x1b1   :  { %v848_v7 = vpop.f32.mrf.mxu2 }
 0x1b2   :  { %v1758_v46 = vmax.f32 %v1710_v63, 0.0  ;;  %v849_v30 = vadd.f32 %v848_v7, %v688_v38 }
 0x1b3   :  { %v1009_v18 = vpop.f32.mrf.mxu3 }
 0x1b4   :  { %1807 = vst.msk [vmem:[%s3409_s6 + $0x100] sm:$0xff] %vm1774_vm1, %v1758_v46  ;;  %v1010_v10 = vadd.f32 %v1009_v18, %v849_v30  ;;  %v3426_v30 = vld [vmem:[#allocation3_spill] sm:$0xff] }
 0x1b6   :  { %v1375_v37 = vmul.f32 %v2699_v52, %v1010_v10  ;;  %v535_v32 = vpop.f32.mrf.mxu0  ;;  %v1631_v10 = vpop.permute.xlu2 %1630 }
 0x1b7   :  { %v690_v43 = vpop.f32.mrf.mxu1 }
 0x1b8   :  { %v1711_v44 = vadd.f32 %v1606_v27, %v1375_v37  ;;  %v691_v19 = vadd.f32 %v690_v43, %v529_v53 }
 0x1b9   :  { %v851_v12 = vpop.f32.mrf.mxu2 }
 0x1ba   :  { %v1759_v15 = vmax.f32 %v1711_v44, 0.0  ;;  %v852_v41 = vadd.f32 %v851_v12, %v691_v19 }
 0x1bb   :  { %v1012_v34 = vpop.f32.mrf.mxu3 }
 0x1bc   :  { %1808 = vst.msk [vmem:[%s3409_s6 + $0x108] sm:$0xff] %vm1774_vm1, %v1759_v15  ;;  %v1013_v45 = vadd.f32 %v1012_v34, %v852_v41  ;;  %v3427_v34 = vld [vmem:[#allocation11_spill] sm:$0xff] }
 0x1be   :  { %v1376_v22 = vmul.f32 %v3422_v47, %v1013_v45  ;;  %v538_v61 = vpop.f32.mrf.mxu0  ;;  %v1636_v47 = vpop.permute.xlu0 %1635 }
 0x1bf   :  { %v693_v51 = vpop.f32.mrf.mxu1 }
 0x1c0   :  { %v1712_v52 = vadd.f32 %v1611_v42, %v1376_v22  ;;  %v694_v33 = vadd.f32 %v693_v51, %v532_v3 }
 0x1c1   :  { %v854_v21 = vpop.f32.mrf.mxu2 }
 0x1c2   :  { %v1760_v5 = vmax.f32 %v1712_v52, 0.0  ;;  %v855_v24 = vadd.f32 %v854_v21, %v694_v33 }
 0x1c3   :  { %v1015_v31 = vpop.f32.mrf.mxu3 }
 0x1c4   :  { %1809 = vst.msk [vmem:[%s3409_s6 + $0x110] sm:$0xff] %vm1774_vm1, %v1760_v5  ;;  %v1016_v11 = vadd.f32 %v1015_v31, %v855_v24  ;;  %v3428_v31 = vld [vmem:[#allocation10_spill] sm:$0xff] }
 0x1c6   :  { %v1377_v57 = vmul.f32 %v3423_v8, %v1016_v11  ;;  %v541_v48 = vpop.f32.mrf.mxu0  ;;  %v1641_v8 = vpop.permute.xlu1 %1640 }
 0x1c7   :  { %v696_v20 = vpop.f32.mrf.mxu1 }
 0x1c8   :  { %v1713_v62 = vadd.f32 %v1616_v9, %v1377_v57  ;;  %v697_v29 = vadd.f32 %v696_v20, %v535_v32 }
 0x1c9   :  { %v857_v17 = vpop.f32.mrf.mxu2 }
 0x1ca   :  { %v1761_v28 = vmax.f32 %v1713_v62, 0.0  ;;  %v858_v50 = vadd.f32 %v857_v17, %v697_v29 }
 0x1cb   :  { %v1018_v35 = vpop.f32.mrf.mxu3 }
 0x1cc   :  { %1810 = vst.msk [vmem:[%s3409_s6 + $0x118] sm:$0xff] %vm1774_vm1, %v1761_v28  ;;  %v1019_v40 = vadd.f32 %v1018_v35, %v858_v50  ;;  %v3429_v35 = vld [vmem:[#allocation4_spill] sm:$0xff] }
 0x1ce   :  { %v1378_v39 = vmul.f32 %v3424_v36, %v1019_v40  ;;  %v544_v16 = vpop.f32.mrf.mxu0  ;;  %v1646_v36 = vpop.permute.xlu2 %1645 }
 0x1cf   :  { %v699_v4 = vpop.f32.mrf.mxu1 }
 0x1d0   :  { %v1714_v0 = vadd.f32 %v1621_v59, %v1378_v39  ;;  %v700_v23 = vadd.f32 %v699_v4, %v538_v61 }
 0x1d1   :  { %v860_v60 = vpop.f32.mrf.mxu2 }
 0x1d2   :  { %v1762_v6 = vmax.f32 %v1714_v0, 0.0  ;;  %v861_v14 = vadd.f32 %v860_v60, %v700_v23 }
 0x1d3   :  { %v1021_v26 = vpop.f32.mrf.mxu3 }
 0x1d4   :  { %1811 = vst.msk [vmem:[%s3409_s6 + $0x120] sm:$0xff] %vm1774_vm1, %v1762_v6  ;;  %v1022_v53 = vadd.f32 %v1021_v26, %v861_v14  ;;  %v1651_v14 = vpop.permute.xlu0 %1650 }
 0x1d6   :  { %v1379_v55 = vmul.f32 %v3425_v54, %v1022_v53  ;;  %v547_v63 = vpop.f32.mrf.mxu0 }
 0x1d7   :  { %v702_v58 = vpop.f32.mrf.mxu1 }
 0x1d8   :  { %v1715_v49 = vadd.f32 %v1626_v56, %v1379_v55  ;;  %v703_v25 = vadd.f32 %v702_v58, %v541_v48 }
 0x1d9   :  { %v863_v2 = vpop.f32.mrf.mxu2 }
 0x1da   :  { %v1763_v38 = vmax.f32 %v1715_v49, 0.0  ;;  %v864_v7 = vadd.f32 %v863_v2, %v703_v25 }
 0x1db   :  { %v1024_v3 = vpop.f32.mrf.mxu3 }
 0x1dc   :  { %1812 = vst.msk [vmem:[%s3409_s6 + $0x128] sm:$0xff] %vm1774_vm1, %v1763_v38  ;;  %v1025_v46 = vadd.f32 %v1024_v3, %v864_v7  ;;  %v3430_v38 = vld [vmem:[#allocation12_spill] sm:$0xff]  ;;  %v1656_v3 = vpop.permute.xlu1 %1655 }
 0x1de   :  { %v1380_v18 = vmul.f32 %v3426_v30, %v1025_v46  ;;  %v550_v19 = vpop.f32.mrf.mxu0 }
 0x1df   :  { %v705_v37 = vpop.f32.mrf.mxu1 }
 0x1e0   :  { %v1716_v27 = vadd.f32 %v1631_v10, %v1380_v18  ;;  %v706_v43 = vadd.f32 %v705_v37, %v544_v16 }
 0x1e1   :  { %v866_v44 = vpop.f32.mrf.mxu2 }
 0x1e2   :  { %v1764_v12 = vmax.f32 %v1716_v27, 0.0  ;;  %v867_v32 = vadd.f32 %v866_v44, %v706_v43 }
 0x1e3   :  { %v1027_v15 = vpop.f32.mrf.mxu3 }
 0x1e4   :  { %1813 = vst.msk [vmem:[%s3409_s6 + $0x130] sm:$0xff] %vm1774_vm1, %v1764_v12  ;;  %v1028_v41 = vadd.f32 %v1027_v15, %v867_v32  ;;  %v1661_v32 = vpop.permute.xlu2 %1660 }
 0x1e6   :  { %v1381_v45 = vmul.f32 %v3427_v34, %v1028_v41  ;;  %v553_v5 = vpop.f32.mrf.mxu0 }
 0x1e7   :  { %v708_v22 = vpop.f32.mrf.mxu1 }
 0x1e8   :  { %v1717_v42 = vadd.f32 %v1636_v47, %v1381_v45  ;;  %v709_v51 = vadd.f32 %v708_v22, %v547_v63 }
 0x1e9   :  { %v869_v52 = vpop.f32.mrf.mxu2 }
 0x1ea   :  { %v1765_v33 = vmax.f32 %v1717_v42, 0.0  ;;  %v870_v21 = vadd.f32 %v869_v52, %v709_v51 }
 0x1eb   :  { %v1030_v61 = vpop.f32.mrf.mxu3 }
 0x1ec   :  { %1814 = vst.msk [vmem:[%s3409_s6 + $0x138] sm:$0xff] %vm1774_vm1, %v1765_v33  ;;  %v1031_v24 = vadd.f32 %v1030_v61, %v870_v21  ;;  %v1666_v21 = vpop.permute.xlu0 %1665 }
 0x1ee   :  { %v1382_v11 = vmul.f32 %v3428_v31, %v1031_v24  ;;  %v556_v50 = vpop.f32.mrf.mxu0 }
 0x1ef   :  { %v711_v57 = vpop.f32.mrf.mxu1 }
 0x1f0   :  { %v1718_v9 = vadd.f32 %v1641_v8, %v1382_v11  ;;  %v712_v20 = vadd.f32 %v711_v57, %v550_v19  ;;  %v3431_v19 = vld [vmem:[#allocation5_spill] sm:$0xff] }
 0x1f1   :  { %v872_v62 = vpop.f32.mrf.mxu2 }
 0x1f2   :  { %v1766_v29 = vmax.f32 %v1718_v9, 0.0  ;;  %v873_v17 = vadd.f32 %v872_v62, %v712_v20  ;;  %v3432_v62 = vld [vmem:[#allocation13_spill] sm:$0xff] }
 0x1f3   :  { %v1033_v48 = vpop.f32.mrf.mxu3 }
 0x1f4   :  { %1815 = vst.msk [vmem:[%s3409_s6 + $0x140] sm:$0xff] %vm1774_vm1, %v1766_v29  ;;  %v1034_v28 = vadd.f32 %v1033_v48, %v873_v17  ;;  %v1671_v17 = vpop.permute.xlu1 %1670 }
 0x1f6   :  { %v1383_v40 = vmul.f32 %v3429_v35, %v1034_v28  ;;  %v559_v54 = vpop.f32.mrf.mxu0 }
 0x1f7   :  { %v714_v39 = vpop.f32.mrf.mxu1 }
 0x1f8   :  { %v1719_v59 = vadd.f32 %v1646_v36, %v1383_v40  ;;  %v715_v4 = vadd.f32 %v714_v39, %v553_v5 }
 0x1f9   :  { %v875_v0 = vpop.f32.mrf.mxu2 }
 0x1fa   :  { %v1767_v23 = vmax.f32 %v1719_v59, 0.0  ;;  %v876_v60 = vadd.f32 %v875_v0, %v715_v4  ;;  %v3433_v59 = vld [vmem:[#allocation7_spill] sm:$0xff]  ;;  %v1676_v0 = vpop.permute.xlu2 %1675 }
 0x1fb   :  { %v1036_v16 = vpop.f32.mrf.mxu3 }
 0x1fc   :  { %1816 = vst.msk [vmem:[%s3409_s6 + $0x148] sm:$0xff] %vm1774_vm1, %v1767_v23  ;;  %v1037_v6 = vadd.f32 %v1036_v16, %v876_v60 }
 0x1fe   :  { %v1384_v26 = vmul.f32 %v2806_v13, %v1037_v6  ;;  %v562_v10 = vpop.f32.mrf.mxu0 }
 0x1ff   :  { %v717_v53 = vpop.f32.mrf.mxu1 }
 0x200   :  { %v1720_v55 = vadd.f32 %v1651_v14, %v1384_v26  ;;  %v718_v56 = vadd.f32 %v717_v53, %v556_v50 }
 0x201   :  { %v878_v58 = vpop.f32.mrf.mxu2 }
 0x202   :  { %v1768_v49 = vmax.f32 %v1720_v55, 0.0  ;;  %v879_v25 = vadd.f32 %v878_v58, %v718_v56 }
 0x203   :  { %v1039_v2 = vpop.f32.mrf.mxu3 }
 0x204   :  { %1817 = vst.msk [vmem:[%s3409_s6 + $0x150] sm:$0xff] %vm1774_vm1, %v1768_v49  ;;  %v1040_v63 = vadd.f32 %v1039_v2, %v879_v25 }
 0x206   :  { %v1385_v7 = vmul.f32 %v3430_v38, %v1040_v63  ;;  %v565_v51 = vpop.f32.mrf.mxu0 }
 0x207   :  { %v720_v46 = vpop.f32.mrf.mxu1 }
 0x208   :  { %v1721_v30 = vadd.f32 %v1656_v3, %v1385_v7  ;;  %v721_v13 = vadd.f32 %v720_v46, %v559_v54 }
 0x209   :  { %v881_v18 = vpop.f32.mrf.mxu2 }
 0x20a   :  { %v1769_v37 = vmax.f32 %v1721_v30, 0.0  ;;  %v882_v27 = vadd.f32 %v881_v18, %v721_v13 }
 0x20b   :  { %v1042_v43 = vpop.f32.mrf.mxu3 }
 0x20c   :  { %1818 = vst.msk [vmem:[%s3409_s6 + $0x158] sm:$0xff] %vm1774_vm1, %v1769_v37  ;;  %v1043_v44 = vadd.f32 %v1042_v43, %v882_v27 }
 0x20e   :  { %v1386_v12 = vmul.f32 %v3431_v19, %v1043_v44  ;;  %v568_v20 = vpop.f32.mrf.mxu0 }
 0x20f   :  { %v723_v15 = vpop.f32.mrf.mxu1 }
 0x210   :  { %v1722_v41 = vadd.f32 %v1661_v32, %v1386_v12  ;;  %v724_v34 = vadd.f32 %v723_v15, %v562_v10 }
 0x211   :  { %v884_v45 = vpop.f32.mrf.mxu2 }
 0x212   :  { %v1770_v47 = vmax.f32 %v1722_v41, 0.0  ;;  %v885_v22 = vadd.f32 %v884_v45, %v724_v34 }
 0x213   :  { %v1045_v42 = vpop.f32.mrf.mxu3 }
 0x214   :  { %1819 = vst.msk [vmem:[%s3409_s6 + $0x160] sm:$0xff] %vm1774_vm1, %v1770_v47  ;;  %v1046_v52 = vadd.f32 %v1045_v42, %v885_v22 }
 0x216   :  { %v1387_v33 = vmul.f32 %v2841_v1, %v1046_v52 }
 0x217   :  { %v726_v61 = vpop.f32.mrf.mxu1 }
 0x218   :  { %v1723_v5 = vadd.f32 %v1666_v21, %v1387_v33  ;;  %v727_v24 = vadd.f32 %v726_v61, %v565_v51 }
 0x219   :  { %v887_v31 = vpop.f32.mrf.mxu2 }
 0x21a   :  { %v1771_v11 = vmax.f32 %v1723_v5, 0.0  ;;  %v888_v8 = vadd.f32 %v887_v31, %v727_v24 }
 0x21b   :  { %v1048_v57 = vpop.f32.mrf.mxu3 }
 0x21c   :  { %1820 = vst.msk [vmem:[%s3409_s6 + $0x168] sm:$0xff] %vm1774_vm1, %v1771_v11  ;;  %v1049_v9 = vadd.f32 %v1048_v57, %v888_v8 }
 0x21e   :  { %v1388_v29 = vmul.f32 %v3432_v62, %v1049_v9 }
 0x21f   :  { %v729_v48 = vpop.f32.mrf.mxu1 }
 0x220   :  { %v1724_v1 = vadd.f32 %v1671_v17, %v1388_v29  ;;  %v730_v28 = vadd.f32 %v729_v48, %v568_v20 }
 0x221   :  { %v890_v50 = vpop.f32.mrf.mxu2 }
 0x222   :  { %v1772_v35 = vmax.f32 %v1724_v1, 0.0  ;;  %v891_v40 = vadd.f32 %v890_v50, %v730_v28 }
 0x223   :  { %v1051_v36 = vpop.f32.mrf.mxu3 }
 0x224   :  { %1821 = vst.msk [vmem:[%s3409_s6 + $0x170] sm:$0xff] %vm1774_vm1, %v1772_v35  ;;  %v1052_v39 = vadd.f32 %v1051_v36, %v891_v40 }
 0x226   :  { %v1389_v4 = vmul.f32 %v3433_v59, %v1052_v39 }
 0x228   :  { %v1725_v23 = vadd.f32 %v1676_v0, %v1389_v4 }
 0x22a   :  { %v1773_v60 = vmax.f32 %v1725_v23, 0.0 }
 0x22c   :  { %1822 = vst.msk [vmem:[%s3409_s6 + $0x178] sm:$0xff] %vm1774_vm1, %v1773_v60 }

// kernel: your_network_forward.25
= control target key start
LH: loop header
LB: loop body
LE: loop exit
PB: predicated region body
PF: predicated region fallthrough
CT: control target
= control target key end

     0   :  { %vm19_vm0 = vcmask 64512   ;;  %v67_v0 = vmov 0   ;;  %vm58_vm1 = vcmask 261120   ;;  %s108_s2 = inlined_call_operand.vmem [shape: f32[8,1], index: 2, kind: input, shape index: {}]   ;;  %s109_s0 = inlined_call_operand.vmem [shape: f32[8,32], index: 0, kind: input, shape index: {}]   ;;  %s110_s1 = inlined_call_operand.vmem [shape: f32[8,8], index: 1, kind: input, shape index: {}]   ;;  %s111_s3 = inlined_call_operand.vmem [shape: f32[8,1], index: 3, kind: input, shape index: {}]   ;;  %s112_s4 = inlined_call_operand.vmem [shape: f32[8,32], index: 4, kind: output, shape index: {}]  }
   0x1   :  { %66 = vset.pattern.permute.xlu0 %v67_v0  ;;  %v43_v1 = vld [vmem:[%s108_s2] sm:$0xff] }
   0x2   :  { %v18_v2 = vld [vmem:[%s109_s0] sm:$0xff]  ;;  %46 = vperm.xlu0 %66, %v43_v1  }
   0x3   :  { %v17_v3 = vld [vmem:[%s110_s1] sm:$0xff]  ;;  %38 = vmatpush.msra.mxu0 %v18_v2 }
   0x4   :  { %64 = vmatmul.msk.f32.vlgmr.msra.gmra.mxu0 %vm19_vm0, %v17_v3  ;;  %v50_v4 = vld [vmem:[%s111_s3] sm:$0xff] }
   0xa   :  { %53 = vperm.xlu0 %66, %v50_v4  }
  0x74   :  { %v47_v5 = vpop.permute.xlu0 %46 }
  0x7c   :  { %v54_v8 = vpop.permute.xlu0 %53 }
  0x81   :  { %v40_v6 = vpop.f32.mrf.mxu0 }
  0x82   :  { %v49_v7 = vmul.f32 %v47_v5, %v40_v6 }
  0x84   :  { %v56_v9 = vadd.f32 %v54_v8, %v49_v7 }
  0x86   :  { %v57_v10 = vmax.f32 %v56_v9, 0.0 }
  0x88   :  { %59 = vst.msk [vmem:[%s112_s4] sm:$0xff] %vm58_vm1, %v57_v10 }

// kernel: your_network_forward.26
= control target key start
LH: loop header
LB: loop body
LE: loop exit
PB: predicated region body
PF: predicated region fallthrough
CT: control target
= control target key end

     0   :  { %vm27_vm0 = vcmask 1043456   ;;  %v98_v0 = vmov 0   ;;  %vm20_vm1 = vcmask 31744   ;;  %vm84_vm2 = vcmask 261120   ;;  %s151_s3 = inlined_call_operand.vmem [shape: f32[16,1], index: 3, kind: input, shape index: {}]   ;;  %s152_s2 = inlined_call_operand.vmem [shape: f32[16,1], index: 2, kind: input, shape index: {}]   ;;  %s153_s0 = inlined_call_operand.vmem [shape: f32[4,32], index: 0, kind: input, shape index: {}]   ;;  %s154_s1 = inlined_call_operand.vmem [shape: f32[16,4], index: 1, kind: input, shape index: {}]   ;;  %s155_s4 = inlined_call_operand.vmem [shape: f32[16,32], index: 4, kind: output, shape index: {}]  }
   0x1   :  { %97 = vset.pattern.permute.xlu1 %v98_v0  ;;  %96 = vset.pattern.permute.xlu0 %v98_v0  ;;  %v68_v1 = vld [vmem:[%s151_s3] sm:$0xff]  ;;  %v18_v5 = vld [vmem:[%s154_s1 + $0x8] sm:$0xff] }
   0x2   :  { %v54_v2 = vld [vmem:[%s152_s2] sm:$0xff]  ;;  %72 = vperm.xlu1 %97, %v68_v1   ;;  %v69_v6 = vld [vmem:[%s151_s3 + $0x8] sm:$0xff] }
   0x3   :  { %v19_v3 = vld [vmem:[%s153_s0] sm:$0xf]  ;;  %58 = vperm.xlu0 %96, %v54_v2   ;;  %v55_v7 = vld [vmem:[%s152_s2 + $0x8] sm:$0xff] }
   0x4   :  { %v17_v4 = vld [vmem:[%s154_s1] sm:$0xff]  ;;  %91 = vmatpush.msk.msra.mxu0 %vm27_vm0, %v19_v3  ;;  %94 = vmatpush.msk.msra.mxu1 %vm27_vm0, %v19_v3 }
   0x5   :  { %92 = vmatmul.msk.f32.vlgmr.msra.gmra.mxu0 %vm20_vm1, %v17_v4  ;;  %93 = vmatmul.msk.f32.vlgmr.msra.gmra.mxu1 %vm20_vm1, %v18_v5 }
   0xa   :  { %77 = vperm.xlu1 %97, %v69_v6  }
   0xb   :  { %63 = vperm.xlu0 %96, %v55_v7  }
  0x74   :  { %v73_v9 = vpop.permute.xlu1 %72 }
  0x75   :  { %v59_v8 = vpop.permute.xlu0 %58 }
  0x7c   :  { %v78_v15 = vpop.permute.xlu1 %77 }
  0x7d   :  { %v64_v10 = vpop.permute.xlu0 %63 }
  0x82   :  { %v48_v11 = vpop.f32.mrf.mxu0  ;;  %v51_v12 = vpop.f32.mrf.mxu1 }
  0x83   :  { %v66_v13 = vmul.f32 %v59_v8, %v48_v11  ;;  %v67_v14 = vmul.f32 %v64_v10, %v51_v12 }
  0x85   :  { %v80_v16 = vadd.f32 %v73_v9, %v66_v13  ;;  %v81_v17 = vadd.f32 %v78_v15, %v67_v14 }
  0x87   :  { %v82_v18 = vmax.f32 %v80_v16, 0.0  ;;  %v83_v19 = vmax.f32 %v81_v17, 0.0 }
  0x89   :  { %85 = vst.msk [vmem:[%s155_s4] sm:$0xff] %vm84_vm2, %v82_v18 }
  0x8a   :  { %86 = vst.msk [vmem:[%s155_s4 + $0x8] sm:$0xff] %vm84_vm2, %v83_v19 }

// kernel: your_network_forward.20
= control target key start
LH: loop header
LB: loop body
LE: loop exit
PB: predicated region body
PF: predicated region fallthrough
CT: control target
= control target key end

     0   :  { %vm23_vm0 = vcmask 1042432   ;;  %vm19_vm1 = vcmask 23552   ;;  %v71_v0 = vmov 0   ;;  %s112_s2 = inlined_call_operand.vmem [shape: f32[4,1], index: 2, kind: input, shape index: {}]   ;;  %s113_s0 = inlined_call_operand.vmem [shape: f32[3,128], index: 0, kind: input, shape index: {}]   ;;  %s114_s1 = inlined_call_operand.vmem [shape: f32[4,3], index: 1, kind: input, shape index: {}]   ;;  %s115_s3 = inlined_call_operand.vmem [shape: f32[4,1], index: 3, kind: input, shape index: {}]   ;;  %s116_s4 = inlined_call_operand.vmem [shape: f32[4,128], index: 4, kind: output, shape index: {}]  }
   0x1   :  { %70 = vset.pattern.permute.xlu0 %v71_v0  ;;  %v47_v1 = vld [vmem:[%s112_s2] sm:$0xf] }
   0x2   :  { %v18_v2 = vld [vmem:[%s113_s0] sm:$0x7]  ;;  %50 = vperm.xlu0 %70, %v47_v1  }
   0x3   :  { %v17_v3 = vld [vmem:[%s114_s1] sm:$0xf]  ;;  %67 = vmatpush.msk.msra.mxu0 %vm23_vm0, %v18_v2 }
   0x4   :  { %68 = vmatmul.msk.f32.vlgmr.msra.gmra.mxu0 %vm19_vm1, %v17_v3  ;;  %v54_v4 = vld [vmem:[%s115_s3] sm:$0xf] }
   0xa   :  { %57 = vperm.xlu0 %70, %v54_v4  }
  0x74   :  { %v51_v5 = vpop.permute.xlu0 %50 }
  0x7c   :  { %v58_v8 = vpop.permute.xlu0 %57 }
  0x81   :  { %v44_v6 = vpop.f32.mrf.mxu0 }
  0x82   :  { %v53_v7 = vmul.f32 %v51_v5, %v44_v6 }
  0x84   :  { %v60_v9 = vadd.f32 %v58_v8, %v53_v7 }
  0x86   :  { %v61_v10 = vmax.f32 %v60_v9, 0.0 }
  0x88   :  { %62 = vst [vmem:[%s116_s4] sm:$0xf] %v61_v10 }

// kernel: your_network_forward.27
= control target key start
LH: loop header
LB: loop body
LE: loop exit
PB: predicated region body
PF: predicated region fallthrough
CT: control target
= control target key end

     0   :  { %v1001_v0 = vmov 0   ;;  %vm121_vm0 = vcmask 130048   ;;  %vm283_vm1 = vcmask 523264   ;;  %vm894_vm2 = vcmask 261120   ;;  %s1786_s4 = inlined_call_operand.vmem [shape: f32[192,1], index: 4, kind: input, shape index: {}]   ;;  %s1787_s1 = inlined_call_operand.vmem [shape: f32[16,32], index: 1, kind: input, shape index: {}]   ;;  %s1788_s0 = inlined_call_operand.vmem [shape: f32[192,32], index: 0, kind: input, shape index: {}]   ;;  %s1789_s3 = inlined_call_operand.vmem [shape: f32[192,16], index: 3, kind: input, shape index: {}]   ;;  %s1790_s2 = inlined_call_operand.vmem [shape: f32[192,192], index: 2, kind: input, shape index: {}]   ;;  %s1791_s5 = inlined_call_operand.vmem [shape: f32[192,1], index: 5, kind: input, shape index: {}]   ;;  %s1792_s6 = inlined_call_operand.vmem [shape: f32[192,32], index: 6, kind: output, shape index: {}]  }
   0x1   :  { %1000 = vset.pattern.permute.xlu2 %v1001_v0  ;;  %999 = vset.pattern.permute.xlu1 %v1001_v0  ;;  %v538_v1 = vld [vmem:[%s1786_s4 + $0x20] sm:$0xff]  ;;  %v536_v2 = vld [vmem:[%s1786_s4 + $0x10] sm:$0xff]  ;;  %v120_v4 = vld [vmem:[%s1787_s1 + $0x8] sm:$0xff] }
   0x2   :  { %v534_v3 = vld [vmem:[%s1786_s4] sm:$0xff]  ;;  %998 = vset.pattern.permute.xlu0 %v1001_v0  ;;  %580 = vperm.xlu2 %1000, %v538_v1   ;;  %v86_v5 = vld [vmem:[%s1788_s0 + $0x78] sm:$0xff]  ;;  %v85_v8 = vld [vmem:[%s1788_s0 + $0x70] sm:$0xff] }
   0x3   :  { %v1055_v6 = vld [vmem:[%s1788_s0 + $0xb8] sm:$0xff]  ;;  %570 = vperm.xlu1 %999, %v536_v2   ;;  %560 = vperm.xlu0 %998, %v534_v3   ;;  %v119_v7 = vld [vmem:[%s1787_s1] sm:$0xff]  ;;  %v1066_v9 = vld [vmem:[%s1788_s0 + $0xb0] sm:$0xff] }
   0x4   :  { %208 = vmatpush.msra.mxu0 %v120_v4  ;;  %971 = vmatpush.msra.mxu3 %v120_v4  ;;  %v95_v10 = vld [vmem:[%s1789_s3] sm:$0xff]  ;;  %v84_v12 = vld [vmem:[%s1788_s0 + $0x68] sm:$0xff]  ;;  %v537_v17 = vld [vmem:[%s1786_s4 + $0x18] sm:$0xff] }
   0x5   :  { %356 = vmatpush.msra.mxu1 %v86_v5  ;;  %453 = vmatpush.msra.mxu2 %v1055_v6  ;;  %v115_v11 = vld [vmem:[%s1789_s3 + $0xa0] sm:$0xff]  ;;  %v1082_v13 = vld [vmem:[%s1788_s0 + $0xa8] sm:$0xff]  ;;  %v82_v19 = vld [vmem:[%s1788_s0 + $0x58] sm:$0xff] }
   0x6   :  { %209 = vmatpush.msra.mxu0 %v119_v7  ;;  %972 = vmatpush.msra.mxu3 %v119_v7  ;;  %v539_v14 = vld [vmem:[%s1786_s4 + $0x28] sm:$0xff]  ;;  %v83_v15 = vld [vmem:[%s1788_s0 + $0x60] sm:$0xff]  ;;  %v1110_v20 = vld [vmem:[%s1788_s0 + $0x98] sm:$0xff] }
   0x7   :  { %357 = vmatpush.msra.mxu1 %v85_v8  ;;  %454 = vmatpush.msra.mxu2 %v1066_v9  ;;  %v1095_v16 = vld [vmem:[%s1788_s0 + $0xa0] sm:$0xff]  ;;  %v535_v18 = vld [vmem:[%s1786_s4 + $0x8] sm:$0xff]  ;;  %v81_v21 = vld [vmem:[%s1788_s0 + $0x50] sm:$0xff] }
   0x8   :  { %923 = vmatmul.msk.f32.vlgmr.msra.gmra.mxu0 %vm121_vm0, %v95_v10  ;;  %943 = vmatmul.msk.f32.vlgmr.msra.gmra.mxu3 %vm121_vm0, %v115_v11  ;;  %v1119_v22 = vld [vmem:[%s1788_s0 + $0x90] sm:$0xff]  ;;  %v96_v23 = vld [vmem:[%s1789_s3 + $0x8] sm:$0xff]  ;;  %v542_v27 = vld [vmem:[%s1786_s4 + $0x40] sm:$0xff] }
   0x9   :  { %973 = vmatpush.msrb.mxu3 %v86_v5  ;;  %358 = vmatpush.msra.mxu1 %v84_v12  ;;  %v116_v24 = vld [vmem:[%s1789_s3 + $0xa8] sm:$0xff]  ;;  %v79_v28 = vld [vmem:[%s1788_s0 + $0x40] sm:$0xff]  ;;  %v541_v30 = vld [vmem:[%s1786_s4 + $0x38] sm:$0xff] }
   0xa   :  { %455 = vmatpush.msra.mxu2 %v1082_v13  ;;  %585 = vperm.xlu2 %1000, %v539_v14   ;;  %v80_v25 = vld [vmem:[%s1788_s0 + $0x48] sm:$0xff]  ;;  %v1148_v29 = vld [vmem:[%s1788_s0 + $0x80] sm:$0xff]  ;;  %v540_v32 = vld [vmem:[%s1786_s4 + $0x30] sm:$0xff] }
   0xb   :  { %974 = vmatpush.msrb.mxu3 %v85_v8  ;;  %359 = vmatpush.msra.mxu1 %v83_v15  ;;  %v1135_v26 = vld [vmem:[%s1788_s0 + $0x88] sm:$0xff]  ;;  %v78_v33 = vld [vmem:[%s1788_s0 + $0x38] sm:$0xff]  ;;  %v77_v34 = vld [vmem:[%s1788_s0 + $0x30] sm:$0xff] }
   0xc   :  { %456 = vmatpush.msra.mxu2 %v1095_v16  ;;  %575 = vperm.xlu1 %999, %v537_v17   ;;  %v24_v31 = vld [vmem:[%s1790_s2 + $0x8] sm:$0xff]  ;;  %v97_v35 = vld [vmem:[%s1789_s3 + $0x10] sm:$0xff]  ;;  %v545_v38 = vld [vmem:[%s1786_s4 + $0x58] sm:$0xff] }
   0xd   :  { %565 = vperm.xlu0 %998, %v535_v18   ;;  %975 = vmatpush.msrb.mxu3 %v84_v12  ;;  %v117_v36 = vld [vmem:[%s1789_s3 + $0xb0] sm:$0xff]  ;;  %v76_v37 = vld [vmem:[%s1788_s0 + $0x28] sm:$0xff]  ;;  %v75_v39 = vld [vmem:[%s1788_s0 + $0x20] sm:$0xff] }
   0xe   :  { %360 = vmatpush.msra.mxu1 %v82_v19  ;;  %457 = vmatpush.msra.mxu2 %v1110_v20  ;;  %v26_v40 = vld [vmem:[%s1790_s2 + $0x18] sm:$0xff]  ;;  %v544_v41 = vld [vmem:[%s1786_s4 + $0x50] sm:$0xff]  ;;  %v543_v42 = vld [vmem:[%s1786_s4 + $0x48] sm:$0xff] }
   0xf   :  { %976 = vmatpush.msrb.mxu3 %v83_v15  ;;  %v74_v43 = vld [vmem:[%s1788_s0 + $0x18] sm:$0xff]  ;;  %v73_v44 = vld [vmem:[%s1788_s0 + $0x10] sm:$0xff]  ;;  %v72_v47 = vld [vmem:[%s1788_s0 + $0x8] sm:$0xff] }
  0x10   :  { %361 = vmatpush.msra.mxu1 %v81_v21  ;;  %458 = vmatpush.msra.mxu2 %v1119_v22  ;;  %v98_v45 = vld [vmem:[%s1789_s3 + $0x18] sm:$0xff]  ;;  %v548_v48 = vld [vmem:[%s1786_s4 + $0x70] sm:$0xff]  ;;  %v71_v49 = vld [vmem:[%s1788_s0] sm:$0xff] }
  0x11   :  { %924 = vmatmul.msk.f32.gmra.mxu0 %vm121_vm0, %v96_v23  ;;  %944 = vmatmul.msk.f32.gmra.mxu3 %vm121_vm0, %v116_v24  ;;  %v118_v46 = vld [vmem:[%s1789_s3 + $0xb8] sm:$0xff]  ;;  %v23_v50 = vld [vmem:[%s1790_s2] sm:$0xff]  ;;  %v28_v51 = vld [vmem:[%s1790_s2 + $0x28] sm:$0xff] }
  0x12   :  { %977 = vmatpush.msrb.mxu3 %v82_v19  ;;  %362 = vmatpush.msra.mxu1 %v80_v25  ;;  %v547_v52 = vld [vmem:[%s1786_s4 + $0x68] sm:$0xff]  ;;  %v546_v53 = vld [vmem:[%s1786_s4 + $0x60] sm:$0xff]  ;;  %v57_v55 = vld [vmem:[%s1790_s2 + $0x110] sm:$0xff] }
  0x13   :  { %459 = vmatpush.msra.mxu2 %v1135_v26  ;;  %600 = vperm.xlu2 %1000, %v542_v27   ;;  %v99_v54 = vld [vmem:[%s1789_s3 + $0x20] sm:$0xff]  ;;  %v551_v56 = vld [vmem:[%s1786_s4 + $0x88] sm:$0xff]  ;;  %v25_v57 = vld [vmem:[%s1790_s2 + $0x10] sm:$0xff] }
  0x14   :  { %978 = vmatpush.msrb.mxu3 %v81_v21  ;;  %363 = vmatpush.msra.mxu1 %v79_v28  ;;  %v30_v58 = vld [vmem:[%s1790_s2 + $0x38] sm:$0xff]  ;;  %v550_v59 = vld [vmem:[%s1786_s4 + $0x80] sm:$0xff]  ;;  %v100_v61 = vld [vmem:[%s1789_s3 + $0x28] sm:$0xff] }
  0x15   :  { %460 = vmatpush.msra.mxu2 %v1148_v29  ;;  %595 = vperm.xlu1 %999, %v541_v30   ;;  %v549_v60 = vld [vmem:[%s1786_s4 + $0x78] sm:$0xff]  ;;  %v59_v62 = vld [vmem:[%s1790_s2 + $0x120] sm:$0xff]  ;;  %v32_v1 = vld [vmem:[%s1790_s2 + $0x48] sm:$0xff] }
  0x16   :  { %947 = vmatmul.msk.f32.vlgmr.msra.gmra.mxu2 %vm283_vm1, %v24_v31  ;;  %590 = vperm.xlu0 %998, %v540_v32   ;;  %v554_v63 = vld [vmem:[%s1786_s4 + $0xa0] sm:$0xff]  ;;  %v553_v2 = vld [vmem:[%s1786_s4 + $0x98] sm:$0xff]  ;;  %v552_v3 = vld [vmem:[%s1786_s4 + $0x90] sm:$0xff] }
  0x17   :  { %979 = vmatpush.msrb.mxu3 %v80_v25  ;;  %364 = vmatpush.msra.mxu1 %v78_v33  ;;  %v27_v0 = vld [vmem:[%s1790_s2 + $0x20] sm:$0xff]  ;;  %v101_v4 = vld [vmem:[%s1789_s3 + $0x30] sm:$0xff]  ;;  %v34_v8 = vld [vmem:[%s1790_s2 + $0x58] sm:$0xff] }
  0x18   :  { %v61_v5 = vld [vmem:[%s1790_s2 + $0x130] sm:$0xff]  ;;  %v555_v10 = vld [vmem:[%s1786_s4 + $0xa8] sm:$0xff]  ;;  %v102_v11 = vld [vmem:[%s1789_s3 + $0x38] sm:$0xff] }
  0x19   :  { %980 = vmatpush.msrb.mxu3 %v79_v28  ;;  %365 = vmatpush.msra.mxu1 %v77_v34  ;;  %v29_v7 = vld [vmem:[%s1790_s2 + $0x30] sm:$0xff]  ;;  %v63_v12 = vld [vmem:[%s1790_s2 + $0x140] sm:$0xff]  ;;  %v36_v15 = vld [vmem:[%s1790_s2 + $0x68] sm:$0xff] }
  0x1a   :  { %925 = vmatmul.msk.f32.gmra.mxu0 %vm121_vm0, %v97_v35  ;;  %945 = vmatmul.msk.f32.gmra.mxu3 %vm121_vm0, %v117_v36  ;;  %v31_v14 = vld [vmem:[%s1790_s2 + $0x40] sm:$0xff]  ;;  %v65_v19 = vld [vmem:[%s1790_s2 + $0x150] sm:$0xff]  ;;  %v705_v24 = vld [vmem:[%s1791_s5 + $0x18] sm:$0xff] }
  0x1b   :  { %981 = vmatpush.msrb.mxu3 %v78_v33  ;;  %366 = vmatpush.msra.mxu1 %v76_v37  ;;  %v702_v17 = vld [vmem:[%s1791_s5] sm:$0xff]  ;;  %v33_v21 = vld [vmem:[%s1790_s2 + $0x50] sm:$0xff]  ;;  %v104_v25 = vld [vmem:[%s1789_s3 + $0x48] sm:$0xff] }
  0x1c   :  { %615 = vperm.xlu2 %1000, %v545_v38   ;;  %v103_v18 = vld [vmem:[%s1789_s3 + $0x40] sm:$0xff]  ;;  %v709_v30 = vld [vmem:[%s1791_s5 + $0x38] sm:$0xff]  ;;  %v708_v31 = vld [vmem:[%s1791_s5 + $0x30] sm:$0xff] }
  0x1d   :  { %982 = vmatpush.msrb.mxu3 %v77_v34  ;;  %367 = vmatpush.msra.mxu1 %v75_v39  ;;  %v706_v23 = vld [vmem:[%s1791_s5 + $0x20] sm:$0xff]  ;;  %v105_v32 = vld [vmem:[%s1789_s3 + $0x50] sm:$0xff]  ;;  %v713_v34 = vld [vmem:[%s1791_s5 + $0x58] sm:$0xff] }
  0x1e   :  { %948 = vmatmul.msk.f32.gmra.mxu2 %vm283_vm1, %v26_v40  ;;  %610 = vperm.xlu1 %999, %v544_v41   ;;  %v710_v27 = vld [vmem:[%s1791_s5 + $0x40] sm:$0xff]  ;;  %v69_v33 = vld [vmem:[%s1790_s2 + $0x170] sm:$0xff]  ;;  %v42_v36 = vld [vmem:[%s1790_s2 + $0x98] sm:$0xff] }
  0x1f   :  { %605 = vperm.xlu0 %998, %v543_v42   ;;  %983 = vmatpush.msrb.mxu3 %v76_v37  ;;  %v35_v28 = vld [vmem:[%s1790_s2 + $0x60] sm:$0xff]  ;;  %v37_v35 = vld [vmem:[%s1790_s2 + $0x70] sm:$0xff]  ;;  %v711_v38 = vld [vmem:[%s1791_s5 + $0x48] sm:$0xff] }
  0x20   :  { %368 = vmatpush.msra.mxu1 %v74_v43  ;;  %v712_v37 = vld [vmem:[%s1791_s5 + $0x50] sm:$0xff]  ;;  %v62_v40 = vld [vmem:[%s1790_s2 + $0x138] sm:$0xff]  ;;  %v39_v42 = vld [vmem:[%s1790_s2 + $0x80] sm:$0xff] }
  0x21   :  { %984 = vmatpush.msrb.mxu3 %v75_v39  ;;  %v106_v39 = vld [vmem:[%s1789_s3 + $0x58] sm:$0xff]  ;;  %v716_v41 = vld [vmem:[%s1791_s5 + $0x70] sm:$0xff] }
  0x22   :  { %369 = vmatpush.msra.mxu1 %v73_v44  ;;  %926 = vmatmul.msk.f32.gmra.mxu0 %vm121_vm0, %v98_v45  ;;  %v715_v45 = vld [vmem:[%s1791_s5 + $0x68] sm:$0xff] }
  0x23   :  { %946 = vmatmul.msk.f32.gmra.mxu3 %vm121_vm0, %v118_v46  ;;  %v714_v46 = vld [vmem:[%s1791_s5 + $0x60] sm:$0xff] }
  0x24   :  { %985 = vmatpush.msrb.mxu3 %v74_v43  ;;  %370 = vmatpush.msra.mxu1 %v72_v47  ;;  %v44_v43 = vld [vmem:[%s1790_s2 + $0xa8] sm:$0xff] }
  0x25   :  { %630 = vperm.xlu2 %1000, %v548_v48   ;;  %v64_v48 = vld [vmem:[%s1790_s2 + $0x148] sm:$0xff] }
  0x26   :  { %986 = vmatpush.msrb.mxu3 %v73_v44  ;;  %371 = vmatpush.msra.mxu1 %v71_v49 }
  0x27   :  { %372 = vmatmul.f32.vlgmr.msra.gmra.mxu1 %v23_v50  ;;  %949 = vmatmul.msk.f32.gmra.mxu2 %vm283_vm1, %v28_v51  ;;  %v41_v50 = vld [vmem:[%s1790_s2 + $0x90] sm:$0xff]  ;;  %v46_v51 = vld [vmem:[%s1790_s2 + $0xb8] sm:$0xff] }
  0x28   :  { %625 = vperm.xlu1 %999, %v547_v52   ;;  %620 = vperm.xlu0 %998, %v546_v53   ;;  %v718_v52 = vld [vmem:[%s1791_s5 + $0x80] sm:$0xff]  ;;  %v717_v53 = vld [vmem:[%s1791_s5 + $0x78] sm:$0xff] }
  0x29   :  { %987 = vmatpush.msrb.mxu3 %v72_v47  ;;  %v107_v47 = vld [vmem:[%s1789_s3 + $0x60] sm:$0xff] }
  0x2a   :  { %927 = vmatmul.msk.f32.gmra.mxu0 %vm121_vm0, %v99_v54 }
  0x2b   :  { %988 = vmatpush.msrb.mxu3 %v71_v49  ;;  %v719_v49 = vld [vmem:[%s1791_s5 + $0x88] sm:$0xff] }
  0x2c   :  { %423 = vmatmul.f32.vlgmr.msrb.gmra.mxu3 %v57_v55  ;;  %v108_v55 = vld [vmem:[%s1789_s3 + $0x68] sm:$0xff] }
  0x2d   :  { %645 = vperm.xlu2 %1000, %v551_v56   ;;  %989 = vmatpush.msra.mxu3 %v1055_v6  ;;  %v557_v6 = vld [vmem:[%s1786_s4 + $0xb8] sm:$0xff] }
  0x2e   :  { %v66_v56 = vld [vmem:[%s1790_s2 + $0x158] sm:$0xff] }
  0x2f   :  { %375 = vmatmul.f32.gmra.mxu1 %v25_v57  ;;  %950 = vmatmul.msk.f32.gmra.mxu2 %vm283_vm1, %v30_v58  ;;  %v722_v57 = vld [vmem:[%s1791_s5 + $0xa0] sm:$0xff] }
  0x30   :  { %640 = vperm.xlu1 %999, %v550_v59   ;;  %635 = vperm.xlu0 %998, %v549_v60   ;;  %v43_v58 = vld [vmem:[%s1790_s2 + $0xa0] sm:$0xff]  ;;  %v48_v59 = vld [vmem:[%s1790_s2 + $0xc8] sm:$0xff]  ;;  %v721_v60 = vld [vmem:[%s1791_s5 + $0x98] sm:$0xff] }
  0x31   :  { %990 = vmatpush.msra.mxu3 %v1066_v9  ;;  %v556_v9 = vld [vmem:[%s1786_s4 + $0xb0] sm:$0xff] }
  0x32   :  { %928 = vmatmul.msk.f32.gmra.mxu0 %vm121_vm0, %v100_v61  ;;  %v720_v61 = vld [vmem:[%s1791_s5 + $0x90] sm:$0xff] }
  0x33   :  { %991 = vmatpush.msra.mxu3 %v1082_v13  ;;  %v704_v13 = vld [vmem:[%s1791_s5 + $0x10] sm:$0xff] }
  0x34   :  { %426 = vmatmul.f32.gmra.mxu3 %v59_v62 }
  0x35   :  { %660 = vperm.xlu2 %1000, %v554_v63   ;;  %992 = vmatpush.msra.mxu3 %v1095_v16  ;;  %v703_v16 = vld [vmem:[%s1791_s5 + $0x8] sm:$0xff] }
  0x37   :  { %378 = vmatmul.f32.gmra.mxu1 %v27_v0  ;;  %951 = vmatmul.msk.f32.gmra.mxu2 %vm283_vm1, %v32_v1  ;;  %v109_v0 = vld [vmem:[%s1789_s3 + $0x70] sm:$0xff] }
  0x38   :  { %655 = vperm.xlu1 %999, %v553_v2   ;;  %650 = vperm.xlu0 %998, %v552_v3   ;;  %v68_v2 = vld [vmem:[%s1790_s2 + $0x168] sm:$0xff]  ;;  %v725_v3 = vld [vmem:[%s1791_s5 + $0xb8] sm:$0xff] }
  0x39   :  { %993 = vmatpush.msra.mxu3 %v1110_v20  ;;  %v707_v20 = vld [vmem:[%s1791_s5 + $0x28] sm:$0xff] }
  0x3a   :  { %929 = vmatmul.msk.f32.gmra.mxu0 %vm121_vm0, %v101_v4  ;;  %v45_v4 = vld [vmem:[%s1790_s2 + $0xb0] sm:$0xff] }
  0x3b   :  { %994 = vmatpush.msra.mxu3 %v1119_v22  ;;  %v38_v22 = vld [vmem:[%s1790_s2 + $0x78] sm:$0xff] }
  0x3c   :  { %429 = vmatmul.f32.gmra.mxu3 %v61_v5  ;;  %v50_v5 = vld [vmem:[%s1790_s2 + $0xd8] sm:$0xff] }
  0x3d   :  { %675 = vperm.xlu2 %1000, %v557_v6   ;;  %995 = vmatpush.msra.mxu3 %v1135_v26  ;;  %v67_v26 = vld [vmem:[%s1790_s2 + $0x160] sm:$0xff]  ;;  %v724_v6 = vld [vmem:[%s1791_s5 + $0xb0] sm:$0xff] }
  0x3f   :  { %381 = vmatmul.f32.gmra.mxu1 %v29_v7  ;;  %952 = vmatmul.msk.f32.gmra.mxu2 %vm283_vm1, %v34_v8  ;;  %v723_v7 = vld [vmem:[%s1791_s5 + $0xa8] sm:$0xff] }
  0x40   :  { %670 = vperm.xlu1 %999, %v556_v9   ;;  %665 = vperm.xlu0 %998, %v555_v10   ;;  %v110_v10 = vld [vmem:[%s1789_s3 + $0x78] sm:$0xff] }
  0x41   :  { %996 = vmatpush.msra.mxu3 %v1148_v29  ;;  %v40_v29 = vld [vmem:[%s1790_s2 + $0x88] sm:$0xff] }
  0x42   :  { %930 = vmatmul.msk.f32.gmra.mxu0 %vm121_vm0, %v102_v11  ;;  %v70_v11 = vld [vmem:[%s1790_s2 + $0x178] sm:$0xff] }
  0x44   :  { %432 = vmatmul.f32.gmra.mxu3 %v63_v12 }
  0x45   :  { %738 = vperm.xlu2 %1000, %v704_v13   ;;  %v47_v13 = vld [vmem:[%s1790_s2 + $0xc0] sm:$0xff] }
  0x47   :  { %384 = vmatmul.f32.gmra.mxu1 %v31_v14  ;;  %953 = vmatmul.msk.f32.gmra.mxu2 %vm283_vm1, %v36_v15  ;;  %v52_v14 = vld [vmem:[%s1790_s2 + $0xe8] sm:$0xff] }
  0x48   :  { %733 = vperm.xlu1 %999, %v703_v16   ;;  %728 = vperm.xlu0 %998, %v702_v17   ;;  %v111_v17 = vld [vmem:[%s1789_s3 + $0x80] sm:$0xff] }
  0x4a   :  { %931 = vmatmul.msk.f32.gmra.mxu0 %vm121_vm0, %v103_v18 }
  0x4c   :  { %435 = vmatmul.f32.gmra.mxu3 %v65_v19 }
  0x4d   :  { %753 = vperm.xlu2 %1000, %v707_v20   ;;  %v49_v20 = vld [vmem:[%s1790_s2 + $0xd0] sm:$0xff] }
  0x4f   :  { %387 = vmatmul.f32.gmra.mxu1 %v33_v21  ;;  %954 = vmatmul.msk.f32.gmra.mxu2 %vm283_vm1, %v38_v22  ;;  %v54_v21 = vld [vmem:[%s1790_s2 + $0xf8] sm:$0xff] }
  0x50   :  { %748 = vperm.xlu1 %999, %v706_v23   ;;  %743 = vperm.xlu0 %998, %v705_v24   ;;  %v112_v24 = vld [vmem:[%s1789_s3 + $0x88] sm:$0xff] }
  0x52   :  { %932 = vmatmul.msk.f32.gmra.mxu0 %vm121_vm0, %v104_v25 }
  0x54   :  { %438 = vmatmul.f32.gmra.mxu3 %v67_v26 }
  0x55   :  { %768 = vperm.xlu2 %1000, %v710_v27  }
  0x57   :  { %390 = vmatmul.f32.gmra.mxu1 %v35_v28  ;;  %955 = vmatmul.msk.f32.gmra.mxu2 %vm283_vm1, %v40_v29  ;;  %v51_v28 = vld [vmem:[%s1790_s2 + $0xe0] sm:$0xff]  ;;  %v56_v29 = vld [vmem:[%s1790_s2 + $0x108] sm:$0xff] }
  0x58   :  { %763 = vperm.xlu1 %999, %v709_v30   ;;  %758 = vperm.xlu0 %998, %v708_v31  }
  0x5a   :  { %933 = vmatmul.msk.f32.gmra.mxu0 %vm121_vm0, %v105_v32  ;;  %v113_v32 = vld [vmem:[%s1789_s3 + $0x90] sm:$0xff] }
  0x5c   :  { %441 = vmatmul.f32.gmra.mxu3 %v69_v33  ;;  %v1417_v44 = vpop.permute.xlu2 %580 }
  0x5d   :  { %783 = vperm.xlu2 %1000, %v713_v34  }
  0x5f   :  { %393 = vmatmul.f32.gmra.mxu1 %v37_v35  ;;  %956 = vmatmul.msk.f32.gmra.mxu2 %vm283_vm1, %v42_v36  ;;  %v53_v36 = vld [vmem:[%s1790_s2 + $0xf0] sm:$0xff] }
  0x60   :  { %778 = vperm.xlu1 %999, %v712_v37   ;;  %773 = vperm.xlu0 %998, %v711_v38   ;;  %v58_v37 = vld [vmem:[%s1790_s2 + $0x118] sm:$0xff] }
  0x62   :  { %934 = vmatmul.msk.f32.gmra.mxu0 %vm121_vm0, %v106_v39 }
  0x64   :  { %966 = vmatmul.msk.f32.vlgmr.msra.gmra.mxu3 %vm283_vm1, %v62_v40  ;;  %v1449_v54 = vpop.permute.xlu2 %585  ;;  %v114_v40 = vld [vmem:[%s1789_s3 + $0x98] sm:$0xff] }
  0x65   :  { %798 = vperm.xlu2 %1000, %v716_v41  }
  0x67   :  { %396 = vmatmul.f32.gmra.mxu1 %v39_v42  ;;  %957 = vmatmul.msk.f32.gmra.mxu2 %vm283_vm1, %v44_v43 }
  0x68   :  { %793 = vperm.xlu1 %999, %v715_v45   ;;  %788 = vperm.xlu0 %998, %v714_v46  }
  0x6a   :  { %935 = vmatmul.msk.f32.gmra.mxu0 %vm121_vm0, %v107_v47  ;;  %v55_v47 = vld [vmem:[%s1790_s2 + $0x100] sm:$0xff] }
  0x6c   :  { %967 = vmatmul.msk.f32.gmra.mxu3 %vm283_vm1, %v64_v48  ;;  %v60_v48 = vld [vmem:[%s1790_s2 + $0x128] sm:$0xff] }
  0x6d   :  { %813 = vperm.xlu2 %1000, %v719_v49   ;;  %v1483_v1 = vpop.permute.xlu2 %600 }
  0x6f   :  { %399 = vmatmul.f32.gmra.mxu1 %v41_v50  ;;  %958 = vmatmul.msk.f32.gmra.mxu2 %vm283_vm1, %v46_v51 }
  0x70   :  { %808 = vperm.xlu1 %999, %v718_v52   ;;  %803 = vperm.xlu0 %998, %v717_v53  }
  0x72   :  { %936 = vmatmul.msk.f32.gmra.mxu0 %vm121_vm0, %v108_v55 }
  0x74   :  { %968 = vmatmul.msk.f32.gmra.mxu3 %vm283_vm1, %v66_v56 }
  0x75   :  { %828 = vperm.xlu2 %1000, %v722_v57   ;;  %v1475_v62 = vpop.permute.xlu1 %570  ;;  %v1477_v63 = vpop.permute.xlu0 %560 }
  0x76   :  { %v1517_v12 = vpop.permute.xlu2 %615 }
  0x77   :  { %402 = vmatmul.f32.gmra.mxu1 %v43_v58  ;;  %959 = vmatmul.msk.f32.gmra.mxu2 %vm283_vm1, %v48_v59 }
  0x78   :  { %823 = vperm.xlu1 %999, %v721_v60   ;;  %818 = vperm.xlu0 %998, %v720_v61  }
  0x7a   :  { %937 = vmatmul.msk.f32.gmra.mxu0 %vm121_vm0, %v109_v0 }
  0x7c   :  { %969 = vmatmul.msk.f32.gmra.mxu3 %vm283_vm1, %v68_v2 }
  0x7d   :  { %843 = vperm.xlu2 %1000, %v725_v3  }
  0x7e   :  { %v1505_v8 = vpop.permute.xlu1 %575 }
  0x7f   :  { %405 = vmatmul.f32.gmra.mxu1 %v45_v4  ;;  %960 = vmatmul.msk.f32.gmra.mxu2 %vm283_vm1, %v50_v5  ;;  %v1508_v9 = vpop.permute.xlu0 %565  ;;  %v1543_v22 = vpop.permute.xlu2 %630 }
  0x80   :  { %838 = vperm.xlu1 %999, %v724_v6   ;;  %833 = vperm.xlu0 %998, %v723_v7  }
  0x82   :  { %938 = vmatmul.msk.f32.gmra.mxu0 %vm121_vm0, %v110_v10 }
  0x84   :  { %970 = vmatmul.msk.f32.gmra.mxu3 %vm283_vm1, %v70_v11 }
  0x85   :  { %v211_v15 = vpop.f32.mrf.mxu0 }
  0x87   :  { %408 = vmatmul.f32.gmra.mxu1 %v47_v13  ;;  %961 = vmatmul.msk.f32.gmra.mxu2 %vm283_vm1, %v52_v14  ;;  %v1527_v16 = vpop.permute.xlu1 %595  ;;  %v1562_v30 = vpop.permute.xlu2 %645 }
  0x88   :  { %v1532_v18 = vpop.permute.xlu0 %590 }
  0x8a   :  { %939 = vmatmul.msk.f32.gmra.mxu0 %vm121_vm0, %v111_v17 }
  0x8b   :  { %v1535_v19 = vpop.f32.mrf.mxu3 }
  0x8e   :  { %v214_v23 = vpop.f32.mrf.mxu0 }
  0x8f   :  { %411 = vmatmul.f32.gmra.mxu1 %v49_v20  ;;  %962 = vmatmul.msk.f32.gmra.mxu2 %vm283_vm1, %v54_v21  ;;  %v1585_v41 = vpop.permute.xlu2 %660 }
  0x90   :  { %v1549_v25 = vpop.permute.xlu1 %610 }
  0x91   :  { %v1551_v26 = vpop.permute.xlu0 %605 }
  0x92   :  { %940 = vmatmul.msk.f32.gmra.mxu0 %vm121_vm0, %v112_v24 }
  0x94   :  { %v1554_v27 = vpop.f32.mrf.mxu3 }
  0x97   :  { %414 = vmatmul.f32.gmra.mxu1 %v51_v28  ;;  %963 = vmatmul.msk.f32.gmra.mxu2 %vm283_vm1, %v56_v29  ;;  %v217_v31 = vpop.f32.mrf.mxu0  ;;  %v1605_v55 = vpop.permute.xlu2 %675 }
  0x99   :  { %v462_v33 = vpop.f32.mrf.mxu2 }
  0x9a   :  { %v1568_v34 = vpop.permute.xlu1 %625  ;;  %v1570_v35 = vpop.permute.xlu0 %620  ;;  %941 = vmatmul.msk.f32.gmra.mxu0 %vm121_vm0, %v113_v32 }
  0x9d   :  { %v1579_v38 = vpop.f32.mrf.mxu3 }
  0x9f   :  { %417 = vmatmul.f32.gmra.mxu1 %v53_v36  ;;  %964 = vmatmul.msk.f32.gmra.mxu2 %vm283_vm1, %v58_v37  ;;  %v220_v39 = vpop.f32.mrf.mxu0  ;;  %v739_v7 = vpop.permute.xlu2 %738 }
  0xa1   :  { %v465_v42 = vpop.f32.mrf.mxu2 }
  0xa2   :  { %v1587_v43 = vpop.permute.xlu1 %640  ;;  %v1589_v45 = vpop.permute.xlu0 %635  ;;  %942 = vmatmul.msk.f32.gmra.mxu0 %vm121_vm0, %v114_v40 }
  0xa4   :  { %v373_v46 = vpop.f32.mrf.mxu1 }
  0xa5   :  { %v374_v59 = vadd.f32 %v373_v46, %v211_v15 }
  0xa6   :  { %v1598_v49 = vpop.f32.mrf.mxu3 }
  0xa7   :  { %420 = vmatmul.f32.gmra.mxu1 %v55_v47  ;;  %965 = vmatmul.msk.f32.gmra.mxu2 %vm283_vm1, %v60_v48  ;;  %v223_v50 = vpop.f32.mrf.mxu0  ;;  %v463_v4 = vadd.f32 %v462_v33, %v374_v59  ;;  %v754_v40 = vpop.permute.xlu2 %753 }
  0xa9   :  { %v678_v15 = vmul.f32 %v1477_v63, %v463_v4 }
  0xaa   :  { %v1601_v51 = vpop.permute.xlu1 %655  ;;  %v1603_v52 = vpop.permute.xlu0 %650 }
  0xab   :  { %v468_v53 = vpop.f32.mrf.mxu2 }
  0xac   :  { %v376_v56 = vpop.f32.mrf.mxu1 }
  0xad   :  { %v377_v60 = vadd.f32 %v376_v56, %v214_v23 }
  0xaf   :  { %v1607_v57 = vpop.f32.mrf.mxu3  ;;  %v226_v58 = vpop.f32.mrf.mxu0  ;;  %v466_v5 = vadd.f32 %v465_v42, %v377_v60 }
  0xb1   :  { %v679_v17 = vmul.f32 %v1508_v9, %v466_v5  ;;  %v769_v5 = vpop.permute.xlu2 %768 }
  0xb2   :  { %v1609_v61 = vpop.permute.xlu1 %670  ;;  %v1611_v0 = vpop.permute.xlu0 %665 }
  0xb3   :  { %v471_v2 = vpop.f32.mrf.mxu2 }
  0xb4   :  { %v379_v3 = vpop.f32.mrf.mxu1 }
  0xb5   :  { %v380_v6 = vadd.f32 %v379_v3, %v217_v31 }
  0xb7   :  { %v469_v10 = vadd.f32 %v468_v53, %v380_v6  ;;  %v1613_v11 = vpop.f32.mrf.mxu3  ;;  %v229_v13 = vpop.f32.mrf.mxu0 }
  0xb9   :  { %v680_v14 = vmul.f32 %v1475_v62, %v469_v10 }
  0xba   :  { %v734_v20 = vpop.permute.xlu1 %733  ;;  %v729_v21 = vpop.permute.xlu0 %728 }
  0xbb   :  { %v848_v23 = vadd.f32 %v739_v7, %v680_v14  ;;  %v847_v24 = vadd.f32 %v734_v20, %v679_v17  ;;  %v846_v28 = vadd.f32 %v729_v21, %v678_v15  ;;  %v474_v29 = vpop.f32.mrf.mxu2 }
  0xbc   :  { %v382_v32 = vpop.f32.mrf.mxu1 }
  0xbd   :  { %v872_v31 = vmax.f32 %v848_v23, 0.0  ;;  %v871_v33 = vmax.f32 %v847_v24, 0.0  ;;  %v870_v36 = vmax.f32 %v846_v28, 0.0  ;;  %v383_v37 = vadd.f32 %v382_v32, %v220_v39 }
  0xbf   :  { %897 = vst.msk [vmem:[%s1792_s6 + $0x10] sm:$0xff] %vm894_vm2, %v872_v31  ;;  %v472_v62 = vadd.f32 %v471_v2, %v383_v37  ;;  %v1622_v9 = vpop.f32.mrf.mxu3  ;;  %v232_v63 = vpop.f32.mrf.mxu0 }
  0xc0   :  { %896 = vst.msk [vmem:[%s1792_s6 + $0x8] sm:$0xff] %vm894_vm2, %v871_v33 }
  0xc1   :  { %895 = vst.msk [vmem:[%s1792_s6] sm:$0xff] %vm894_vm2, %v870_v36  ;;  %v681_v39 = vmul.f32 %v1505_v8, %v472_v62 }
  0xc2   :  { %v744_v42 = vpop.permute.xlu0 %743  ;;  %v749_v59 = vpop.permute.xlu1 %748 }
  0xc3   :  { %v849_v46 = vadd.f32 %v744_v42, %v681_v39  ;;  %v477_v47 = vpop.f32.mrf.mxu2 }
  0xc4   :  { %v385_v48 = vpop.f32.mrf.mxu1 }
  0xc5   :  { %v873_v53 = vmax.f32 %v849_v46, 0.0  ;;  %v386_v56 = vadd.f32 %v385_v48, %v223_v50 }
  0xc7   :  { %898 = vst.msk [vmem:[%s1792_s6 + $0x18] sm:$0xff] %vm894_vm2, %v873_v53  ;;  %v475_v60 = vadd.f32 %v474_v29, %v386_v56  ;;  %v433_v2 = vpop.f32.mrf.mxu3  ;;  %v235_v3 = vpop.f32.mrf.mxu0 }
  0xc8   :  { %v1645_v29 = vpop.permute.xlu2 %783 }
  0xc9   :  { %v682_v4 = vmul.f32 %v1417_v44, %v475_v60 }
  0xca   :  { %v759_v6 = vpop.permute.xlu0 %758  ;;  %v764_v21 = vpop.permute.xlu1 %763 }
  0xcb   :  { %v850_v8 = vadd.f32 %v749_v59, %v682_v4  ;;  %v480_v7 = vpop.f32.mrf.mxu2 }
  0xcc   :  { %v388_v10 = vpop.f32.mrf.mxu1 }
  0xcd   :  { %v874_v14 = vmax.f32 %v850_v8, 0.0  ;;  %v389_v17 = vadd.f32 %v388_v10, %v226_v58 }
  0xcf   :  { %899 = vst.msk [vmem:[%s1792_s6 + $0x20] sm:$0xff] %vm894_vm2, %v874_v14  ;;  %v478_v50 = vadd.f32 %v477_v47, %v389_v17  ;;  %v1642_v15 = vpop.f32.mrf.mxu3  ;;  %v238_v20 = vpop.f32.mrf.mxu0 }
  0xd1   :  { %v683_v23 = vmul.f32 %v1449_v54, %v478_v50 }
  0xd2   :  { %v774_v44 = vpop.permute.xlu0 %773  ;;  %v779_v54 = vpop.permute.xlu1 %778 }
  0xd3   :  { %v851_v24 = vadd.f32 %v754_v40, %v683_v23  ;;  %v483_v28 = vpop.f32.mrf.mxu2 }
  0xd4   :  { %v391_v32 = vpop.f32.mrf.mxu1 }
  0xd5   :  { %v875_v31 = vmax.f32 %v851_v24, 0.0  ;;  %v392_v58 = vadd.f32 %v391_v32, %v229_v13  ;;  %v1656_v13 = vpop.permute.xlu2 %798 }
  0xd7   :  { %900 = vst.msk [vmem:[%s1792_s6 + $0x28] sm:$0xff] %vm894_vm2, %v875_v31  ;;  %v481_v33 = vadd.f32 %v480_v7, %v392_v58  ;;  %v1651_v36 = vpop.f32.mrf.mxu3  ;;  %v241_v37 = vpop.f32.mrf.mxu0  ;;  %v434_v31 = vadd.f32 %v433_v2, %v1535_v19 }
  0xd9   :  { %v684_v62 = vmul.f32 %v1532_v18, %v481_v33 }
  0xda   :  { %v1654_v42 = vpop.permute.xlu0 %788 }
  0xdb   :  { %v852_v39 = vadd.f32 %v759_v6, %v684_v62  ;;  %v486_v40 = vpop.f32.mrf.mxu2  ;;  %v1665_v6 = vpop.permute.xlu1 %793 }
  0xdc   :  { %v394_v46 = vpop.f32.mrf.mxu1 }
  0xdd   :  { %v876_v47 = vmax.f32 %v852_v39, 0.0  ;;  %v395_v48 = vadd.f32 %v394_v46, %v232_v63  ;;  %v1675_v23 = vpop.permute.xlu2 %813 }
  0xdf   :  { %901 = vst.msk [vmem:[%s1792_s6 + $0x30] sm:$0xff] %vm894_vm2, %v876_v47  ;;  %v484_v53 = vadd.f32 %v483_v28, %v395_v48  ;;  %v1662_v56 = vpop.f32.mrf.mxu3  ;;  %v244_v59 = vpop.f32.mrf.mxu0 }
  0xe1   :  { %v685_v18 = vmul.f32 %v1527_v16, %v484_v53 }
  0xe2   :  { %v1667_v10 = vpop.permute.xlu0 %803 }
  0xe3   :  { %v853_v60 = vadd.f32 %v764_v21, %v685_v18  ;;  %v489_v4 = vpop.f32.mrf.mxu2  ;;  %v1679_v58 = vpop.permute.xlu1 %808 }
  0xe4   :  { %v397_v8 = vpop.f32.mrf.mxu1 }
  0xe5   :  { %v877_v7 = vmax.f32 %v853_v60, 0.0  ;;  %v398_v63 = vadd.f32 %v397_v8, %v235_v3  ;;  %v829_v46 = vpop.permute.xlu2 %828  ;;  %v437_v60 = vadd.f32 %v1642_v15, %v1554_v27 }
  0xe7   :  { %902 = vst.msk [vmem:[%s1792_s6 + $0x38] sm:$0xff] %vm894_vm2, %v877_v7  ;;  %v487_v14 = vadd.f32 %v486_v40, %v398_v63  ;;  %v1673_v17 = vpop.f32.mrf.mxu3  ;;  %v247_v50 = vpop.f32.mrf.mxu0 }
  0xe9   :  { %v686_v16 = vmul.f32 %v1483_v1, %v487_v14 }
  0xea   :  { %v1687_v1 = vpop.permute.xlu0 %818 }
  0xeb   :  { %v854_v21 = vadd.f32 %v769_v5, %v686_v16  ;;  %v492_v24 = vpop.f32.mrf.mxu2 }
  0xec   :  { %v400_v28 = vpop.f32.mrf.mxu1 }
  0xed   :  { %v878_v32 = vmax.f32 %v854_v21, 0.0  ;;  %v401_v3 = vadd.f32 %v400_v28, %v238_v20 }
  0xef   :  { %903 = vst.msk [vmem:[%s1792_s6 + $0x40] sm:$0xff] %vm894_vm2, %v878_v32  ;;  %v490_v33 = vadd.f32 %v489_v4, %v401_v3  ;;  %v522_v62 = vpop.f32.mrf.mxu3  ;;  %v1685_v39 = vpop.f32.mrf.mxu0  ;;  %v440_v32 = vadd.f32 %v1651_v36, %v1579_v38 }
  0xf0   :  { %v523_v40 = vadd.f32 %v522_v62, %v434_v31 }
  0xf1   :  { %v687_v5 = vmul.f32 %v1551_v26, %v490_v33 }
  0xf2   :  { %v698_v20 = vmul.f32 %v1585_v41, %v523_v40  ;;  %v834_v15 = vpop.permute.xlu0 %833 }
  0xf3   :  { %v855_v19 = vadd.f32 %v774_v44, %v687_v5  ;;  %v495_v2 = vpop.f32.mrf.mxu2  ;;  %v1701_v44 = vpop.permute.xlu1 %823 }
  0xf4   :  { %v866_v47 = vadd.f32 %v829_v46, %v698_v20  ;;  %v403_v48 = vpop.f32.mrf.mxu1 }
  0xf5   :  { %v879_v53 = vmax.f32 %v855_v19, 0.0  ;;  %v404_v18 = vadd.f32 %v403_v48, %v241_v37  ;;  %v443_v19 = vadd.f32 %v1662_v56, %v1598_v49  ;;  %v844_v49 = vpop.permute.xlu2 %843 }
  0xf6   :  { %v890_v4 = vmax.f32 %v866_v47, 0.0 }
  0xf7   :  { %904 = vst.msk [vmem:[%s1792_s6 + $0x48] sm:$0xff] %vm894_vm2, %v879_v53  ;;  %v493_v8 = vadd.f32 %v492_v24, %v404_v18  ;;  %v525_v26 = vpop.f32.mrf.mxu3  ;;  %v253_v7 = vpop.f32.mrf.mxu0 }
  0xf8   :  { %915 = vst.msk [vmem:[%s1792_s6 + $0xa0] sm:$0xff] %vm894_vm2, %v890_v4  ;;  %v526_v41 = vadd.f32 %v525_v26, %v437_v60 }
  0xf9   :  { %v688_v37 = vmul.f32 %v1549_v25, %v493_v8 }
  0xfa   :  { %v699_v27 = vmul.f32 %v1611_v0, %v526_v41 }
  0xfb   :  { %v856_v63 = vadd.f32 %v779_v54, %v688_v37  ;;  %v498_v14 = vpop.f32.mrf.mxu2  ;;  %v839_v38 = vpop.permute.xlu1 %838 }
  0xfc   :  { %v867_v16 = vadd.f32 %v834_v15, %v699_v27  ;;  %v406_v21 = vpop.f32.mrf.mxu1 }
  0xfd   :  { %v880_v24 = vmax.f32 %v856_v63, 0.0  ;;  %v407_v28 = vadd.f32 %v406_v21, %v244_v59 }
  0xfe   :  { %v891_v3 = vmax.f32 %v867_v16, 0.0 }
  0xff   :  { %905 = vst.msk [vmem:[%s1792_s6 + $0x50] sm:$0xff] %vm894_vm2, %v880_v24  ;;  %v496_v31 = vadd.f32 %v495_v2, %v407_v28  ;;  %v528_v25 = vpop.f32.mrf.mxu3  ;;  %v256_v33 = vpop.f32.mrf.mxu0 }
 0x100   :  { %916 = vst.msk [vmem:[%s1792_s6 + $0xa8] sm:$0xff] %vm894_vm2, %v891_v3  ;;  %v529_v0 = vadd.f32 %v528_v25, %v440_v32 }
 0x101   :  { %v689_v54 = vmul.f32 %v1517_v12, %v496_v31 }
 0x102   :  { %v700_v59 = vmul.f32 %v1609_v61, %v529_v0 }
 0x103   :  { %v857_v36 = vadd.f32 %v1645_v29, %v689_v54  ;;  %v501_v62 = vpop.f32.mrf.mxu2 }
 0x104   :  { %v868_v40 = vadd.f32 %v839_v38, %v700_v59  ;;  %v409_v5 = vpop.f32.mrf.mxu1 }
 0x105   :  { %v881_v20 = vmax.f32 %v857_v36, 0.0  ;;  %v410_v46 = vadd.f32 %v409_v5, %v247_v50 }
 0x106   :  { %v892_v2 = vmax.f32 %v868_v40, 0.0 }
 0x107   :  { %906 = vst.msk [vmem:[%s1792_s6 + $0x58] sm:$0xff] %vm894_vm2, %v881_v20  ;;  %v499_v12 = vadd.f32 %v498_v14, %v410_v46  ;;  %v531_v47 = vpop.f32.mrf.mxu3  ;;  %v259_v61 = vpop.f32.mrf.mxu0 }
 0x108   :  { %917 = vst.msk [vmem:[%s1792_s6 + $0xb0] sm:$0xff] %vm894_vm2, %v892_v2  ;;  %v532_v29 = vadd.f32 %v531_v47, %v443_v19 }
 0x109   :  { %v690_v50 = vmul.f32 %v1570_v35, %v499_v12 }
 0x10a   :  { %v701_v48 = vmul.f32 %v1605_v55, %v532_v29 }
 0x10b   :  { %v858_v56 = vadd.f32 %v1654_v42, %v690_v50  ;;  %v504_v53 = vpop.f32.mrf.mxu2 }
 0x10c   :  { %v869_v18 = vadd.f32 %v844_v49, %v701_v48  ;;  %v412_v60 = vpop.f32.mrf.mxu1 }
 0x10d   :  { %v882_v4 = vmax.f32 %v858_v56, 0.0  ;;  %v413_v8 = vadd.f32 %v412_v60, %v1685_v39 }
 0x10e   :  { %v893_v26 = vmax.f32 %v869_v18, 0.0 }
 0x10f   :  { %907 = vst.msk [vmem:[%s1792_s6 + $0x60] sm:$0xff] %vm894_vm2, %v882_v4  ;;  %v502_v41 = vadd.f32 %v501_v62, %v413_v8  ;;  %v262_v37 = vpop.f32.mrf.mxu0 }
 0x110   :  { %918 = vst.msk [vmem:[%s1792_s6 + $0xb8] sm:$0xff] %vm894_vm2, %v893_v26  ;;  %v425_v25 = vadd.f32 %v1607_v57, %v262_v37 }
 0x111   :  { %v691_v35 = vmul.f32 %v1568_v34, %v502_v41 }
 0x113   :  { %v859_v55 = vadd.f32 %v1665_v6, %v691_v35  ;;  %v507_v42 = vpop.f32.mrf.mxu2 }
 0x114   :  { %v415_v27 = vpop.f32.mrf.mxu1 }
 0x115   :  { %v883_v39 = vmax.f32 %v859_v55, 0.0  ;;  %v416_v15 = vadd.f32 %v415_v27, %v253_v7 }
 0x117   :  { %908 = vst.msk [vmem:[%s1792_s6 + $0x68] sm:$0xff] %vm894_vm2, %v883_v39  ;;  %v505_v63 = vadd.f32 %v504_v53, %v416_v15  ;;  %v265_v14 = vpop.f32.mrf.mxu0 }
 0x119   :  { %v692_v16 = vmul.f32 %v1543_v22, %v505_v63 }
 0x11b   :  { %v860_v21 = vadd.f32 %v1656_v13, %v692_v16  ;;  %v510_v24 = vpop.f32.mrf.mxu2 }
 0x11c   :  { %v418_v28 = vpop.f32.mrf.mxu1 }
 0x11d   :  { %v884_v34 = vmax.f32 %v860_v21, 0.0  ;;  %v419_v32 = vadd.f32 %v418_v28, %v256_v33 }
 0x11f   :  { %909 = vst.msk [vmem:[%s1792_s6 + $0x70] sm:$0xff] %vm894_vm2, %v884_v34  ;;  %v508_v6 = vadd.f32 %v507_v42, %v419_v32  ;;  %v268_v7 = vpop.f32.mrf.mxu0 }
 0x120   :  { %v431_v3 = vadd.f32 %v1622_v9, %v268_v7 }
 0x121   :  { %v693_v31 = vmul.f32 %v1589_v45, %v508_v6 }
 0x122   :  { %v520_v22 = vadd.f32 %v1673_v17, %v431_v3 }
 0x123   :  { %v861_v13 = vadd.f32 %v1667_v10, %v693_v31  ;;  %v513_v0 = vpop.f32.mrf.mxu2 }
 0x124   :  { %v697_v33 = vmul.f32 %v1601_v51, %v520_v22  ;;  %v514_v54 = vadd.f32 %v513_v0, %v425_v25  ;;  %v421_v59 = vpop.f32.mrf.mxu1  ;;  %v428_v51 = vadd.f32 %v1613_v11, %v265_v14 }
 0x125   :  { %v885_v38 = vmax.f32 %v861_v13, 0.0  ;;  %v422_v36 = vadd.f32 %v421_v59, %v259_v61 }
 0x126   :  { %v865_v62 = vadd.f32 %v1701_v44, %v697_v33  ;;  %v695_v40 = vmul.f32 %v1562_v30, %v514_v54 }
 0x127   :  { %910 = vst.msk [vmem:[%s1792_s6 + $0x78] sm:$0xff] %vm894_vm2, %v885_v38  ;;  %v511_v45 = vadd.f32 %v510_v24, %v422_v36 }
 0x128   :  { %v889_v57 = vmax.f32 %v865_v62, 0.0  ;;  %v863_v9 = vadd.f32 %v1675_v23, %v695_v40 }
 0x129   :  { %v694_v10 = vmul.f32 %v1587_v43, %v511_v45 }
 0x12a   :  { %914 = vst.msk [vmem:[%s1792_s6 + $0x98] sm:$0xff] %vm894_vm2, %v889_v57  ;;  %v887_v17 = vmax.f32 %v863_v9, 0.0 }
 0x12b   :  { %v862_v30 = vadd.f32 %v1679_v58, %v694_v10  ;;  %v516_v44 = vpop.f32.mrf.mxu2 }
 0x12c   :  { %912 = vst.msk [vmem:[%s1792_s6 + $0x88] sm:$0xff] %vm894_vm2, %v887_v17  ;;  %v517_v5 = vadd.f32 %v516_v44, %v428_v51 }
 0x12d   :  { %v886_v23 = vmax.f32 %v862_v30, 0.0 }
 0x12e   :  { %v696_v43 = vmul.f32 %v1603_v52, %v517_v5 }
 0x12f   :  { %911 = vst.msk [vmem:[%s1792_s6 + $0x80] sm:$0xff] %vm894_vm2, %v886_v23 }
 0x130   :  { %v864_v11 = vadd.f32 %v1687_v1, %v696_v43 }
 0x132   :  { %v888_v20 = vmax.f32 %v864_v11, 0.0 }
 0x134   :  { %913 = vst.msk [vmem:[%s1792_s6 + $0x90] sm:$0xff] %vm894_vm2, %v888_v20 }

// kernel: your_network_forward.21
= control target key start
LH: loop header
LB: loop body
LE: loop exit
PB: predicated region body
PF: predicated region fallthrough
CT: control target
= control target key end

     0   :  { %vm19_vm0 = vcmask 64512   ;;  %v66_v0 = vmov 0   ;;  %s107_s2 = inlined_call_operand.vmem [shape: f32[8,1], index: 2, kind: input, shape index: {}]   ;;  %s108_s0 = inlined_call_operand.vmem [shape: f32[8,128], index: 0, kind: input, shape index: {}]   ;;  %s109_s1 = inlined_call_operand.vmem [shape: f32[8,8], index: 1, kind: input, shape index: {}]   ;;  %s110_s3 = inlined_call_operand.vmem [shape: f32[8,1], index: 3, kind: input, shape index: {}]   ;;  %s111_s4 = inlined_call_operand.vmem [shape: f32[8,128], index: 4, kind: output, shape index: {}]  }
   0x1   :  { %65 = vset.pattern.permute.xlu0 %v66_v0  ;;  %v43_v1 = vld [vmem:[%s107_s2] sm:$0xff] }
   0x2   :  { %v18_v2 = vld [vmem:[%s108_s0] sm:$0xff]  ;;  %46 = vperm.xlu0 %65, %v43_v1  }
   0x3   :  { %v17_v3 = vld [vmem:[%s109_s1] sm:$0xff]  ;;  %38 = vmatpush.msra.mxu0 %v18_v2 }
   0x4   :  { %63 = vmatmul.msk.f32.vlgmr.msra.gmra.mxu0 %vm19_vm0, %v17_v3  ;;  %v50_v4 = vld [vmem:[%s110_s3] sm:$0xff] }
   0xa   :  { %53 = vperm.xlu0 %65, %v50_v4  }
  0x74   :  { %v47_v5 = vpop.permute.xlu0 %46 }
  0x7c   :  { %v54_v8 = vpop.permute.xlu0 %53 }
  0x81   :  { %v40_v6 = vpop.f32.mrf.mxu0 }
  0x82   :  { %v49_v7 = vmul.f32 %v47_v5, %v40_v6 }
  0x84   :  { %v56_v9 = vadd.f32 %v54_v8, %v49_v7 }
  0x86   :  { %v57_v10 = vmax.f32 %v56_v9, 0.0 }
  0x88   :  { %58 = vst [vmem:[%s111_s4] sm:$0xff] %v57_v10 }

// kernel: your_network_forward.22
= control target key start
LH: loop header
LB: loop body
LE: loop exit
PB: predicated region body
PF: predicated region fallthrough
CT: control target
= control target key end

     0   :  { %vm27_vm0 = vcmask 1043456   ;;  %v97_v0 = vmov 0   ;;  %vm20_vm1 = vcmask 31744   ;;  %s150_s3 = inlined_call_operand.vmem [shape: f32[16,1], index: 3, kind: input, shape index: {}]   ;;  %s151_s2 = inlined_call_operand.vmem [shape: f32[16,1], index: 2, kind: input, shape index: {}]   ;;  %s152_s0 = inlined_call_operand.vmem [shape: f32[4,128], index: 0, kind: input, shape index: {}]   ;;  %s153_s1 = inlined_call_operand.vmem [shape: f32[16,4], index: 1, kind: input, shape index: {}]   ;;  %s154_s4 = inlined_call_operand.vmem [shape: f32[16,128], index: 4, kind: output, shape index: {}]  }
   0x1   :  { %96 = vset.pattern.permute.xlu1 %v97_v0  ;;  %95 = vset.pattern.permute.xlu0 %v97_v0  ;;  %v68_v1 = vld [vmem:[%s150_s3] sm:$0xff]  ;;  %v18_v5 = vld [vmem:[%s153_s1 + $0x8] sm:$0xff] }
   0x2   :  { %v54_v2 = vld [vmem:[%s151_s2] sm:$0xff]  ;;  %72 = vperm.xlu1 %96, %v68_v1   ;;  %v69_v6 = vld [vmem:[%s150_s3 + $0x8] sm:$0xff] }
   0x3   :  { %v19_v3 = vld [vmem:[%s152_s0] sm:$0xf]  ;;  %58 = vperm.xlu0 %95, %v54_v2   ;;  %v55_v7 = vld [vmem:[%s151_s2 + $0x8] sm:$0xff] }
   0x4   :  { %v17_v4 = vld [vmem:[%s153_s1] sm:$0xff]  ;;  %90 = vmatpush.msk.msra.mxu0 %vm27_vm0, %v19_v3  ;;  %93 = vmatpush.msk.msra.mxu1 %vm27_vm0, %v19_v3 }
   0x5   :  { %91 = vmatmul.msk.f32.vlgmr.msra.gmra.mxu0 %vm20_vm1, %v17_v4  ;;  %92 = vmatmul.msk.f32.vlgmr.msra.gmra.mxu1 %vm20_vm1, %v18_v5 }
   0xa   :  { %77 = vperm.xlu1 %96, %v69_v6  }
   0xb   :  { %63 = vperm.xlu0 %95, %v55_v7  }
  0x74   :  { %v73_v9 = vpop.permute.xlu1 %72 }
  0x75   :  { %v59_v8 = vpop.permute.xlu0 %58 }
  0x7c   :  { %v78_v15 = vpop.permute.xlu1 %77 }
  0x7d   :  { %v64_v10 = vpop.permute.xlu0 %63 }
  0x82   :  { %v48_v11 = vpop.f32.mrf.mxu0  ;;  %v51_v12 = vpop.f32.mrf.mxu1 }
  0x83   :  { %v66_v13 = vmul.f32 %v59_v8, %v48_v11  ;;  %v67_v14 = vmul.f32 %v64_v10, %v51_v12 }
  0x85   :  { %v80_v16 = vadd.f32 %v73_v9, %v66_v13  ;;  %v81_v17 = vadd.f32 %v78_v15, %v67_v14 }
  0x87   :  { %v82_v18 = vmax.f32 %v80_v16, 0.0  ;;  %v83_v19 = vmax.f32 %v81_v17, 0.0 }
  0x89   :  { %84 = vst [vmem:[%s154_s4] sm:$0xff] %v82_v18 }
  0x8a   :  { %85 = vst [vmem:[%s154_s4 + $0x8] sm:$0xff] %v83_v19 }

// kernel: your_network_forward.23
= control target key start
LH: loop header
LB: loop body
LE: loop exit
PB: predicated region body
PF: predicated region fallthrough
CT: control target
= control target key end

     0   :  { %v491_v0 = vmov 0   ;;  %vm61_vm0 = vcmask 130048   ;;  %vm151_vm1 = vcmask 785408   ;;  %s800_s4 = inlined_call_operand.vmem [shape: f32[96,1], index: 4, kind: input, shape index: {}]   ;;  %s801_s1 = inlined_call_operand.vmem [shape: f32[16,128], index: 1, kind: input, shape index: {}]   ;;  %s802_s0 = inlined_call_operand.vmem [shape: f32[96,128], index: 0, kind: input, shape index: {}]   ;;  %s803_s3 = inlined_call_operand.vmem [shape: f32[96,16], index: 3, kind: input, shape index: {}]   ;;  %s804_s2 = inlined_call_operand.vmem [shape: f32[96,96], index: 2, kind: input, shape index: {}]   ;;  %s805_s5 = inlined_call_operand.vmem [shape: f32[96,1], index: 5, kind: input, shape index: {}]   ;;  %s806_s6 = inlined_call_operand.vmem [shape: f32[96,128], index: 6, kind: output, shape index: {}]  }
   0x1   :  { %490 = vset.pattern.permute.xlu2 %v491_v0  ;;  %489 = vset.pattern.permute.xlu1 %v491_v0  ;;  %v245_v1 = vld [vmem:[%s800_s4 + $0x20] sm:$0xff]  ;;  %v243_v2 = vld [vmem:[%s800_s4 + $0x10] sm:$0xff]  ;;  %v60_v4 = vld [vmem:[%s801_s1 + $0x8] sm:$0xff] }
   0x2   :  { %v241_v3 = vld [vmem:[%s800_s4] sm:$0xff]  ;;  %488 = vset.pattern.permute.xlu0 %v491_v0  ;;  %275 = vperm.xlu2 %490, %v245_v1   ;;  %v46_v5 = vld [vmem:[%s802_s0 + $0x58] sm:$0xff]  ;;  %v45_v7 = vld [vmem:[%s802_s0 + $0x50] sm:$0xff] }
   0x3   :  { %265 = vperm.xlu1 %489, %v243_v2   ;;  %255 = vperm.xlu0 %488, %v241_v3   ;;  %v59_v6 = vld [vmem:[%s801_s1] sm:$0xff]  ;;  %v44_v10 = vld [vmem:[%s802_s0 + $0x48] sm:$0xff]  ;;  %v244_v13 = vld [vmem:[%s800_s4 + $0x18] sm:$0xff] }
   0x4   :  { %112 = vmatpush.msra.mxu0 %v60_v4  ;;  %461 = vmatpush.msra.mxu3 %v60_v4  ;;  %v47_v8 = vld [vmem:[%s803_s3] sm:$0xff]  ;;  %v246_v11 = vld [vmem:[%s800_s4 + $0x28] sm:$0xff]  ;;  %v42_v15 = vld [vmem:[%s802_s0 + $0x38] sm:$0xff] }
   0x5   :  { %192 = vmatpush.msra.mxu1 %v46_v5  ;;  %463 = vmatpush.msra.mxu2 %v46_v5  ;;  %v55_v9 = vld [vmem:[%s803_s3 + $0x40] sm:$0xff]  ;;  %v242_v14 = vld [vmem:[%s800_s4 + $0x8] sm:$0xff]  ;;  %v41_v16 = vld [vmem:[%s802_s0 + $0x30] sm:$0xff] }
   0x6   :  { %113 = vmatpush.msra.mxu0 %v59_v6  ;;  %462 = vmatpush.msra.mxu3 %v59_v6  ;;  %v43_v12 = vld [vmem:[%s802_s0 + $0x40] sm:$0xff]  ;;  %v48_v17 = vld [vmem:[%s803_s3 + $0x8] sm:$0xff]  ;;  %v248_v22 = vld [vmem:[%s800_s4 + $0x38] sm:$0xff] }
   0x7   :  { %193 = vmatpush.msra.mxu1 %v45_v7  ;;  %465 = vmatpush.msra.mxu2 %v45_v7  ;;  %v56_v18 = vld [vmem:[%s803_s3 + $0x48] sm:$0xff]  ;;  %v249_v20 = vld [vmem:[%s800_s4 + $0x40] sm:$0xff]  ;;  %v247_v23 = vld [vmem:[%s800_s4 + $0x30] sm:$0xff] }
   0x8   :  { %437 = vmatmul.msk.f32.vlgmr.msra.gmra.mxu0 %vm61_vm0, %v47_v8  ;;  %445 = vmatmul.msk.f32.vlgmr.msra.gmra.mxu3 %vm61_vm0, %v55_v9  ;;  %v40_v19 = vld [vmem:[%s802_s0 + $0x28] sm:$0xff]  ;;  %v39_v21 = vld [vmem:[%s802_s0 + $0x20] sm:$0xff]  ;;  %v38_v24 = vld [vmem:[%s802_s0 + $0x18] sm:$0xff] }
   0x9   :  { %194 = vmatpush.msra.mxu1 %v44_v10  ;;  %467 = vmatpush.msra.mxu2 %v44_v10  ;;  %v37_v25 = vld [vmem:[%s802_s0 + $0x10] sm:$0xff]  ;;  %v36_v28 = vld [vmem:[%s802_s0 + $0x8] sm:$0xff]  ;;  %v252_v29 = vld [vmem:[%s800_s4 + $0x58] sm:$0xff] }
   0xa   :  { %280 = vperm.xlu2 %490, %v246_v11   ;;  %464 = vmatpush.msrb.mxu3 %v46_v5  ;;  %v49_v26 = vld [vmem:[%s803_s3 + $0x10] sm:$0xff]  ;;  %v35_v30 = vld [vmem:[%s802_s0] sm:$0xff]  ;;  %v28_v32 = vld [vmem:[%s804_s2 + $0x28] sm:$0xff] }
   0xb   :  { %195 = vmatpush.msra.mxu1 %v43_v12  ;;  %469 = vmatpush.msra.mxu2 %v43_v12  ;;  %v57_v27 = vld [vmem:[%s803_s3 + $0x50] sm:$0xff]  ;;  %v23_v31 = vld [vmem:[%s804_s2] sm:$0xff]  ;;  %v250_v34 = vld [vmem:[%s800_s4 + $0x48] sm:$0xff] }
   0xc   :  { %270 = vperm.xlu1 %489, %v244_v13   ;;  %260 = vperm.xlu0 %488, %v242_v14   ;;  %v251_v33 = vld [vmem:[%s800_s4 + $0x50] sm:$0xff]  ;;  %v50_v35 = vld [vmem:[%s803_s3 + $0x18] sm:$0xff]  ;;  %v24_v38 = vld [vmem:[%s804_s2 + $0x8] sm:$0xff] }
   0xd   :  { %196 = vmatpush.msra.mxu1 %v42_v15  ;;  %471 = vmatpush.msra.mxu2 %v42_v15  ;;  %v58_v36 = vld [vmem:[%s803_s3 + $0x58] sm:$0xff]  ;;  %v327_v37 = vld [vmem:[%s805_s5 + $0x10] sm:$0xff]  ;;  %v326_v40 = vld [vmem:[%s805_s5 + $0x8] sm:$0xff] }
   0xe   :  { %466 = vmatpush.msrb.mxu3 %v45_v7  ;;  %v29_v39 = vld [vmem:[%s804_s2 + $0x30] sm:$0xff]  ;;  %v325_v41 = vld [vmem:[%s805_s5] sm:$0xff]  ;;  %v330_v44 = vld [vmem:[%s805_s5 + $0x28] sm:$0xff] }
   0xf   :  { %197 = vmatpush.msra.mxu1 %v41_v16  ;;  %473 = vmatpush.msra.mxu2 %v41_v16  ;;  %v51_v42 = vld [vmem:[%s803_s3 + $0x20] sm:$0xff]  ;;  %v33_v43 = vld [vmem:[%s804_s2 + $0x50] sm:$0xff]  ;;  %v30_v46 = vld [vmem:[%s804_s2 + $0x38] sm:$0xff] }
  0x10   :  { %438 = vmatmul.msk.f32.gmra.mxu0 %vm61_vm0, %v48_v17  ;;  %446 = vmatmul.msk.f32.gmra.mxu3 %vm61_vm0, %v56_v18  ;;  %v25_v45 = vld [vmem:[%s804_s2 + $0x10] sm:$0xff]  ;;  %v329_v47 = vld [vmem:[%s805_s5 + $0x20] sm:$0xff]  ;;  %v328_v48 = vld [vmem:[%s805_s5 + $0x18] sm:$0xff] }
  0x11   :  { %198 = vmatpush.msra.mxu1 %v40_v19  ;;  %475 = vmatpush.msra.mxu2 %v40_v19  ;;  %v52_v49 = vld [vmem:[%s803_s3 + $0x28] sm:$0xff]  ;;  %v34_v50 = vld [vmem:[%s804_s2 + $0x58] sm:$0xff]  ;;  %v333_v51 = vld [vmem:[%s805_s5 + $0x40] sm:$0xff] }
  0x12   :  { %295 = vperm.xlu2 %490, %v249_v20   ;;  %468 = vmatpush.msrb.mxu3 %v44_v10  ;;  %v26_v52 = vld [vmem:[%s804_s2 + $0x18] sm:$0xff]  ;;  %v31_v53 = vld [vmem:[%s804_s2 + $0x40] sm:$0xff]  ;;  %v331_v55 = vld [vmem:[%s805_s5 + $0x30] sm:$0xff] }
  0x13   :  { %199 = vmatpush.msra.mxu1 %v39_v21  ;;  %477 = vmatpush.msra.mxu2 %v39_v21  ;;  %v332_v54 = vld [vmem:[%s805_s5 + $0x38] sm:$0xff]  ;;  %v53_v56 = vld [vmem:[%s803_s3 + $0x30] sm:$0xff]  ;;  %v27_v58 = vld [vmem:[%s804_s2 + $0x20] sm:$0xff] }
  0x14   :  { %290 = vperm.xlu1 %489, %v248_v22   ;;  %285 = vperm.xlu0 %488, %v247_v23   ;;  %v336_v57 = vld [vmem:[%s805_s5 + $0x58] sm:$0xff]  ;;  %v32_v59 = vld [vmem:[%s804_s2 + $0x48] sm:$0xff]  ;;  %v335_v60 = vld [vmem:[%s805_s5 + $0x50] sm:$0xff] }
  0x15   :  { %200 = vmatpush.msra.mxu1 %v38_v24  ;;  %479 = vmatpush.msra.mxu2 %v38_v24  ;;  %v334_v61 = vld [vmem:[%s805_s5 + $0x48] sm:$0xff]  ;;  %v54_v62 = vld [vmem:[%s803_s3 + $0x38] sm:$0xff] }
  0x16   :  { %470 = vmatpush.msrb.mxu3 %v43_v12 }
  0x17   :  { %201 = vmatpush.msra.mxu1 %v37_v25  ;;  %481 = vmatpush.msra.mxu2 %v37_v25 }
  0x18   :  { %439 = vmatmul.msk.f32.gmra.mxu0 %vm61_vm0, %v49_v26  ;;  %447 = vmatmul.msk.f32.gmra.mxu3 %vm61_vm0, %v57_v27 }
  0x19   :  { %472 = vmatpush.msrb.mxu3 %v42_v15  ;;  %202 = vmatpush.msra.mxu1 %v36_v28 }
  0x1a   :  { %483 = vmatpush.msra.mxu2 %v36_v28  ;;  %310 = vperm.xlu2 %490, %v252_v29  }
  0x1b   :  { %474 = vmatpush.msrb.mxu3 %v41_v16  ;;  %203 = vmatpush.msra.mxu1 %v35_v30 }
  0x1c   :  { %485 = vmatpush.msra.mxu2 %v35_v30  ;;  %449 = vmatmul.msk.f32.vlgmr.msra.gmra.mxu1 %vm151_vm1, %v23_v31 }
  0x1d   :  { %454 = vmatmul.msk.f32.vlgmr.msra.gmra.mxu2 %vm151_vm1, %v28_v32  ;;  %305 = vperm.xlu1 %489, %v251_v33  }
  0x1e   :  { %300 = vperm.xlu0 %488, %v250_v34   ;;  %476 = vmatpush.msrb.mxu3 %v40_v19 }
  0x20   :  { %478 = vmatpush.msrb.mxu3 %v39_v21  ;;  %440 = vmatmul.msk.f32.gmra.mxu0 %vm61_vm0, %v50_v35 }
  0x21   :  { %448 = vmatmul.msk.f32.gmra.mxu3 %vm61_vm0, %v58_v36 }
  0x22   :  { %480 = vmatpush.msrb.mxu3 %v38_v24  ;;  %349 = vperm.xlu2 %490, %v327_v37  }
  0x24   :  { %482 = vmatpush.msrb.mxu3 %v37_v25  ;;  %450 = vmatmul.msk.f32.gmra.mxu1 %vm151_vm1, %v24_v38 }
  0x25   :  { %455 = vmatmul.msk.f32.gmra.mxu2 %vm151_vm1, %v29_v39  ;;  %344 = vperm.xlu1 %489, %v326_v40  }
  0x26   :  { %339 = vperm.xlu0 %488, %v325_v41   ;;  %484 = vmatpush.msrb.mxu3 %v36_v28 }
  0x28   :  { %486 = vmatpush.msrb.mxu3 %v35_v30  ;;  %441 = vmatmul.msk.f32.gmra.mxu0 %vm61_vm0, %v51_v42 }
  0x29   :  { %459 = vmatmul.msk.f32.vlgmr.msrb.gmra.mxu3 %vm151_vm1, %v33_v43 }
  0x2a   :  { %364 = vperm.xlu2 %490, %v330_v44  }
  0x2c   :  { %451 = vmatmul.msk.f32.gmra.mxu1 %vm151_vm1, %v25_v45 }
  0x2d   :  { %456 = vmatmul.msk.f32.gmra.mxu2 %vm151_vm1, %v30_v46  ;;  %359 = vperm.xlu1 %489, %v329_v47  }
  0x2e   :  { %354 = vperm.xlu0 %488, %v328_v48  }
  0x30   :  { %442 = vmatmul.msk.f32.gmra.mxu0 %vm61_vm0, %v52_v49 }
  0x31   :  { %460 = vmatmul.msk.f32.gmra.mxu3 %vm151_vm1, %v34_v50 }
  0x32   :  { %379 = vperm.xlu2 %490, %v333_v51  }
  0x34   :  { %452 = vmatmul.msk.f32.gmra.mxu1 %vm151_vm1, %v26_v52 }
  0x35   :  { %457 = vmatmul.msk.f32.gmra.mxu2 %vm151_vm1, %v31_v53  ;;  %374 = vperm.xlu1 %489, %v332_v54  }
  0x36   :  { %369 = vperm.xlu0 %488, %v331_v55  }
  0x38   :  { %443 = vmatmul.msk.f32.gmra.mxu0 %vm61_vm0, %v53_v56 }
  0x3a   :  { %394 = vperm.xlu2 %490, %v336_v57  }
  0x3c   :  { %453 = vmatmul.msk.f32.gmra.mxu1 %vm151_vm1, %v27_v58 }
  0x3d   :  { %458 = vmatmul.msk.f32.gmra.mxu2 %vm151_vm1, %v32_v59  ;;  %389 = vperm.xlu1 %489, %v335_v60  }
  0x3e   :  { %384 = vperm.xlu0 %488, %v334_v61  }
  0x40   :  { %444 = vmatmul.msk.f32.gmra.mxu0 %vm61_vm0, %v54_v62 }
  0x5c   :  { %v737_v63 = vpop.permute.xlu2 %275 }
  0x64   :  { %v281_v2 = vpop.permute.xlu2 %280 }
  0x6c   :  { %v739_v6 = vpop.permute.xlu2 %295 }
  0x74   :  { %v311_v12 = vpop.permute.xlu2 %310 }
  0x75   :  { %v266_v0 = vpop.permute.xlu1 %265  ;;  %v256_v1 = vpop.permute.xlu0 %255 }
  0x7c   :  { %v350_v18 = vpop.permute.xlu2 %349 }
  0x7e   :  { %v271_v3 = vpop.permute.xlu1 %270  ;;  %v261_v4 = vpop.permute.xlu0 %260 }
  0x84   :  { %v365_v30 = vpop.permute.xlu2 %364 }
  0x85   :  { %v115_v5 = vpop.f32.mrf.mxu0 }
  0x86   :  { %v741_v7 = vpop.permute.xlu1 %290  ;;  %v743_v8 = vpop.permute.xlu0 %285 }
  0x8b   :  { %v745_v9 = vpop.f32.mrf.mxu3 }
  0x8c   :  { %v380_v44 = vpop.permute.xlu2 %379 }
  0x8d   :  { %v118_v10 = vpop.f32.mrf.mxu0 }
  0x8f   :  { %v306_v11 = vpop.permute.xlu1 %305 }
  0x90   :  { %v747_v13 = vpop.permute.xlu0 %300 }
  0x93   :  { %v749_v14 = vpop.f32.mrf.mxu3 }
  0x95   :  { %v121_v15 = vpop.f32.mrf.mxu0 }
  0x97   :  { %v345_v16 = vpop.permute.xlu1 %344 }
  0x98   :  { %v340_v22 = vpop.permute.xlu0 %339 }
  0x99   :  { %v205_v17 = vpop.f32.mrf.mxu1 }
  0x9a   :  { %v206_v19 = vadd.f32 %v205_v17, %v115_v5 }
  0x9b   :  { %v145_v20 = vpop.f32.mrf.mxu3 }
  0x9c   :  { %v313_v21 = vmul.f32 %v256_v1, %v206_v19 }
  0x9d   :  { %v124_v23 = vpop.f32.mrf.mxu0 }
  0x9e   :  { %v397_v24 = vadd.f32 %v340_v22, %v313_v21 }
  0x9f   :  { %v751_v25 = vpop.permute.xlu1 %359 }
  0xa0   :  { %v409_v26 = vmax.f32 %v397_v24, 0.0  ;;  %v220_v27 = vpop.f32.mrf.mxu2  ;;  %v355_v47 = vpop.permute.xlu0 %354 }
  0xa1   :  { %v208_v28 = vpop.f32.mrf.mxu1 }
  0xa2   :  { %421 = vst [vmem:[%s806_s6] sm:$0xff] %v409_v26  ;;  %v209_v29 = vadd.f32 %v208_v28, %v118_v10 }
  0xa4   :  { %v314_v31 = vmul.f32 %v261_v4, %v209_v29  ;;  %v148_v32 = vpop.f32.mrf.mxu3  ;;  %v395_v4 = vpop.permute.xlu2 %394 }
  0xa5   :  { %v127_v33 = vpop.f32.mrf.mxu0 }
  0xa6   :  { %v398_v34 = vadd.f32 %v345_v16, %v314_v31 }
  0xa7   :  { %v756_v35 = vpop.permute.xlu1 %374 }
  0xa8   :  { %v410_v36 = vmax.f32 %v398_v34, 0.0  ;;  %v223_v37 = vpop.f32.mrf.mxu2 }
  0xa9   :  { %v211_v38 = vpop.f32.mrf.mxu1 }
  0xaa   :  { %422 = vst [vmem:[%s806_s6 + $0x8] sm:$0xff] %v410_v36  ;;  %v212_v39 = vadd.f32 %v211_v38, %v121_v15 }
  0xac   :  { %v315_v40 = vmul.f32 %v266_v0, %v212_v39  ;;  %v235_v41 = vpop.f32.mrf.mxu3 }
  0xad   :  { %v236_v42 = vadd.f32 %v235_v41, %v145_v20  ;;  %v130_v43 = vpop.f32.mrf.mxu0 }
  0xae   :  { %v399_v45 = vadd.f32 %v350_v18, %v315_v40  ;;  %v221_v46 = vadd.f32 %v220_v27, %v130_v43 }
  0xaf   :  { %v390_v48 = vpop.permute.xlu1 %389  ;;  %v323_v49 = vmul.f32 %v306_v11, %v236_v42 }
  0xb0   :  { %v411_v50 = vmax.f32 %v399_v45, 0.0  ;;  %v318_v51 = vmul.f32 %v281_v2, %v221_v46  ;;  %v226_v52 = vpop.f32.mrf.mxu2 }
  0xb1   :  { %v407_v53 = vadd.f32 %v390_v48, %v323_v49  ;;  %v214_v54 = vpop.f32.mrf.mxu1 }
  0xb2   :  { %423 = vst [vmem:[%s806_s6 + $0x10] sm:$0xff] %v411_v50  ;;  %v402_v55 = vadd.f32 %v365_v30, %v318_v51  ;;  %v215_v56 = vadd.f32 %v214_v54, %v124_v23 }
  0xb3   :  { %v419_v57 = vmax.f32 %v407_v53, 0.0 }
  0xb4   :  { %v414_v58 = vmax.f32 %v402_v55, 0.0  ;;  %v316_v59 = vmul.f32 %v271_v3, %v215_v56  ;;  %v238_v60 = vpop.f32.mrf.mxu3  ;;  %v370_v3 = vpop.permute.xlu0 %369 }
  0xb5   :  { %431 = vst [vmem:[%s806_s6 + $0x50] sm:$0xff] %v419_v57  ;;  %v239_v61 = vadd.f32 %v238_v60, %v148_v32  ;;  %v133_v62 = vpop.f32.mrf.mxu0 }
  0xb6   :  { %426 = vst [vmem:[%s806_s6 + $0x28] sm:$0xff] %v414_v58  ;;  %v400_v0 = vadd.f32 %v355_v47, %v316_v59  ;;  %v224_v1 = vadd.f32 %v223_v37, %v133_v62 }
  0xb7   :  { %v324_v2 = vmul.f32 %v311_v12, %v239_v61 }
  0xb8   :  { %v412_v5 = vmax.f32 %v400_v0, 0.0  ;;  %v319_v10 = vmul.f32 %v743_v8, %v224_v1  ;;  %v229_v11 = vpop.f32.mrf.mxu2 }
  0xb9   :  { %v408_v15 = vadd.f32 %v395_v4, %v324_v2  ;;  %v230_v16 = vadd.f32 %v229_v11, %v745_v9  ;;  %v217_v17 = vpop.f32.mrf.mxu1 }
  0xba   :  { %424 = vst [vmem:[%s806_s6 + $0x18] sm:$0xff] %v412_v5  ;;  %v403_v18 = vadd.f32 %v370_v3, %v319_v10  ;;  %v218_v19 = vadd.f32 %v217_v17, %v127_v33 }
  0xbb   :  { %v420_v20 = vmax.f32 %v408_v15, 0.0  ;;  %v321_v21 = vmul.f32 %v739_v6, %v230_v16 }
  0xbc   :  { %v415_v12 = vmax.f32 %v403_v18, 0.0  ;;  %v317_v22 = vmul.f32 %v737_v63, %v218_v19  ;;  %v385_v30 = vpop.permute.xlu0 %384 }
  0xbd   :  { %432 = vst [vmem:[%s806_s6 + $0x58] sm:$0xff] %v420_v20  ;;  %v405_v8 = vadd.f32 %v380_v44, %v321_v21  ;;  %v136_v23 = vpop.f32.mrf.mxu0 }
  0xbe   :  { %427 = vst [vmem:[%s806_s6 + $0x30] sm:$0xff] %v415_v12  ;;  %v401_v9 = vadd.f32 %v751_v25, %v317_v22  ;;  %v227_v24 = vadd.f32 %v226_v52, %v136_v23 }
  0xbf   :  { %v417_v26 = vmax.f32 %v405_v8, 0.0 }
  0xc0   :  { %v413_v27 = vmax.f32 %v401_v9, 0.0  ;;  %v320_v6 = vmul.f32 %v741_v7, %v227_v24  ;;  %v232_v28 = vpop.f32.mrf.mxu2 }
  0xc1   :  { %429 = vst [vmem:[%s806_s6 + $0x40] sm:$0xff] %v417_v26  ;;  %v233_v63 = vadd.f32 %v232_v28, %v749_v14 }
  0xc2   :  { %425 = vst [vmem:[%s806_s6 + $0x20] sm:$0xff] %v413_v27  ;;  %v404_v29 = vadd.f32 %v756_v35, %v320_v6 }
  0xc3   :  { %v322_v25 = vmul.f32 %v747_v13, %v233_v63 }
  0xc4   :  { %v416_v31 = vmax.f32 %v404_v29, 0.0 }
  0xc5   :  { %v406_v32 = vadd.f32 %v385_v30, %v322_v25 }
  0xc6   :  { %428 = vst [vmem:[%s806_s6 + $0x38] sm:$0xff] %v416_v31 }
  0xc7   :  { %v418_v7 = vmax.f32 %v406_v32, 0.0 }
  0xc9   :  { %430 = vst [vmem:[%s806_s6 + $0x48] sm:$0xff] %v418_v7 }

// kernel: your_network_forward.16
= control target key start
LH: loop header
LB: loop body
LE: loop exit
PB: predicated region body
PF: predicated region fallthrough
CT: control target
= control target key end

     0   :  { %v173_v2 = vmov 0   ;;  %vm33_vm0 = vcmask 1042432   ;;  %vm29_vm1 = vcmask 23552   ;;  %vm152_vm2 = vcmask 1043456   ;;  %s220_s0 = inlined_call_operand.vmem [shape: f32[3,512], index: 0, kind: input, shape index: {}]   ;;  %s221_s2 = inlined_call_operand.vmem [shape: f32[4,1], index: 2, kind: input, shape index: {}]   ;;  %s222_s1 = inlined_call_operand.vmem [shape: f32[4,3], index: 1, kind: input, shape index: {}]   ;;  %s223_s3 = inlined_call_operand.vmem [shape: f32[4,1], index: 3, kind: input, shape index: {}]   ;;  %s224_s4 = inlined_call_operand.vmem [shape: f32[4,512], index: 4, kind: output, shape index: {}]  }
   0x1   :  { %v18_v0 = vld [vmem:[%s220_s0] sm:$0x77]  ;;  %v19_v1 = vld [vmem:[%s220_s0 + $0x8] sm:$0x77]  ;;  %172 = vset.pattern.permute.xlu0 %v173_v2 }
   0x2   :  { %22 = vst [vmem:[#allocation1] ss:$2 sm:$0xff] %v18_v0  ;;  %v122_v3 = vld [vmem:[%s221_s2] sm:$0xf] }
   0x3   :  { %24 = vst [vmem:[#allocation1 + $0x10] ss:$2 sm:$0xff] %v19_v1  ;;  %125 = vperm.xlu0 %172, %v122_v3   ;;  %v17_v4 = vld [vmem:[%s222_s1] sm:$0xf] }
   0x4   :  { %v132_v9 = vld [vmem:[%s223_s3] sm:$0xf] }
   0x9   :  { %v25_v5 = vld.sshfl [vmem:[#allocation1] sm:$0xff pattern:$0x75316420]  ;;  %v26_v6 = vld.sshfl [vmem:[#allocation1 + $0x8] sm:$0xff pattern:$0x75316420] }
   0xa   :  { %163 = vmatpush.msk.msra.mxu0 %vm33_vm0, %v25_v5  ;;  %165 = vmatpush.msk.msra.mxu1 %vm33_vm0, %v26_v6  ;;  %v27_v7 = vld.sshfl [vmem:[#allocation1 + $0x10] sm:$0xff pattern:$0x75316420]  ;;  %v28_v8 = vld.sshfl [vmem:[#allocation1 + $0x18] sm:$0xff pattern:$0x75316420] }
   0xb   :  { %167 = vmatpush.msk.msra.mxu2 %vm33_vm0, %v27_v7  ;;  %169 = vmatpush.msk.msra.mxu3 %vm33_vm0, %v28_v8 }
   0xc   :  { %164 = vmatmul.msk.f32.vlgmr.msra.gmra.mxu0 %vm29_vm1, %v17_v4  ;;  %166 = vmatmul.msk.f32.vlgmr.msra.gmra.mxu1 %vm29_vm1, %v17_v4 }
   0xd   :  { %168 = vmatmul.msk.f32.vlgmr.msra.gmra.mxu2 %vm29_vm1, %v17_v4  ;;  %170 = vmatmul.msk.f32.vlgmr.msra.gmra.mxu3 %vm29_vm1, %v17_v4 }
   0xe   :  { %135 = vperm.xlu0 %172, %v132_v9  }
  0x75   :  { %v126_v10 = vpop.permute.xlu0 %125 }
  0x80   :  { %v136_v15 = vpop.permute.xlu0 %135 }
  0x89   :  { %v59_v11 = vpop.f32.mrf.mxu0  ;;  %v79_v12 = vpop.f32.mrf.mxu1 }
  0x8a   :  { %v128_v13 = vmul.f32 %v126_v10, %v59_v11  ;;  %v129_v14 = vmul.f32 %v126_v10, %v79_v12 }
  0x8c   :  { %v138_v16 = vadd.f32 %v136_v15, %v128_v13  ;;  %v139_v17 = vadd.f32 %v136_v15, %v129_v14 }
  0x8e   :  { %v143_v18 = vmax.f32 %v139_v17, 0.0  ;;  %v142_v19 = vmax.f32 %v138_v16, 0.0 }
  0x90   :  { %v150_v20 = vrot.slane %v143_v18, 4  ;;  %v99_v21 = vpop.f32.mrf.mxu2  ;;  %v119_v22 = vpop.f32.mrf.mxu3 }
  0x91   :  { %v130_v23 = vmul.f32 %v126_v10, %v99_v21  ;;  %v131_v24 = vmul.f32 %v126_v10, %v119_v22 }
  0x92   :  { %v153_v25 = vsel %vm152_vm2, %v142_v19, %v150_v20 }
  0x93   :  { %157 = vst [vmem:[%s224_s4] sm:$0xff] %v153_v25  ;;  %v140_v26 = vadd.f32 %v136_v15, %v130_v23  ;;  %v141_v27 = vadd.f32 %v136_v15, %v131_v24 }
  0x95   :  { %v145_v28 = vmax.f32 %v141_v27, 0.0  ;;  %v144_v29 = vmax.f32 %v140_v26, 0.0 }
  0x97   :  { %v151_v30 = vrot.slane %v145_v28, 4 }
  0x99   :  { %v154_v31 = vsel %vm152_vm2, %v144_v29, %v151_v30 }
  0x9a   :  { %158 = vst [vmem:[%s224_s4 + $0x8] sm:$0xff] %v154_v31 }

// kernel: your_network_forward.17
= control target key start
LH: loop header
LB: loop body
LE: loop exit
PB: predicated region body
PF: predicated region fallthrough
CT: control target
= control target key end

     0   :  { %vm22_vm0 = vcmask 64512   ;;  %v144_v3 = vmov 0   ;;  %s203_s0 = inlined_call_operand.vmem [shape: f32[8,512], index: 0, kind: input, shape index: {}]   ;;  %s204_s1 = inlined_call_operand.vmem [shape: f32[8,8], index: 1, kind: input, shape index: {}]   ;;  %s205_s2 = inlined_call_operand.vmem [shape: f32[8,1], index: 2, kind: input, shape index: {}]   ;;  %s206_s3 = inlined_call_operand.vmem [shape: f32[8,1], index: 3, kind: input, shape index: {}]   ;;  %s207_s4 = inlined_call_operand.vmem [shape: f32[8,512], index: 4, kind: output, shape index: {}]  }
   0x1   :  { %v18_v0 = vld [vmem:[%s203_s0] sm:$0xff]  ;;  %v19_v1 = vld [vmem:[%s203_s0 + $0x8] sm:$0xff]  ;;  %v20_v2 = vld [vmem:[%s203_s0 + $0x10] sm:$0xff]  ;;  %143 = vset.pattern.permute.xlu0 %v144_v3 }
   0x2   :  { %41 = vmatpush.msra.mxu0 %v18_v0  ;;  %61 = vmatpush.msra.mxu1 %v19_v1  ;;  %v21_v4 = vld [vmem:[%s203_s0 + $0x18] sm:$0xff]  ;;  %v17_v5 = vld [vmem:[%s204_s1] sm:$0xff] }
   0x3   :  { %81 = vmatpush.msra.mxu2 %v20_v2  ;;  %101 = vmatpush.msra.mxu3 %v21_v4  ;;  %v106_v6 = vld [vmem:[%s205_s2] sm:$0xff] }
   0x4   :  { %138 = vmatmul.msk.f32.vlgmr.msra.gmra.mxu0 %vm22_vm0, %v17_v5  ;;  %139 = vmatmul.msk.f32.vlgmr.msra.gmra.mxu1 %vm22_vm0, %v17_v5  ;;  %v116_v7 = vld [vmem:[%s206_s3] sm:$0xff] }
   0x5   :  { %140 = vmatmul.msk.f32.vlgmr.msra.gmra.mxu2 %vm22_vm0, %v17_v5  ;;  %141 = vmatmul.msk.f32.vlgmr.msra.gmra.mxu3 %vm22_vm0, %v17_v5 }
   0x6   :  { %109 = vperm.xlu0 %143, %v106_v6  }
   0xe   :  { %119 = vperm.xlu0 %143, %v116_v7  }
  0x78   :  { %v110_v8 = vpop.permute.xlu0 %109 }
  0x80   :  { %v120_v13 = vpop.permute.xlu0 %119 }
  0x81   :  { %v43_v9 = vpop.f32.mrf.mxu0  ;;  %v63_v10 = vpop.f32.mrf.mxu1 }
  0x82   :  { %v112_v11 = vmul.f32 %v110_v8, %v43_v9  ;;  %v113_v12 = vmul.f32 %v110_v8, %v63_v10 }
  0x84   :  { %v122_v14 = vadd.f32 %v120_v13, %v112_v11  ;;  %v123_v15 = vadd.f32 %v120_v13, %v113_v12 }
  0x86   :  { %v126_v16 = vmax.f32 %v122_v14, 0.0  ;;  %v127_v17 = vmax.f32 %v123_v15, 0.0 }
  0x88   :  { %130 = vst [vmem:[%s207_s4] sm:$0xff] %v126_v16  ;;  %v83_v18 = vpop.f32.mrf.mxu2  ;;  %v103_v19 = vpop.f32.mrf.mxu3 }
  0x89   :  { %131 = vst [vmem:[%s207_s4 + $0x8] sm:$0xff] %v127_v17  ;;  %v114_v20 = vmul.f32 %v110_v8, %v83_v18  ;;  %v115_v21 = vmul.f32 %v110_v8, %v103_v19 }
  0x8b   :  { %v124_v22 = vadd.f32 %v120_v13, %v114_v20  ;;  %v125_v23 = vadd.f32 %v120_v13, %v115_v21 }
  0x8d   :  { %v128_v24 = vmax.f32 %v124_v22, 0.0  ;;  %v129_v25 = vmax.f32 %v125_v23, 0.0 }
  0x8f   :  { %132 = vst [vmem:[%s207_s4 + $0x10] sm:$0xff] %v128_v24 }
  0x90   :  { %133 = vst [vmem:[%s207_s4 + $0x18] sm:$0xff] %v129_v25 }

// kernel: your_network_forward.18
= control target key start
LH: loop header
LB: loop body
LE: loop exit
PB: predicated region body
PF: predicated region fallthrough
CT: control target
= control target key end

     0   :  { %v213_v2 = vmov 0   ;;  %vm37_vm0 = vcmask 1043456   ;;  %vm30_vm1 = vcmask 31744   ;;  %s295_s0 = inlined_call_operand.vmem [shape: f32[4,512], index: 0, kind: input, shape index: {}]   ;;  %s296_s2 = inlined_call_operand.vmem [shape: f32[16,1], index: 2, kind: input, shape index: {}]   ;;  %s297_s3 = inlined_call_operand.vmem [shape: f32[16,1], index: 3, kind: input, shape index: {}]   ;;  %s298_s1 = inlined_call_operand.vmem [shape: f32[16,4], index: 1, kind: input, shape index: {}]   ;;  %s299_s4 = inlined_call_operand.vmem [shape: f32[16,512], index: 4, kind: output, shape index: {}]  }
   0x1   :  { %v19_v0 = vld [vmem:[%s295_s0] sm:$0xff]  ;;  %v20_v1 = vld [vmem:[%s295_s0 + $0x8] sm:$0xff]  ;;  %211 = vset.pattern.permute.xlu0 %v213_v2  ;;  %212 = vset.pattern.permute.xlu1 %v213_v2 }
   0x2   :  { %23 = vst [vmem:[#allocation1] ss:$2 sm:$0xff] %v19_v0  ;;  %v138_v3 = vld [vmem:[%s296_s2] sm:$0xff]  ;;  %v139_v10 = vld [vmem:[%s296_s2 + $0x8] sm:$0xff] }
   0x3   :  { %v158_v4 = vld [vmem:[%s297_s3] sm:$0xff]  ;;  %25 = vst [vmem:[#allocation1 + $0x10] ss:$2 sm:$0xff] %v20_v1  ;;  %142 = vperm.xlu0 %211, %v138_v3   ;;  %v159_v11 = vld [vmem:[%s297_s3 + $0x8] sm:$0xff] }
   0x4   :  { %162 = vperm.xlu1 %212, %v158_v4   ;;  %v17_v5 = vld [vmem:[%s298_s1] sm:$0xff]  ;;  %v18_v12 = vld [vmem:[%s298_s1 + $0x8] sm:$0xff] }
   0x9   :  { %v26_v6 = vld.sshfl [vmem:[#allocation1] sm:$0xff pattern:$0x75316420]  ;;  %v27_v7 = vld.sshfl [vmem:[#allocation1 + $0x8] sm:$0xff pattern:$0x75316420] }
   0xa   :  { %198 = vmatpush.msk.msra.mxu0 %vm37_vm0, %v26_v6  ;;  %201 = vmatpush.msk.msra.mxu1 %vm37_vm0, %v27_v7  ;;  %v28_v8 = vld.sshfl [vmem:[#allocation1 + $0x10] sm:$0xff pattern:$0x75316420]  ;;  %v29_v9 = vld.sshfl [vmem:[#allocation1 + $0x18] sm:$0xff pattern:$0x75316420] }
   0xb   :  { %204 = vmatpush.msk.msra.mxu2 %vm37_vm0, %v28_v8  ;;  %207 = vmatpush.msk.msra.mxu3 %vm37_vm0, %v29_v9 }
   0xc   :  { %199 = vmatmul.msk.f32.vlgmr.msra.gmra.mxu0 %vm30_vm1, %v17_v5  ;;  %202 = vmatmul.msk.f32.vlgmr.msra.gmra.mxu1 %vm30_vm1, %v17_v5 }
   0xd   :  { %205 = vmatmul.msk.f32.vlgmr.msra.gmra.mxu2 %vm30_vm1, %v17_v5  ;;  %208 = vmatmul.msk.f32.vlgmr.msra.gmra.mxu3 %vm30_vm1, %v17_v5 }
   0xe   :  { %147 = vperm.xlu0 %211, %v139_v10   ;;  %167 = vperm.xlu1 %212, %v159_v11  }
  0x14   :  { %200 = vmatmul.msk.f32.gmra.mxu0 %vm30_vm1, %v18_v12  ;;  %203 = vmatmul.msk.f32.gmra.mxu1 %vm30_vm1, %v18_v12 }
  0x15   :  { %206 = vmatmul.msk.f32.gmra.mxu2 %vm30_vm1, %v18_v12  ;;  %209 = vmatmul.msk.f32.gmra.mxu3 %vm30_vm1, %v18_v12 }
  0x75   :  { %v143_v13 = vpop.permute.xlu0 %142 }
  0x76   :  { %v163_v14 = vpop.permute.xlu1 %162 }
  0x80   :  { %v148_v23 = vpop.permute.xlu0 %147  ;;  %v168_v34 = vpop.permute.xlu1 %167 }
  0x89   :  { %v63_v15 = vpop.f32.mrf.mxu0  ;;  %v86_v16 = vpop.f32.mrf.mxu1 }
  0x8a   :  { %v150_v17 = vmul.f32 %v143_v13, %v63_v15  ;;  %v151_v18 = vmul.f32 %v143_v13, %v86_v16 }
  0x8c   :  { %v170_v19 = vadd.f32 %v163_v14, %v150_v17  ;;  %v171_v20 = vadd.f32 %v163_v14, %v151_v18 }
  0x8e   :  { %v178_v21 = vmax.f32 %v170_v19, 0.0  ;;  %v179_v22 = vmax.f32 %v171_v20, 0.0 }
  0x90   :  { %186 = vst [vmem:[%s299_s4] sm:$0xff] %v178_v21  ;;  %v109_v24 = vpop.f32.mrf.mxu2  ;;  %v132_v25 = vpop.f32.mrf.mxu3 }
  0x91   :  { %187 = vst [vmem:[%s299_s4 + $0x8] sm:$0xff] %v179_v22  ;;  %v152_v26 = vmul.f32 %v143_v13, %v109_v24  ;;  %v153_v27 = vmul.f32 %v143_v13, %v132_v25  ;;  %v66_v28 = vpop.f32.mrf.mxu0  ;;  %v89_v29 = vpop.f32.mrf.mxu1 }
  0x92   :  { %v154_v30 = vmul.f32 %v148_v23, %v66_v28  ;;  %v155_v31 = vmul.f32 %v148_v23, %v89_v29 }
  0x93   :  { %v172_v32 = vadd.f32 %v163_v14, %v152_v26  ;;  %v173_v33 = vadd.f32 %v163_v14, %v153_v27 }
  0x94   :  { %v174_v35 = vadd.f32 %v168_v34, %v154_v30  ;;  %v175_v36 = vadd.f32 %v168_v34, %v155_v31 }
  0x95   :  { %v180_v37 = vmax.f32 %v172_v32, 0.0  ;;  %v181_v38 = vmax.f32 %v173_v33, 0.0 }
  0x96   :  { %v182_v39 = vmax.f32 %v174_v35, 0.0  ;;  %v183_v40 = vmax.f32 %v175_v36, 0.0 }
  0x97   :  { %188 = vst [vmem:[%s299_s4 + $0x10] sm:$0xff] %v180_v37 }
  0x98   :  { %189 = vst [vmem:[%s299_s4 + $0x18] sm:$0xff] %v181_v38  ;;  %v112_v41 = vpop.f32.mrf.mxu2  ;;  %v135_v42 = vpop.f32.mrf.mxu3 }
  0x99   :  { %190 = vst [vmem:[%s299_s4 + $0x20] sm:$0xff] %v182_v39  ;;  %v156_v43 = vmul.f32 %v148_v23, %v112_v41  ;;  %v157_v44 = vmul.f32 %v148_v23, %v135_v42 }
  0x9a   :  { %191 = vst [vmem:[%s299_s4 + $0x28] sm:$0xff] %v183_v40 }
  0x9b   :  { %v176_v45 = vadd.f32 %v168_v34, %v156_v43  ;;  %v177_v46 = vadd.f32 %v168_v34, %v157_v44 }
  0x9d   :  { %v184_v47 = vmax.f32 %v176_v45, 0.0  ;;  %v185_v48 = vmax.f32 %v177_v46, 0.0 }
  0x9f   :  { %192 = vst [vmem:[%s299_s4 + $0x30] sm:$0xff] %v184_v47 }
  0xa0   :  { %193 = vst [vmem:[%s299_s4 + $0x38] sm:$0xff] %v185_v48 }

// kernel: your_network_forward.19
= control target key start
LH: loop header
LB: loop body
LE: loop exit
PB: predicated region body
PF: predicated region fallthrough
CT: control target
= control target key end

     0   :  { %vm67_vm0 = vcmask 130048   ;;  %v609_v34 = vmov 0   ;;  %vm226_vm1 = vcmask 392192   ;;  %s1005_s1 = inlined_call_operand.vmem [shape: f32[16,512], index: 1, kind: input, shape index: {}]   ;;  %s1006_s3 = inlined_call_operand.vmem [shape: f32[48,16], index: 3, kind: input, shape index: {}]   ;;  %s1007_s0 = inlined_call_operand.vmem [shape: f32[48,512], index: 0, kind: input, shape index: {}]   ;;  %s1008_s4 = inlined_call_operand.vmem [shape: f32[48,1], index: 4, kind: input, shape index: {}]   ;;  %s1009_s5 = inlined_call_operand.vmem [shape: f32[48,1], index: 5, kind: input, shape index: {}]   ;;  %s1010_s2 = inlined_call_operand.vmem [shape: f32[48,48], index: 2, kind: input, shape index: {}]   ;;  %s1011_s6 = inlined_call_operand.vmem [shape: f32[48,512], index: 6, kind: output, shape index: {}]  }
   0x1   :  { %v63_v0 = vld [vmem:[%s1005_s1 + $0x20] sm:$0xff]  ;;  %v64_v1 = vld [vmem:[%s1005_s1 + $0x28] sm:$0xff]  ;;  %v65_v2 = vld [vmem:[%s1005_s1 + $0x30] sm:$0xff]  ;;  %606 = vset.pattern.permute.xlu0 %v609_v34  ;;  %607 = vset.pattern.permute.xlu1 %v609_v34 }
   0x2   :  { %100 = vmatpush.msra.mxu0 %v63_v0  ;;  %135 = vmatpush.msra.mxu1 %v64_v1  ;;  %v66_v3 = vld [vmem:[%s1005_s1 + $0x38] sm:$0xff]  ;;  %v59_v4 = vld [vmem:[%s1005_s1] sm:$0xff]  ;;  %v60_v5 = vld [vmem:[%s1005_s1 + $0x8] sm:$0xff] }
   0x3   :  { %170 = vmatpush.msra.mxu2 %v65_v2  ;;  %205 = vmatpush.msra.mxu3 %v66_v3  ;;  %v61_v6 = vld [vmem:[%s1005_s1 + $0x10] sm:$0xff]  ;;  %v62_v7 = vld [vmem:[%s1005_s1 + $0x18] sm:$0xff]  ;;  %v53_v8 = vld [vmem:[%s1006_s3] sm:$0xff] }
   0x4   :  { %101 = vmatpush.msra.mxu0 %v59_v4  ;;  %136 = vmatpush.msra.mxu1 %v60_v5  ;;  %v51_v9 = vld [vmem:[%s1007_s0 + $0xb0] sm:$0xff]  ;;  %v52_v10 = vld [vmem:[%s1007_s0 + $0xb8] sm:$0xff]  ;;  %v49_v11 = vld [vmem:[%s1007_s0 + $0xa0] sm:$0xff] }
   0x5   :  { %171 = vmatpush.msra.mxu2 %v61_v6  ;;  %206 = vmatpush.msra.mxu3 %v62_v7  ;;  %v50_v12 = vld [vmem:[%s1007_s0 + $0xa8] sm:$0xff]  ;;  %v47_v13 = vld [vmem:[%s1007_s0 + $0x90] sm:$0xff]  ;;  %v48_v14 = vld [vmem:[%s1007_s0 + $0x98] sm:$0xff] }
   0x6   :  { %557 = vmatmul.msk.f32.vlgmr.msra.gmra.mxu0 %vm67_vm0, %v53_v8  ;;  %563 = vmatmul.msk.f32.vlgmr.msra.gmra.mxu1 %vm67_vm0, %v53_v8  ;;  %v45_v15 = vld [vmem:[%s1007_s0 + $0x80] sm:$0xff]  ;;  %v46_v16 = vld [vmem:[%s1007_s0 + $0x88] sm:$0xff]  ;;  %v43_v17 = vld [vmem:[%s1007_s0 + $0x70] sm:$0xff] }
   0x7   :  { %569 = vmatmul.msk.f32.vlgmr.msra.gmra.mxu2 %vm67_vm0, %v53_v8  ;;  %575 = vmatmul.msk.f32.vlgmr.msra.gmra.mxu3 %vm67_vm0, %v53_v8  ;;  %v44_v18 = vld [vmem:[%s1007_s0 + $0x78] sm:$0xff]  ;;  %v41_v19 = vld [vmem:[%s1007_s0 + $0x60] sm:$0xff]  ;;  %v42_v20 = vld [vmem:[%s1007_s0 + $0x68] sm:$0xff] }
   0x8   :  { %325 = vmatpush.msrb.mxu2 %v51_v9  ;;  %360 = vmatpush.msrb.mxu3 %v52_v10  ;;  %v54_v21 = vld [vmem:[%s1006_s3 + $0x8] sm:$0xff]  ;;  %v39_v22 = vld [vmem:[%s1007_s0 + $0x50] sm:$0xff]  ;;  %v40_v23 = vld [vmem:[%s1007_s0 + $0x58] sm:$0xff] }
   0x9   :  { %255 = vmatpush.msrb.mxu0 %v49_v11  ;;  %290 = vmatpush.msrb.mxu1 %v50_v12  ;;  %v37_v24 = vld [vmem:[%s1007_s0 + $0x40] sm:$0xff]  ;;  %v38_v25 = vld [vmem:[%s1007_s0 + $0x48] sm:$0xff]  ;;  %v35_v26 = vld [vmem:[%s1007_s0 + $0x30] sm:$0xff] }
   0xa   :  { %326 = vmatpush.msrb.mxu2 %v47_v13  ;;  %361 = vmatpush.msrb.mxu3 %v48_v14  ;;  %v36_v27 = vld [vmem:[%s1007_s0 + $0x38] sm:$0xff]  ;;  %v33_v28 = vld [vmem:[%s1007_s0 + $0x20] sm:$0xff]  ;;  %v34_v29 = vld [vmem:[%s1007_s0 + $0x28] sm:$0xff] }
   0xb   :  { %256 = vmatpush.msrb.mxu0 %v45_v15  ;;  %291 = vmatpush.msrb.mxu1 %v46_v16  ;;  %v31_v30 = vld [vmem:[%s1007_s0 + $0x10] sm:$0xff]  ;;  %v32_v31 = vld [vmem:[%s1007_s0 + $0x18] sm:$0xff]  ;;  %v29_v32 = vld [vmem:[%s1007_s0] sm:$0xff] }
   0xc   :  { %327 = vmatpush.msrb.mxu2 %v43_v17  ;;  %362 = vmatpush.msrb.mxu3 %v44_v18  ;;  %v55_v33 = vld [vmem:[%s1006_s3 + $0x10] sm:$0xff]  ;;  %v30_v35 = vld [vmem:[%s1007_s0 + $0x8] sm:$0xff]  ;;  %v385_v36 = vld [vmem:[%s1008_s4] sm:$0xff] }
   0xd   :  { %257 = vmatpush.msrb.mxu0 %v41_v19  ;;  %292 = vmatpush.msrb.mxu1 %v42_v20  ;;  %v387_v37 = vld [vmem:[%s1008_s4 + $0x10] sm:$0xff]  ;;  %v56_v38 = vld [vmem:[%s1006_s3 + $0x18] sm:$0xff]  ;;  %v386_v39 = vld [vmem:[%s1008_s4 + $0x8] sm:$0xff] }
   0xe   :  { %558 = vmatmul.msk.f32.gmra.mxu0 %vm67_vm0, %v54_v21  ;;  %564 = vmatmul.msk.f32.gmra.mxu1 %vm67_vm0, %v54_v21  ;;  %v388_v40 = vld [vmem:[%s1008_s4 + $0x18] sm:$0xff]  ;;  %v57_v41 = vld [vmem:[%s1006_s3 + $0x20] sm:$0xff]  ;;  %v446_v43 = vld [vmem:[%s1009_s5 + $0x8] sm:$0xff] }
   0xf   :  { %570 = vmatmul.msk.f32.gmra.mxu2 %vm67_vm0, %v54_v21  ;;  %576 = vmatmul.msk.f32.gmra.mxu3 %vm67_vm0, %v54_v21  ;;  %v445_v42 = vld [vmem:[%s1009_s5] sm:$0xff]  ;;  %v58_v44 = vld [vmem:[%s1006_s3 + $0x28] sm:$0xff]  ;;  %v448_v48 = vld [vmem:[%s1009_s5 + $0x18] sm:$0xff] }
  0x10   :  { %328 = vmatpush.msrb.mxu2 %v39_v22  ;;  %363 = vmatpush.msrb.mxu3 %v40_v23  ;;  %v23_v45 = vld [vmem:[%s1010_s2] sm:$0xff]  ;;  %v24_v49 = vld [vmem:[%s1010_s2 + $0x8] sm:$0xff]  ;;  %v25_v51 = vld [vmem:[%s1010_s2 + $0x10] sm:$0xff] }
  0x11   :  { %258 = vmatpush.msrb.mxu0 %v37_v24  ;;  %293 = vmatpush.msrb.mxu1 %v38_v25  ;;  %v389_v46 = vld [vmem:[%s1008_s4 + $0x20] sm:$0xff]  ;;  %v390_v50 = vld [vmem:[%s1008_s4 + $0x28] sm:$0xff]  ;;  %v447_v52 = vld [vmem:[%s1009_s5 + $0x10] sm:$0xff] }
  0x12   :  { %329 = vmatpush.msrb.mxu2 %v35_v26  ;;  %364 = vmatpush.msrb.mxu3 %v36_v27  ;;  %v449_v47 = vld [vmem:[%s1009_s5 + $0x20] sm:$0xff]  ;;  %v26_v53 = vld [vmem:[%s1010_s2 + $0x18] sm:$0xff]  ;;  %v450_v54 = vld [vmem:[%s1009_s5 + $0x28] sm:$0xff] }
  0x13   :  { %259 = vmatpush.msrb.mxu0 %v33_v28  ;;  %294 = vmatpush.msrb.mxu1 %v34_v29  ;;  %v27_v55 = vld [vmem:[%s1010_s2 + $0x20] sm:$0xff]  ;;  %v28_v56 = vld [vmem:[%s1010_s2 + $0x28] sm:$0xff] }
  0x14   :  { %330 = vmatpush.msrb.mxu2 %v31_v30  ;;  %365 = vmatpush.msrb.mxu3 %v32_v31 }
  0x15   :  { %260 = vmatpush.msrb.mxu0 %v29_v32  ;;  %295 = vmatpush.msrb.mxu1 %v30_v35 }
  0x16   :  { %559 = vmatmul.msk.f32.gmra.mxu0 %vm67_vm0, %v55_v33  ;;  %565 = vmatmul.msk.f32.gmra.mxu1 %vm67_vm0, %v55_v33 }
  0x17   :  { %571 = vmatmul.msk.f32.gmra.mxu2 %vm67_vm0, %v55_v33  ;;  %577 = vmatmul.msk.f32.gmra.mxu3 %vm67_vm0, %v55_v33 }
  0x18   :  { %393 = vperm.xlu0 %606, %v385_v36   ;;  %608 = vset.pattern.permute.xlu2 %v609_v34 }
  0x19   :  { %403 = vperm.xlu1 %607, %v387_v37   ;;  %413 = vperm.xlu2 %608, %v389_v46  }
  0x1e   :  { %560 = vmatmul.msk.f32.gmra.mxu0 %vm67_vm0, %v56_v38  ;;  %566 = vmatmul.msk.f32.gmra.mxu1 %vm67_vm0, %v56_v38 }
  0x1f   :  { %572 = vmatmul.msk.f32.gmra.mxu2 %vm67_vm0, %v56_v38  ;;  %578 = vmatmul.msk.f32.gmra.mxu3 %vm67_vm0, %v56_v38 }
  0x20   :  { %398 = vperm.xlu0 %606, %v386_v39  }
  0x21   :  { %408 = vperm.xlu1 %607, %v388_v40   ;;  %418 = vperm.xlu2 %608, %v390_v50  }
  0x26   :  { %561 = vmatmul.msk.f32.gmra.mxu0 %vm67_vm0, %v57_v41  ;;  %567 = vmatmul.msk.f32.gmra.mxu1 %vm67_vm0, %v57_v41 }
  0x27   :  { %573 = vmatmul.msk.f32.gmra.mxu2 %vm67_vm0, %v57_v41  ;;  %579 = vmatmul.msk.f32.gmra.mxu3 %vm67_vm0, %v57_v41 }
  0x28   :  { %453 = vperm.xlu0 %606, %v445_v42  }
  0x29   :  { %458 = vperm.xlu1 %607, %v446_v43   ;;  %463 = vperm.xlu2 %608, %v447_v52  }
  0x2e   :  { %562 = vmatmul.msk.f32.gmra.mxu0 %vm67_vm0, %v58_v44  ;;  %568 = vmatmul.msk.f32.gmra.mxu1 %vm67_vm0, %v58_v44 }
  0x2f   :  { %574 = vmatmul.msk.f32.gmra.mxu2 %vm67_vm0, %v58_v44  ;;  %580 = vmatmul.msk.f32.gmra.mxu3 %vm67_vm0, %v58_v44 }
  0x30   :  { %468 = vperm.xlu0 %606, %v448_v48  }
  0x31   :  { %473 = vperm.xlu1 %607, %v449_v47   ;;  %478 = vperm.xlu2 %608, %v450_v54  }
  0x36   :  { %581 = vmatmul.msk.f32.vlgmr.msrb.gmra.mxu0 %vm226_vm1, %v23_v45  ;;  %587 = vmatmul.msk.f32.vlgmr.msrb.gmra.mxu1 %vm226_vm1, %v23_v45 }
  0x37   :  { %593 = vmatmul.msk.f32.vlgmr.msrb.gmra.mxu2 %vm226_vm1, %v23_v45  ;;  %599 = vmatmul.msk.f32.vlgmr.msrb.gmra.mxu3 %vm226_vm1, %v23_v45 }
  0x3e   :  { %582 = vmatmul.msk.f32.gmra.mxu0 %vm226_vm1, %v24_v49  ;;  %588 = vmatmul.msk.f32.gmra.mxu1 %vm226_vm1, %v24_v49 }
  0x3f   :  { %594 = vmatmul.msk.f32.gmra.mxu2 %vm226_vm1, %v24_v49  ;;  %600 = vmatmul.msk.f32.gmra.mxu3 %vm226_vm1, %v24_v49 }
  0x46   :  { %583 = vmatmul.msk.f32.gmra.mxu0 %vm226_vm1, %v25_v51  ;;  %589 = vmatmul.msk.f32.gmra.mxu1 %vm226_vm1, %v25_v51 }
  0x47   :  { %595 = vmatmul.msk.f32.gmra.mxu2 %vm226_vm1, %v25_v51  ;;  %601 = vmatmul.msk.f32.gmra.mxu3 %vm226_vm1, %v25_v51 }
  0x4e   :  { %584 = vmatmul.msk.f32.gmra.mxu0 %vm226_vm1, %v26_v53  ;;  %590 = vmatmul.msk.f32.gmra.mxu1 %vm226_vm1, %v26_v53 }
  0x4f   :  { %596 = vmatmul.msk.f32.gmra.mxu2 %vm226_vm1, %v26_v53  ;;  %602 = vmatmul.msk.f32.gmra.mxu3 %vm226_vm1, %v26_v53 }
  0x56   :  { %585 = vmatmul.msk.f32.gmra.mxu0 %vm226_vm1, %v27_v55  ;;  %591 = vmatmul.msk.f32.gmra.mxu1 %vm226_vm1, %v27_v55 }
  0x57   :  { %597 = vmatmul.msk.f32.gmra.mxu2 %vm226_vm1, %v27_v55  ;;  %603 = vmatmul.msk.f32.gmra.mxu3 %vm226_vm1, %v27_v55 }
  0x5e   :  { %586 = vmatmul.msk.f32.gmra.mxu0 %vm226_vm1, %v28_v56  ;;  %592 = vmatmul.msk.f32.gmra.mxu1 %vm226_vm1, %v28_v56 }
  0x5f   :  { %598 = vmatmul.msk.f32.gmra.mxu2 %vm226_vm1, %v28_v56  ;;  %604 = vmatmul.msk.f32.gmra.mxu3 %vm226_vm1, %v28_v56 }
  0x73   :  { %v891_v18 = vpop.permute.xlu2 %413 }
  0x7b   :  { %v905_v43 = vpop.permute.xlu2 %418 }
  0x83   :  { %v103_v57 = vpop.f32.mrf.mxu0  ;;  %v138_v58 = vpop.f32.mrf.mxu1 }
  0x8a   :  { %v173_v59 = vpop.f32.mrf.mxu2  ;;  %v208_v60 = vpop.f32.mrf.mxu3 }
  0x8b   :  { %v106_v61 = vpop.f32.mrf.mxu0  ;;  %v141_v62 = vpop.f32.mrf.mxu1 }
  0x8c   :  { %v394_v7 = vpop.permute.xlu0 %393  ;;  %v881_v12 = vpop.permute.xlu1 %403 }
  0x92   :  { %v176_v63 = vpop.f32.mrf.mxu2  ;;  %v211_v0 = vpop.f32.mrf.mxu3 }
  0x93   :  { %v861_v1 = vpop.f32.mrf.mxu0  ;;  %v863_v2 = vpop.f32.mrf.mxu1 }
  0x94   :  { %v399_v13 = vpop.permute.xlu0 %398  ;;  %v893_v19 = vpop.permute.xlu1 %408 }
  0x9a   :  { %v865_v3 = vpop.f32.mrf.mxu2  ;;  %v867_v4 = vpop.f32.mrf.mxu3 }
  0x9b   :  { %v869_v5 = vpop.f32.mrf.mxu0  ;;  %v871_v6 = vpop.f32.mrf.mxu1 }
  0x9c   :  { %v454_v26 = vpop.permute.xlu0 %453  ;;  %v459_v44 = vpop.permute.xlu1 %458 }
  0xa2   :  { %v873_v8 = vpop.f32.mrf.mxu2  ;;  %v875_v9 = vpop.f32.mrf.mxu3 }
  0xa3   :  { %v877_v10 = vpop.f32.mrf.mxu0  ;;  %v879_v11 = vpop.f32.mrf.mxu1 }
  0xaa   :  { %v883_v14 = vpop.f32.mrf.mxu2  ;;  %v885_v15 = vpop.f32.mrf.mxu3 }
  0xab   :  { %v887_v16 = vpop.f32.mrf.mxu0  ;;  %v889_v17 = vpop.f32.mrf.mxu1 }
  0xb2   :  { %v895_v20 = vpop.f32.mrf.mxu2  ;;  %v897_v21 = vpop.f32.mrf.mxu3 }
  0xb3   :  { %v262_v22 = vpop.f32.mrf.mxu0  ;;  %v297_v23 = vpop.f32.mrf.mxu1 }
  0xb4   :  { %v263_v24 = vadd.f32 %v262_v22, %v103_v57  ;;  %v298_v25 = vadd.f32 %v297_v23, %v138_v58 }
  0xb6   :  { %v421_v27 = vmul.f32 %v394_v7, %v263_v24  ;;  %v422_v28 = vmul.f32 %v394_v7, %v298_v25  ;;  %v464_v25 = vpop.permute.xlu2 %463 }
  0xb8   :  { %v481_v29 = vadd.f32 %v454_v26, %v421_v27  ;;  %v482_v30 = vadd.f32 %v454_v26, %v422_v28 }
  0xba   :  { %v505_v31 = vmax.f32 %v481_v29, 0.0  ;;  %v506_v32 = vmax.f32 %v482_v30, 0.0  ;;  %v332_v33 = vpop.f32.mrf.mxu2  ;;  %v367_v34 = vpop.f32.mrf.mxu3 }
  0xbb   :  { %v333_v35 = vadd.f32 %v332_v33, %v173_v59  ;;  %v368_v36 = vadd.f32 %v367_v34, %v208_v60  ;;  %v265_v37 = vpop.f32.mrf.mxu0  ;;  %v300_v38 = vpop.f32.mrf.mxu1 }
  0xbc   :  { %529 = vst [vmem:[%s1011_s6] sm:$0xff] %v505_v31  ;;  %v266_v39 = vadd.f32 %v265_v37, %v106_v61  ;;  %v301_v40 = vadd.f32 %v300_v38, %v141_v62 }
  0xbd   :  { %530 = vst [vmem:[%s1011_s6 + $0x8] sm:$0xff] %v506_v32  ;;  %v423_v41 = vmul.f32 %v394_v7, %v333_v35  ;;  %v424_v42 = vmul.f32 %v394_v7, %v368_v36 }
  0xbe   :  { %v425_v45 = vmul.f32 %v399_v13, %v266_v39  ;;  %v426_v46 = vmul.f32 %v399_v13, %v301_v40  ;;  %v469_v40 = vpop.permute.xlu0 %468 }
  0xbf   :  { %v483_v47 = vadd.f32 %v454_v26, %v423_v41  ;;  %v484_v48 = vadd.f32 %v454_v26, %v424_v42 }
  0xc0   :  { %v485_v49 = vadd.f32 %v459_v44, %v425_v45  ;;  %v486_v50 = vadd.f32 %v459_v44, %v426_v46 }
  0xc1   :  { %v507_v51 = vmax.f32 %v483_v47, 0.0  ;;  %v508_v52 = vmax.f32 %v484_v48, 0.0 }
  0xc2   :  { %v509_v53 = vmax.f32 %v485_v49, 0.0  ;;  %v510_v54 = vmax.f32 %v486_v50, 0.0  ;;  %v335_v55 = vpop.f32.mrf.mxu2  ;;  %v370_v56 = vpop.f32.mrf.mxu3 }
  0xc3   :  { %531 = vst [vmem:[%s1011_s6 + $0x10] sm:$0xff] %v507_v51  ;;  %v336_v57 = vadd.f32 %v335_v55, %v176_v63  ;;  %v371_v58 = vadd.f32 %v370_v56, %v211_v0  ;;  %v268_v59 = vpop.f32.mrf.mxu0  ;;  %v303_v60 = vpop.f32.mrf.mxu1 }
  0xc4   :  { %532 = vst [vmem:[%s1011_s6 + $0x18] sm:$0xff] %v508_v52  ;;  %v269_v61 = vadd.f32 %v268_v59, %v861_v1  ;;  %v304_v62 = vadd.f32 %v303_v60, %v863_v2  ;;  %v474_v56 = vpop.permute.xlu1 %473 }
  0xc5   :  { %533 = vst [vmem:[%s1011_s6 + $0x20] sm:$0xff] %v509_v53  ;;  %v427_v7 = vmul.f32 %v399_v13, %v336_v57  ;;  %v428_v22 = vmul.f32 %v399_v13, %v371_v58 }
  0xc6   :  { %534 = vst [vmem:[%s1011_s6 + $0x28] sm:$0xff] %v510_v54  ;;  %v429_v63 = vmul.f32 %v881_v12, %v269_v61  ;;  %v430_v0 = vmul.f32 %v881_v12, %v304_v62 }
  0xc7   :  { %v487_v23 = vadd.f32 %v459_v44, %v427_v7  ;;  %v488_v24 = vadd.f32 %v459_v44, %v428_v22 }
  0xc8   :  { %v489_v1 = vadd.f32 %v464_v25, %v429_v63  ;;  %v490_v26 = vadd.f32 %v464_v25, %v430_v0 }
  0xc9   :  { %v511_v2 = vmax.f32 %v487_v23, 0.0  ;;  %v512_v27 = vmax.f32 %v488_v24, 0.0 }
  0xca   :  { %v513_v28 = vmax.f32 %v489_v1, 0.0  ;;  %v514_v29 = vmax.f32 %v490_v26, 0.0  ;;  %v338_v30 = vpop.f32.mrf.mxu2  ;;  %v373_v31 = vpop.f32.mrf.mxu3 }
  0xcb   :  { %535 = vst [vmem:[%s1011_s6 + $0x30] sm:$0xff] %v511_v2  ;;  %v339_v13 = vadd.f32 %v338_v30, %v865_v3  ;;  %v374_v32 = vadd.f32 %v373_v31, %v867_v4  ;;  %v271_v33 = vpop.f32.mrf.mxu0  ;;  %v306_v34 = vpop.f32.mrf.mxu1 }
  0xcc   :  { %536 = vst [vmem:[%s1011_s6 + $0x38] sm:$0xff] %v512_v27  ;;  %v272_v35 = vadd.f32 %v271_v33, %v869_v5  ;;  %v307_v36 = vadd.f32 %v306_v34, %v871_v6  ;;  %v479_v2 = vpop.permute.xlu2 %478 }
  0xcd   :  { %537 = vst [vmem:[%s1011_s6 + $0x40] sm:$0xff] %v513_v28  ;;  %v431_v37 = vmul.f32 %v881_v12, %v339_v13  ;;  %v432_v3 = vmul.f32 %v881_v12, %v374_v32 }
  0xce   :  { %538 = vst [vmem:[%s1011_s6 + $0x48] sm:$0xff] %v514_v29  ;;  %v433_v4 = vmul.f32 %v893_v19, %v272_v35  ;;  %v434_v38 = vmul.f32 %v893_v19, %v307_v36 }
  0xcf   :  { %v491_v39 = vadd.f32 %v464_v25, %v431_v37  ;;  %v492_v5 = vadd.f32 %v464_v25, %v432_v3 }
  0xd0   :  { %v493_v6 = vadd.f32 %v469_v40, %v433_v4  ;;  %v494_v41 = vadd.f32 %v469_v40, %v434_v38 }
  0xd1   :  { %v515_v42 = vmax.f32 %v491_v39, 0.0  ;;  %v516_v44 = vmax.f32 %v492_v5, 0.0 }
  0xd2   :  { %v517_v45 = vmax.f32 %v493_v6, 0.0  ;;  %v518_v46 = vmax.f32 %v494_v41, 0.0  ;;  %v341_v47 = vpop.f32.mrf.mxu2  ;;  %v376_v48 = vpop.f32.mrf.mxu3 }
  0xd3   :  { %539 = vst [vmem:[%s1011_s6 + $0x50] sm:$0xff] %v515_v42  ;;  %v342_v12 = vadd.f32 %v341_v47, %v873_v8  ;;  %v377_v49 = vadd.f32 %v376_v48, %v875_v9  ;;  %v274_v50 = vpop.f32.mrf.mxu0  ;;  %v309_v51 = vpop.f32.mrf.mxu1 }
  0xd4   :  { %540 = vst [vmem:[%s1011_s6 + $0x58] sm:$0xff] %v516_v44  ;;  %v275_v52 = vadd.f32 %v274_v50, %v877_v10  ;;  %v310_v53 = vadd.f32 %v309_v51, %v879_v11 }
  0xd5   :  { %541 = vst [vmem:[%s1011_s6 + $0x60] sm:$0xff] %v517_v45  ;;  %v435_v54 = vmul.f32 %v893_v19, %v342_v12  ;;  %v436_v8 = vmul.f32 %v893_v19, %v377_v49 }
  0xd6   :  { %542 = vst [vmem:[%s1011_s6 + $0x68] sm:$0xff] %v518_v46  ;;  %v437_v9 = vmul.f32 %v891_v18, %v275_v52  ;;  %v438_v55 = vmul.f32 %v891_v18, %v310_v53 }
  0xd7   :  { %v495_v10 = vadd.f32 %v469_v40, %v435_v54  ;;  %v496_v57 = vadd.f32 %v469_v40, %v436_v8 }
  0xd8   :  { %v497_v11 = vadd.f32 %v474_v56, %v437_v9  ;;  %v498_v58 = vadd.f32 %v474_v56, %v438_v55 }
  0xd9   :  { %v519_v59 = vmax.f32 %v495_v10, 0.0  ;;  %v520_v60 = vmax.f32 %v496_v57, 0.0 }
  0xda   :  { %v521_v61 = vmax.f32 %v497_v11, 0.0  ;;  %v522_v62 = vmax.f32 %v498_v58, 0.0  ;;  %v344_v7 = vpop.f32.mrf.mxu2  ;;  %v379_v22 = vpop.f32.mrf.mxu3 }
  0xdb   :  { %543 = vst [vmem:[%s1011_s6 + $0x70] sm:$0xff] %v519_v59  ;;  %v345_v19 = vadd.f32 %v344_v7, %v883_v14  ;;  %v380_v63 = vadd.f32 %v379_v22, %v885_v15  ;;  %v277_v0 = vpop.f32.mrf.mxu0  ;;  %v312_v23 = vpop.f32.mrf.mxu1 }
  0xdc   :  { %544 = vst [vmem:[%s1011_s6 + $0x78] sm:$0xff] %v520_v60  ;;  %v278_v24 = vadd.f32 %v277_v0, %v887_v16  ;;  %v313_v25 = vadd.f32 %v312_v23, %v889_v17 }
  0xdd   :  { %545 = vst [vmem:[%s1011_s6 + $0x80] sm:$0xff] %v521_v61  ;;  %v439_v1 = vmul.f32 %v891_v18, %v345_v19  ;;  %v440_v14 = vmul.f32 %v891_v18, %v380_v63 }
  0xde   :  { %546 = vst [vmem:[%s1011_s6 + $0x88] sm:$0xff] %v522_v62  ;;  %v441_v15 = vmul.f32 %v905_v43, %v278_v24  ;;  %v442_v26 = vmul.f32 %v905_v43, %v313_v25 }
  0xdf   :  { %v499_v16 = vadd.f32 %v474_v56, %v439_v1  ;;  %v500_v27 = vadd.f32 %v474_v56, %v440_v14 }
  0xe0   :  { %v501_v17 = vadd.f32 %v479_v2, %v441_v15  ;;  %v502_v28 = vadd.f32 %v479_v2, %v442_v26 }
  0xe1   :  { %v523_v29 = vmax.f32 %v499_v16, 0.0  ;;  %v524_v30 = vmax.f32 %v500_v27, 0.0 }
  0xe2   :  { %v525_v31 = vmax.f32 %v501_v17, 0.0  ;;  %v526_v13 = vmax.f32 %v502_v28, 0.0  ;;  %v347_v32 = vpop.f32.mrf.mxu2  ;;  %v382_v33 = vpop.f32.mrf.mxu3 }
  0xe3   :  { %547 = vst [vmem:[%s1011_s6 + $0x90] sm:$0xff] %v523_v29  ;;  %v348_v18 = vadd.f32 %v347_v32, %v895_v20  ;;  %v383_v34 = vadd.f32 %v382_v33, %v897_v21 }
  0xe4   :  { %548 = vst [vmem:[%s1011_s6 + $0x98] sm:$0xff] %v524_v30 }
  0xe5   :  { %549 = vst [vmem:[%s1011_s6 + $0xa0] sm:$0xff] %v525_v31  ;;  %v443_v35 = vmul.f32 %v905_v43, %v348_v18  ;;  %v444_v36 = vmul.f32 %v905_v43, %v383_v34 }
  0xe6   :  { %550 = vst [vmem:[%s1011_s6 + $0xa8] sm:$0xff] %v526_v13 }
  0xe7   :  { %v503_v37 = vadd.f32 %v479_v2, %v443_v35  ;;  %v504_v20 = vadd.f32 %v479_v2, %v444_v36 }
  0xe9   :  { %v527_v3 = vmax.f32 %v503_v37, 0.0  ;;  %v528_v21 = vmax.f32 %v504_v20, 0.0 }
  0xeb   :  { %551 = vst [vmem:[%s1011_s6 + $0xb0] sm:$0xff] %v527_v3 }
  0xec   :  { %552 = vst [vmem:[%s1011_s6 + $0xb8] sm:$0xff] %v528_v21 }

</bundles_post_ra>
